<compile_context>
chip_gen: v6e
topology: v6e:2x2x1
jax: 0.10.0
libtpu: 0.0.40
codegen_flags: <defaults>
</compile_context>

<pallas_src>
import jax
import jax.numpy as jnp
from jax import lax
from jax.experimental import pallas as pl
from jax.experimental.pallas import tpu as pltpu

SEQ = 64                    # sequence length (forced by x.view(B, 64*256))
EMBED = 256                 # embed size     (forced by x.view(B, 64*256))
HEADS = 4                   # SparseAttention(4, 'strided', 8, 8)
STRIDE = 8                  # local_attn_ctx for the strided mask
HEAD_DIM = EMBED // HEADS   # 64
FFN_IN = SEQ * EMBED        # 16384
FFN_OUT = 256
FFN_N_TILE = 128            # N split in 2 -> parallel axis (both TCs on v7x)
FFN_K_TILE = 8192           # (8192,128) bf16 weight tile = 2 MiB, 4 MiB 2-buf


def _pick_batch_block(batch):
    """Largest divisor of `batch` that is <= min(8, batch//2) (>=2 grid steps)."""
    target = max(1, min(8, batch // 2))
    for bb in range(target, 0, -1):
        if batch % bb == 0:
            return bb
    return 1


# ---------------------------------------------------------------------------
# Kernel 1: strided-mask multi-head attention + fused residual add.
#   One grid step per batch block; the 4 heads are static lane-slices of the
#   256-wide embed.  Outputs:
#     attn_ref : raw attention output (returned by the Encoder)
#     y_ref    : attn + x  (feeds the FFN; saves one HBM stream there)
#   Matmul operands cast to bf16 (f32 accumulation) — MXU-native on all gens.
# ---------------------------------------------------------------------------
def _attention_kernel(x_ref, bias_ref, attn_ref, y_ref):
    x = x_ref[...]                               # (BB, S, E)
    bias = bias_ref[...]                         # (S, S): 0 kept, -1e9 masked
    scale = jnp.float32(1.0 / (HEAD_DIM ** 0.5))

    head_outs = []
    for h in range(HEADS):                       # static 4-way unroll
        xh = x[:, :, h * HEAD_DIM:(h + 1) * HEAD_DIM]        # (BB, S, Dh)
        xh_b = xh.astype(jnp.bfloat16)
        s = jnp.einsum('bqd,bkd->bqk', xh_b, xh_b,
                       preferred_element_type=jnp.float32)
        s = s * scale + bias[None, :, :]
        m = jnp.max(s, axis=-1, keepdims=True)
        e = jnp.exp(s - m)
        denom = jnp.sum(e, axis=-1, keepdims=True)
        p = e * pl.reciprocal(denom, approx=True)            # EUP reciprocal
        head_outs.append(jnp.einsum('bqk,bkd->bqd',
                                    p.astype(jnp.bfloat16), xh_b,
                                    preferred_element_type=jnp.float32))

    attn = jnp.concatenate(head_outs, axis=-1)   # (BB, S, E) lane-dense
    attn_ref[...] = attn.astype(attn_ref.dtype)
    y_ref[...] = (attn + x).astype(y_ref.dtype)  # fused residual


def strided_attention_fused(x, mask_bias, *, batch_block):
    # x: (B, S, E) f32; mask_bias: (S, S) f32 additive mask.
    batch = x.shape[0]
    xspec = pl.BlockSpec((batch_block, SEQ, EMBED), lambda b: (b, 0, 0))
    attn, y = pl.pallas_call(
        _attention_kernel,
        out_shape=(jax.ShapeDtypeStruct((batch, SEQ, EMBED), jnp.float32),
                   jax.ShapeDtypeStruct((batch, SEQ, EMBED), jnp.float32)),
        grid_spec=pltpu.PrefetchScalarGridSpec(
            num_scalar_prefetch=0,
            grid=(batch // batch_block,),
            in_specs=[
                xspec,
                pl.BlockSpec((SEQ, SEQ), lambda b: (0, 0)),   # constant mask
            ],
            out_specs=(xspec, xspec),
        ),
        compiler_params=pltpu.CompilerParams(
            dimension_semantics=("parallel",)),
    )(x, mask_bias)
    return attn, y


# ---------------------------------------------------------------------------
# Kernel 2: Linear(16384, 256) + ReLU on the fused (attn + x) activation.
#   grid = (N tiles, K tiles) = (2, 2); N parallel (both TCs on v7x), K is the
#   reduction (last).  Weight arrives as pre-split bf16 (2, FFN_IN, 128) so
#   each (8192, 128) tile DMA is fully row-contiguous.  Accumulates into the
#   VMEM-resident f32 output block; bias + ReLU applied on the last K step.
# ---------------------------------------------------------------------------
def _ffn_kernel(y_ref, w_ref, b_ref, o_ref):
    kk = pl.program_id(1)

    @pl.when(kk == 0)
    def _():
        o_ref[...] = jnp.zeros_like(o_ref)

    o_ref[...] += jnp.dot(y_ref[...].astype(jnp.bfloat16), w_ref[0],
                          preferred_element_type=jnp.float32)

    @pl.when(kk == pl.num_programs(1) - 1)
    def _():
        o_ref[...] = jnp.maximum(o_ref[...] + b_ref[...], 0.0).astype(o_ref.dtype)


def ffn_relu(y_flat, w_split, b, *, tk=FFN_K_TILE, tn=FFN_N_TILE):
    # y_flat: (B, FFN_IN) f32; w_split: (FFN_OUT//tn, FFN_IN, tn) bf16;
    # b: (1, FFN_OUT) f32.
    batch = y_flat.shape[0]
    grid = (FFN_OUT // tn, FFN_IN // tk)          # (2, 2): reduction axis last
    return pl.pallas_call(
        _ffn_kernel,
        out_shape=jax.ShapeDtypeStruct((batch, FFN_OUT), jnp.float32),
        grid_spec=pltpu.PrefetchScalarGridSpec(
            num_scalar_prefetch=0,
            grid=grid,
            in_specs=[
                pl.BlockSpec((batch, tk), lambda n, k: (0, k)),      # activation
                pl.BlockSpec((1, tk, tn), lambda n, k: (n, k, 0)),   # bf16 weight
                pl.BlockSpec((1, tn), lambda n, k: (0, n)),          # bias tile
            ],
            out_specs=pl.BlockSpec((batch, tn), lambda n, k: (0, n)),
        ),
        compiler_params=pltpu.CompilerParams(
            dimension_semantics=("parallel", "arbitrary")),
    )(y_flat, w_split, b)


# ---------------------------------------------------------------------------
# Weight prep (done ONCE, outside the jit): split N into contiguous halves and
# cast to bf16 so the per-call weight stream is half the bytes and unstrided.
# ---------------------------------------------------------------------------
def prepare_ffn_weight(w):
    # w: (FFN_IN, FFN_OUT) f32, pre-transposed for x @ W^T.
    n_blocks = FFN_OUT // FFN_N_TILE
    w_split = jnp.transpose(w.reshape(FFN_IN, n_blocks, FFN_N_TILE), (1, 0, 2))
    return w_split.astype(jnp.bfloat16)           # (2, FFN_IN, 128) bf16


# ---------------------------------------------------------------------------
# Encoder forward (glue in plain JAX: mask constant, reshape, dead-layer cut).
# ---------------------------------------------------------------------------
@jax.jit
def encoder_forward(x, mask, w_split, b):
    # x: (B, S, E); mask accepted but unused (matches the PyTorch module).
    del mask
    batch = x.shape[0]

    # strided causal mask, built once (input-independent -> constant folded):
    #   keep iff (qi >= ki) and ((qi - ki) % STRIDE == 0)
    qi = lax.broadcasted_iota(jnp.int32, (SEQ, SEQ), 0)
    ki = lax.broadcasted_iota(jnp.int32, (SEQ, SEQ), 1)
    keep = (qi >= ki) & (((qi - ki) % STRIDE) == 0)
    mask_bias = jnp.where(keep, 0.0, -1e9).astype(jnp.float32)

    bb = _pick_batch_block(batch)                 # static under jit
    attn, y = strided_attention_fused(x, mask_bias, batch_block=bb)

    y_flat = y.reshape(batch, FFN_IN)             # free reshape (contiguous)
    out = ffn_relu(y_flat, w_split, b)            # last (live) layer only
    return out, attn


if __name__ == "__main__":
    NUM_LAYERS = 2
    BATCH = 2

    key = jax.random.PRNGKey(0)
    kx, *kl = jax.random.split(key, 1 + 2 * NUM_LAYERS)

    # input: (B, S, E) = (2, 64, 256)
    x = jax.random.normal(kx, (BATCH, SEQ, EMBED), dtype=jnp.float32)
    mask = jnp.ones((BATCH, SEQ), dtype=jnp.float32)   # unused, kept for parity

    # per-layer Linear(16384, 256) params (~PyTorch init bound).  Weight is
    # stored pre-transposed as (FFN_IN, FFN_OUT) for x @ W^T.
    bound = 1.0 / (FFN_IN ** 0.5)
    ws, bs = [], []
    for i in range(NUM_LAYERS):
        w = jax.random.uniform(kl[2 * i], (FFN_IN, FFN_OUT),
                               minval=-bound, maxval=bound, dtype=jnp.float32)
        b = jax.random.uniform(kl[2 * i + 1], (1, FFN_OUT),
                               minval=-bound, maxval=bound, dtype=jnp.float32)
        ws.append(w)
        bs.append(b)

    # PyTorch layer loop feeds the SAME x to every layer and discards all but
    # the last layer's output -> only the last layer's FFN weights are live.
    w_split = jax.block_until_ready(prepare_ffn_weight(ws[-1]))  # once, off jit
    b_last = bs[-1]

    out, attn = encoder_forward(x, mask, w_split, b_last)
    jax.block_until_ready((out, attn))

    assert out.shape == (BATCH, FFN_OUT)
    assert attn.shape == (BATCH, SEQ, EMBED)
    print("KERNEL_OK")
</pallas_src>

<mosaic_0001>
module attributes {stable_mosaic.version = 11 : i64} {
  func.func @_ffn_kernel(%arg0: i32, %arg1: i32, %arg2: memref<2x8192xf32, #tpu.memory_space<vmem>>, %arg3: memref<1x8192x128xbf16, #tpu.memory_space<vmem>>, %arg4: memref<1x128xf32, #tpu.memory_space<vmem>>, %arg5: memref<2x128xf32, #tpu.memory_space<vmem>>) attributes {dimension_semantics = [#tpu.dimension_semantics<parallel>, #tpu.dimension_semantics<arbitrary>], iteration_bounds = array<i64: 2, 2>, scalar_prefetch = 0 : i64, scratch_operands = 0 : i64, tpu.core_type = #tpu.core_type<tc>, window_params = [{transform_indices = @transform_0, window_bounds = array<i64: 2, 8192>}, {transform_indices = @transform_1, window_bounds = array<i64: 1, 8192, 128>}, {transform_indices = @transform_2, window_bounds = array<i64: 1, 128>}, {transform_indices = @transform_3, window_bounds = array<i64: 2, 128>}]} {
    %c0_i32 = arith.constant 0 : i32
    %0 = arith.cmpi eq, %arg1, %c0_i32 : i32
    %1 = arith.extui %0 : i1 to i32
    %c0_i32_0 = arith.constant 0 : i32
    %2 = arith.cmpi ne, %1, %c0_i32_0 : i32
    scf.if %2 {
      %cst_10 = arith.constant 0.000000e+00 : f32
      %14 = vector.broadcast %cst_10 : f32 to vector<2x128xf32>
      %c0_11 = arith.constant 0 : index
      %c0_12 = arith.constant 0 : index
      %15 = vector.load %arg5[%c0_11, %c0_12] : memref<2x128xf32, #tpu.memory_space<vmem>>, vector<2x128xf32>
      tpu.vector_store %arg5[%c0_11, %c0_12], %14 {strides = array<i32>} : memref<2x128xf32, #tpu.memory_space<vmem>>, vector<2x128xf32>,
    } else {
    }
    %c0 = arith.constant 0 : index
    %c0_1 = arith.constant 0 : index
    %3 = vector.load %arg5[%c0, %c0_1] : memref<2x128xf32, #tpu.memory_space<vmem>>, vector<2x128xf32>
    %c0_2 = arith.constant 0 : index
    %c0_3 = arith.constant 0 : index
    %4 = vector.load %arg2[%c0_2, %c0_3] : memref<2x8192xf32, #tpu.memory_space<vmem>>, vector<2x8192xf32>
    %5 = arith.truncf %4 : vector<2x8192xf32> to vector<2x8192xbf16>
    %c0_4 = arith.constant 0 : index
    %c0_5 = arith.constant 0 : index
    %c0_6 = arith.constant 0 : index
    %6 = vector.load %arg3[%c0_4, %c0_5, %c0_6] : memref<1x8192x128xbf16, #tpu.memory_space<vmem>>, vector<1x8192x128xbf16>
    %7 = vector.shape_cast %6 : vector<1x8192x128xbf16> to vector<8192x128xbf16>
    %cst = arith.constant dense<0.000000e+00> : vector<2x128xf32>
    %8 = tpu.matmul %5, %7, %cst {dimension_numbers = #tpu.dot_dimension_numbers<[1], [0], [0], [1], [0, 0, 1, 1], [], []>} : vector<2x8192xbf16>, vector<8192x128xbf16>, vector<2x128xf32> -> vector<2x128xf32>
    %9 = arith.addf %3, %8 : vector<2x128xf32>
    %c0_7 = arith.constant 0 : index
    %c0_8 = arith.constant 0 : index
    %10 = vector.load %arg5[%c0_7, %c0_8] : memref<2x128xf32, #tpu.memory_space<vmem>>, vector<2x128xf32>
    tpu.vector_store %arg5[%c0_7, %c0_8], %9 {strides = array<i32>} : memref<2x128xf32, #tpu.memory_space<vmem>>, vector<2x128xf32>,
    %c1_i32 = arith.constant 1 : i32
    %11 = arith.cmpi eq, %arg1, %c1_i32 : i32
    %12 = arith.extui %11 : i1 to i32
    %c0_i32_9 = arith.constant 0 : i32
    %13 = arith.cmpi ne, %12, %c0_i32_9 : i32
    scf.if %13 {
      %c0_10 = arith.constant 0 : index
      %c0_11 = arith.constant 0 : index
      %14 = vector.load %arg5[%c0_10, %c0_11] : memref<2x128xf32, #tpu.memory_space<vmem>>, vector<2x128xf32>
      %c0_12 = arith.constant 0 : index
      %c0_13 = arith.constant 0 : index
      %15 = vector.load %arg4[%c0_12, %c0_13] : memref<1x128xf32, #tpu.memory_space<vmem>>, vector<1x128xf32>
      %16 = vector.broadcast %15 : vector<1x128xf32> to vector<2x128xf32>
      %17 = arith.addf %14, %16 : vector<2x128xf32>
      %cst_14 = arith.constant 0.000000e+00 : f32
      %18 = vector.broadcast %cst_14 : f32 to vector<2x128xf32>
      %19 = arith.maximumf %17, %18 : vector<2x128xf32>
      %c0_15 = arith.constant 0 : index
      %c0_16 = arith.constant 0 : index
      %20 = vector.load %arg5[%c0_15, %c0_16] : memref<2x128xf32, #tpu.memory_space<vmem>>, vector<2x128xf32>
      tpu.vector_store %arg5[%c0_15, %c0_16], %19 {strides = array<i32>} : memref<2x128xf32, #tpu.memory_space<vmem>>, vector<2x128xf32>,
    } else {
    }
    return
  }
  func.func @transform_0(%arg0: i32, %arg1: i32) -> (i32, i32) {
    %c0_i32 = arith.constant 0 : i32
    %c0_i32_0 = arith.constant 0 : i32
    return %c0_i32, %arg1 : i32, i32
  }
  func.func @transform_1(%arg0: i32, %arg1: i32) -> (i32, i32, i32) {
    %c0_i32 = arith.constant 0 : i32
    %c0_i32_0 = arith.constant 0 : i32
    return %arg0, %arg1, %c0_i32 : i32, i32, i32
  }
  func.func @transform_2(%arg0: i32, %arg1: i32) -> (i32, i32) {
    %c0_i32 = arith.constant 0 : i32
    %c0_i32_0 = arith.constant 0 : i32
    return %c0_i32, %arg0 : i32, i32
  }
  func.func @transform_3(%arg0: i32, %arg1: i32) -> (i32, i32) {
    %c0_i32 = arith.constant 0 : i32
    %c0_i32_0 = arith.constant 0 : i32
    return %c0_i32, %arg0 : i32, i32
  }
}

module attributes {stable_mosaic.version = 11 : i64} {
  func.func @_attention_kernel(%arg0: i32, %arg1: memref<1x64x256xf32, #tpu.memory_space<vmem>>, %arg2: memref<64x64xf32, #tpu.memory_space<vmem>>, %arg3: memref<1x64x256xf32, #tpu.memory_space<vmem>>, %arg4: memref<1x64x256xf32, #tpu.memory_space<vmem>>) attributes {dimension_semantics = [#tpu.dimension_semantics<parallel>], iteration_bounds = array<i64: 2>, scalar_prefetch = 0 : i64, scratch_operands = 0 : i64, tpu.core_type = #tpu.core_type<tc>, window_params = [{transform_indices = @transform_0, window_bounds = array<i64: 1, 64, 256>}, {pipeline_mode = #tpu.pipeline_mode<synchronous>, transform_indices = @transform_1, window_bounds = array<i64: 64, 64>}, {transform_indices = @transform_2, window_bounds = array<i64: 1, 64, 256>}, {transform_indices = @transform_3, window_bounds = array<i64: 1, 64, 256>}]} {
    %c0 = arith.constant 0 : index
    %c0_0 = arith.constant 0 : index
    %c0_1 = arith.constant 0 : index
    %0 = vector.load %arg1[%c0, %c0_0, %c0_1] : memref<1x64x256xf32, #tpu.memory_space<vmem>>, vector<1x64x256xf32>
    %c0_2 = arith.constant 0 : index
    %c0_3 = arith.constant 0 : index
    %1 = vector.load %arg2[%c0_2, %c0_3] : memref<64x64xf32, #tpu.memory_space<vmem>>, vector<64x64xf32>
    %2 = vector.extract_strided_slice %0 {offsets = [0, 0, 0], sizes = [1, 64, 64], strides = [1, 1, 1]} : vector<1x64x256xf32> to vector<1x64x64xf32>
    %3 = arith.truncf %2 : vector<1x64x64xf32> to vector<1x64x64xbf16>
    "tpu.trace_start"() <{level = 10 : i32, message = "bqd,bkd->bqk"}> : () -> ()
    %cst = arith.constant dense<0.000000e+00> : vector<1x64x64xf32>
    %4 = tpu.matmul %3, %3, %cst {dimension_numbers = #tpu.dot_dimension_numbers<[2], [2], [1], [1], [0, 0, 0, 1, 1, 1], [0], [0]>} : vector<1x64x64xbf16>, vector<1x64x64xbf16>, vector<1x64x64xf32> -> vector<1x64x64xf32>
    "tpu.trace_stop"() : () -> ()
    %cst_4 = arith.constant 1.250000e-01 : f32
    %5 = vector.broadcast %cst_4 : f32 to vector<1x64x64xf32>
    %6 = arith.mulf %4, %5 : vector<1x64x64xf32>
    %7 = vector.shape_cast %1 : vector<64x64xf32> to vector<1x64x64xf32>
    %8 = arith.addf %6, %7 : vector<1x64x64xf32>
    %cst_5 = arith.constant dense<0xFF800000> : vector<1x64xf32>
    %9 = vector.multi_reduction <maximumf>, %8, %cst_5 [2] : vector<1x64x64xf32> to vector<1x64xf32>
    %10 = vector.shape_cast %9 : vector<1x64xf32> to vector<1x64x1xf32>
    %11 = vector.broadcast %10 : vector<1x64x1xf32> to vector<1x64x64xf32>
    %12 = arith.subf %8, %11 : vector<1x64x64xf32>
    %13 = math.exp %12 : vector<1x64x64xf32>
    %cst_6 = arith.constant dense<0.000000e+00> : vector<1x64xf32>
    %14 = vector.multi_reduction <add>, %13, %cst_6 [2] : vector<1x64x64xf32> to vector<1x64xf32>
    %15 = vector.shape_cast %14 : vector<1x64xf32> to vector<1x64x1xf32>
    %16 = tpu.reciprocal %15 {approx = true} : vector<1x64x1xf32> -> vector<1x64x1xf32>
    %17 = vector.broadcast %16 : vector<1x64x1xf32> to vector<1x64x64xf32>
    %18 = arith.mulf %13, %17 : vector<1x64x64xf32>
    %19 = arith.truncf %18 : vector<1x64x64xf32> to vector<1x64x64xbf16>
    "tpu.trace_start"() <{level = 10 : i32, message = "bqk,bkd->bqd"}> : () -> ()
    %cst_7 = arith.constant dense<0.000000e+00> : vector<1x64x64xf32>
    %20 = tpu.matmul %19, %3, %cst_7 {dimension_numbers = #tpu.dot_dimension_numbers<[2], [1], [1], [2], [0, 0, 0, 1, 1, 2], [0], [0]>} : vector<1x64x64xbf16>, vector<1x64x64xbf16>, vector<1x64x64xf32> -> vector<1x64x64xf32>
    "tpu.trace_stop"() : () -> ()
    %21 = vector.extract_strided_slice %0 {offsets = [0, 0, 64], sizes = [1, 64, 64], strides = [1, 1, 1]} : vector<1x64x256xf32> to vector<1x64x64xf32>
    %22 = arith.truncf %21 : vector<1x64x64xf32> to vector<1x64x64xbf16>
    "tpu.trace_start"() <{level = 10 : i32, message = "bqd,bkd->bqk"}> : () -> ()
    %cst_8 = arith.constant dense<0.000000e+00> : vector<1x64x64xf32>
    %23 = tpu.matmul %22, %22, %cst_8 {dimension_numbers = #tpu.dot_dimension_numbers<[2], [2], [1], [1], [0, 0, 0, 1, 1, 1], [0], [0]>} : vector<1x64x64xbf16>, vector<1x64x64xbf16>, vector<1x64x64xf32> -> vector<1x64x64xf32>
    "tpu.trace_stop"() : () -> ()
    %cst_9 = arith.constant 1.250000e-01 : f32
    %24 = vector.broadcast %cst_9 : f32 to vector<1x64x64xf32>
    %25 = arith.mulf %23, %24 : vector<1x64x64xf32>
    %26 = vector.shape_cast %1 : vector<64x64xf32> to vector<1x64x64xf32>
    %27 = arith.addf %25, %26 : vector<1x64x64xf32>
    %cst_10 = arith.constant dense<0xFF800000> : vector<1x64xf32>
    %28 = vector.multi_reduction <maximumf>, %27, %cst_10 [2] : vector<1x64x64xf32> to vector<1x64xf32>
    %29 = vector.shape_cast %28 : vector<1x64xf32> to vector<1x64x1xf32>
    %30 = vector.broadcast %29 : vector<1x64x1xf32> to vector<1x64x64xf32>
    %31 = arith.subf %27, %30 : vector<1x64x64xf32>
    %32 = math.exp %31 : vector<1x64x64xf32>
    %cst_11 = arith.constant dense<0.000000e+00> : vector<1x64xf32>
    %33 = vector.multi_reduction <add>, %32, %cst_11 [2] : vector<1x64x64xf32> to vector<1x64xf32>
    %34 = vector.shape_cast %33 : vector<1x64xf32> to vector<1x64x1xf32>
    %35 = tpu.reciprocal %34 {approx = true} : vector<1x64x1xf32> -> vector<1x64x1xf32>
    %36 = vector.broadcast %35 : vector<1x64x1xf32> to vector<1x64x64xf32>
    %37 = arith.mulf %32, %36 : vector<1x64x64xf32>
    %38 = arith.truncf %37 : vector<1x64x64xf32> to vector<1x64x64xbf16>
    "tpu.trace_start"() <{level = 10 : i32, message = "bqk,bkd->bqd"}> : () -> ()
    %cst_12 = arith.constant dense<0.000000e+00> : vector<1x64x64xf32>
    %39 = tpu.matmul %38, %22, %cst_12 {dimension_numbers = #tpu.dot_dimension_numbers<[2], [1], [1], [2], [0, 0, 0, 1, 1, 2], [0], [0]>} : vector<1x64x64xbf16>, vector<1x64x64xbf16>, vector<1x64x64xf32> -> vector<1x64x64xf32>
    "tpu.trace_stop"() : () -> ()
    %40 = vector.extract_strided_slice %0 {offsets = [0, 0, 128], sizes = [1, 64, 64], strides = [1, 1, 1]} : vector<1x64x256xf32> to vector<1x64x64xf32>
    %41 = arith.truncf %40 : vector<1x64x64xf32> to vector<1x64x64xbf16>
    "tpu.trace_start"() <{level = 10 : i32, message = "bqd,bkd->bqk"}> : () -> ()
    %cst_13 = arith.constant dense<0.000000e+00> : vector<1x64x64xf32>
    %42 = tpu.matmul %41, %41, %cst_13 {dimension_numbers = #tpu.dot_dimension_numbers<[2], [2], [1], [1], [0, 0, 0, 1, 1, 1], [0], [0]>} : vector<1x64x64xbf16>, vector<1x64x64xbf16>, vector<1x64x64xf32> -> vector<1x64x64xf32>
    "tpu.trace_stop"() : () -> ()
    %cst_14 = arith.constant 1.250000e-01 : f32
    %43 = vector.broadcast %cst_14 : f32 to vector<1x64x64xf32>
    %44 = arith.mulf %42, %43 : vector<1x64x64xf32>
    %45 = vector.shape_cast %1 : vector<64x64xf32> to vector<1x64x64xf32>
    %46 = arith.addf %44, %45 : vector<1x64x64xf32>
    %cst_15 = arith.constant dense<0xFF800000> : vector<1x64xf32>
    %47 = vector.multi_reduction <maximumf>, %46, %cst_15 [2] : vector<1x64x64xf32> to vector<1x64xf32>
    %48 = vector.shape_cast %47 : vector<1x64xf32> to vector<1x64x1xf32>
    %49 = vector.broadcast %48 : vector<1x64x1xf32> to vector<1x64x64xf32>
    %50 = arith.subf %46, %49 : vector<1x64x64xf32>
    %51 = math.exp %50 : vector<1x64x64xf32>
    %cst_16 = arith.constant dense<0.000000e+00> : vector<1x64xf32>
    %52 = vector.multi_reduction <add>, %51, %cst_16 [2] : vector<1x64x64xf32> to vector<1x64xf32>
    %53 = vector.shape_cast %52 : vector<1x64xf32> to vector<1x64x1xf32>
    %54 = tpu.reciprocal %53 {approx = true} : vector<1x64x1xf32> -> vector<1x64x1xf32>
    %55 = vector.broadcast %54 : vector<1x64x1xf32> to vector<1x64x64xf32>
    %56 = arith.mulf %51, %55 : vector<1x64x64xf32>
    %57 = arith.truncf %56 : vector<1x64x64xf32> to vector<1x64x64xbf16>
    "tpu.trace_start"() <{level = 10 : i32, message = "bqk,bkd->bqd"}> : () -> ()
    %cst_17 = arith.constant dense<0.000000e+00> : vector<1x64x64xf32>
    %58 = tpu.matmul %57, %41, %cst_17 {dimension_numbers = #tpu.dot_dimension_numbers<[2], [1], [1], [2], [0, 0, 0, 1, 1, 2], [0], [0]>} : vector<1x64x64xbf16>, vector<1x64x64xbf16>, vector<1x64x64xf32> -> vector<1x64x64xf32>
    "tpu.trace_stop"() : () -> ()
    %59 = vector.extract_strided_slice %0 {offsets = [0, 0, 192], sizes = [1, 64, 64], strides = [1, 1, 1]} : vector<1x64x256xf32> to vector<1x64x64xf32>
    %60 = arith.truncf %59 : vector<1x64x64xf32> to vector<1x64x64xbf16>
    "tpu.trace_start"() <{level = 10 : i32, message = "bqd,bkd->bqk"}> : () -> ()
    %cst_18 = arith.constant dense<0.000000e+00> : vector<1x64x64xf32>
    %61 = tpu.matmul %60, %60, %cst_18 {dimension_numbers = #tpu.dot_dimension_numbers<[2], [2], [1], [1], [0, 0, 0, 1, 1, 1], [0], [0]>} : vector<1x64x64xbf16>, vector<1x64x64xbf16>, vector<1x64x64xf32> -> vector<1x64x64xf32>
    "tpu.trace_stop"() : () -> ()
    %cst_19 = arith.constant 1.250000e-01 : f32
    %62 = vector.broadcast %cst_19 : f32 to vector<1x64x64xf32>
    %63 = arith.mulf %61, %62 : vector<1x64x64xf32>
    %64 = vector.shape_cast %1 : vector<64x64xf32> to vector<1x64x64xf32>
    %65 = arith.addf %63, %64 : vector<1x64x64xf32>
    %cst_20 = arith.constant dense<0xFF800000> : vector<1x64xf32>
    %66 = vector.multi_reduction <maximumf>, %65, %cst_20 [2] : vector<1x64x64xf32> to vector<1x64xf32>
    %67 = vector.shape_cast %66 : vector<1x64xf32> to vector<1x64x1xf32>
    %68 = vector.broadcast %67 : vector<1x64x1xf32> to vector<1x64x64xf32>
    %69 = arith.subf %65, %68 : vector<1x64x64xf32>
    %70 = math.exp %69 : vector<1x64x64xf32>
    %cst_21 = arith.constant dense<0.000000e+00> : vector<1x64xf32>
    %71 = vector.multi_reduction <add>, %70, %cst_21 [2] : vector<1x64x64xf32> to vector<1x64xf32>
    %72 = vector.shape_cast %71 : vector<1x64xf32> to vector<1x64x1xf32>
    %73 = tpu.reciprocal %72 {approx = true} : vector<1x64x1xf32> -> vector<1x64x1xf32>
    %74 = vector.broadcast %73 : vector<1x64x1xf32> to vector<1x64x64xf32>
    %75 = arith.mulf %70, %74 : vector<1x64x64xf32>
    %76 = arith.truncf %75 : vector<1x64x64xf32> to vector<1x64x64xbf16>
    "tpu.trace_start"() <{level = 10 : i32, message = "bqk,bkd->bqd"}> : () -> ()
    %cst_22 = arith.constant dense<0.000000e+00> : vector<1x64x64xf32>
    %77 = tpu.matmul %76, %60, %cst_22 {dimension_numbers = #tpu.dot_dimension_numbers<[2], [1], [1], [2], [0, 0, 0, 1, 1, 2], [0], [0]>} : vector<1x64x64xbf16>, vector<1x64x64xbf16>, vector<1x64x64xf32> -> vector<1x64x64xf32>
    "tpu.trace_stop"() : () -> ()
    %78 = tpu.concatenate %20, %39, %58, %77 in 2 : vector<1x64x64xf32>, vector<1x64x64xf32>, vector<1x64x64xf32>, vector<1x64x64xf32> -> vector<1x64x256xf32>
    %c0_23 = arith.constant 0 : index
    %c0_24 = arith.constant 0 : index
    %c0_25 = arith.constant 0 : index
    %79 = vector.load %arg3[%c0_23, %c0_24, %c0_25] : memref<1x64x256xf32, #tpu.memory_space<vmem>>, vector<1x64x256xf32>
    tpu.vector_store %arg3[%c0_23, %c0_24, %c0_25], %78 {strides = array<i32>} : memref<1x64x256xf32, #tpu.memory_space<vmem>>, vector<1x64x256xf32>,
    %80 = arith.addf %78, %0 : vector<1x64x256xf32>
    %c0_26 = arith.constant 0 : index
    %c0_27 = arith.constant 0 : index
    %c0_28 = arith.constant 0 : index
    %81 = vector.load %arg4[%c0_26, %c0_27, %c0_28] : memref<1x64x256xf32, #tpu.memory_space<vmem>>, vector<1x64x256xf32>
    tpu.vector_store %arg4[%c0_26, %c0_27, %c0_28], %80 {strides = array<i32>} : memref<1x64x256xf32, #tpu.memory_space<vmem>>, vector<1x64x256xf32>,
    return
  }
  func.func @transform_0(%arg0: i32) -> (i32, i32, i32) {
    %c0_i32 = arith.constant 0 : i32
    %c0_i32_0 = arith.constant 0 : i32
    %c0_i32_1 = arith.constant 0 : i32
    return %arg0, %c0_i32, %c0_i32_0 : i32, i32, i32
  }
  func.func @transform_1(%arg0: i32) -> (i32, i32) {
    %c0_i32 = arith.constant 0 : i32
    %c0_i32_0 = arith.constant 0 : i32
    %c0_i32_1 = arith.constant 0 : i32
    return %c0_i32, %c0_i32_0 : i32, i32
  }
  func.func @transform_2(%arg0: i32) -> (i32, i32, i32) {
    %c0_i32 = arith.constant 0 : i32
    %c0_i32_0 = arith.constant 0 : i32
    %c0_i32_1 = arith.constant 0 : i32
    return %arg0, %c0_i32, %c0_i32_0 : i32, i32, i32
  }
  func.func @transform_3(%arg0: i32) -> (i32, i32, i32) {
    %c0_i32 = arith.constant 0 : i32
    %c0_i32_0 = arith.constant 0 : i32
    %c0_i32_1 = arith.constant 0 : i32
    return %arg0, %c0_i32, %c0_i32_0 : i32, i32, i32
  }
}

</mosaic_0001>

<bundles_post_ra>
// kernel: encoder_forward.2
= control target key start
LH: loop header
LB: loop body
LE: loop exit
PB: predicated region body
PF: predicated region fallthrough
CT: control target
= control target key end

     0   :  { %9 = vsyncpa [#allocation3], 0  ;;  %s2865_s0 = inlined_call_operand.hbm [shape: f32[2,64,256], index: 0, kind: input, shape index: {}]   ;;  %s2866_s1 = inlined_call_operand.vmem [shape: f32[64,64], index: 1, kind: input, shape index: {}]   ;;  %s2867_s2 = inlined_call_operand.hbm [shape: f32[2,64,256], index: 2, kind: output, shape index: {0}]   ;;  %s2868_s3 = inlined_call_operand.vmem [shape: f32[2,64,256], index: 3, kind: output, shape index: {1}]  }
   0x1   :  { %11 = vsyncpa [#allocation3 + $0x1], 0 }
   0x2   :  { %12 = vsyncpa [#allocation4], 0 }
   0x3   :  { %14 = vsyncpa [#allocation4 + $0x1], 0  ;;  %s2139_s12 = smov 0   ;;  %s2141_s13 = smov 0  }
   0x4   :  { %s2143_s14 = smov 0   ;;  %s2145_s15 = smov 0  }
   0x5 LB: > { %s2160_s16 = sadd.s32 4294967295, %s2110_s15   ;;  %s1564_s17 = sadd.s32 4294967294, %s2110_s15   ;;  %s2110_s15 = sphi %s2145_s15, %s2883_s15   ;;  %s2106_s14 = sphi %s2143_s14, %s2882_s14   ;;  %s2102_s13 = sphi %s2141_s13, %s2881_s13   ;;  %s2098_s12 = sphi %s2139_s12, %s2880_s12  }
   0x6   : > { %s2164_s18 = sadd.s32 1, %s2110_s15   ;;  %s27_s19 = sadd.s32 1, %s2106_s14 }
   0x7   : > { %s24_s20 = ssub.s32 %s2110_s15, %s2164_s18  ;;  %p34_p0 = scmp.ne.s32.totalorder %s2106_s14, %s2102_s13 }
   0x8   : > { %p25_p1 = scmp.eq.s32.totalorder %s24_s20, 0  ;;  %p35_p2 = scmp.eq.s32.totalorder %s2110_s15, 0 }
   0x9   : > { %p40_p3 = scmp.ne.s32.totalorder %s2102_s13, %s2098_s12  ;;  %p41_p4 = scmp.eq.s32.totalorder %s2160_s16, 0 }
   0xa   : > { %s2176_s21 = scalar_select %p25_p1, %s2106_s14, %s27_s19  }
   0xb   : > { %p2178_p5 = por %p35_p2, %p34_p0  ;;  %p2182_p6 = por %p41_p4, %p40_p3 }
   0xc   : > { %p85_p7 = scmp.eq.s32.totalorder %s2160_s16, 1  ;;  %p91_p8 = scmp.eq.s32.totalorder %s1564_s17, 1 }
   0xd   : > { %s2872_s23 = scalar_select %p2182_p6, 1, 0 }
   0xe   : > { %p1835_p10 = scmp.lt.s32.totalorder %s2110_s15, 2  ;;  %p2189_p11 = por %p85_p7, %p34_p0 }
   0xf   : > { %p2193_p12 = por %p91_p8, %p40_p3  ;;  %s140_s26 = sand.u32 1, %s2106_s14  }
  0x10   : > { %s2873_s24 = scalar_select %p2189_p11, 1, 0 }
  0x11   : > { %s2874_s25 = scalar_select %p2193_p12, 1, 0 }
  0x12   : > { %s1612_s27 = sshll.u32 %s2110_s15, 11  ;;  %s1567_s28 = sshll.u32 %s140_s26, 7 }
  0x13   : > { %s2202_s4 = scalar_lea.hbm %s2865_s0, %s1612_s27  ;;  %s144_s5 = scalar_lea.vmem [#allocation2], %s1567_s28 }
  0x14   : > { %s151_s6 = sshll.u32 %s144_s5, 4  ;;  %p2206_p13 = pnand %p1835_p10, %p2178_p5  ;;  %s2210_s6 = int_to_ptr.vmem [resolvable:$true] %s151_s6 }
  0x15   : > { %s2212_s8 = scalar_lea.sflag [#allocation3], %s140_s26  ;;  %s2018_s9 = scalar_lea.hbm %s2202_s4, 2048 }
  0x16   : > { %p2019_p0 = scmp.ne.s32.totalorder %s2202_s4, %s2018_s9  ;;  %p2020_p1 = pneg %p2206_p13 }
  0x17   : > { %s2023_s17 = scalar_lea.hbm %s2865_s0, 4096  ;;  %p2024_p4 = scmp.lt.s32.totalorder %s2202_s4, %s2865_s0 }
  0x18   : > { %p2021_p2 = pnand %p2020_p1, %p2019_p0  ;;  %p2025_p5 = scmp.lt.s32.totalorder %s2023_s17, %s2018_s9 }
  0x1a   : > { %p2022_p3 = pneg %p2021_p2  ;;  %p2026_p7 = por %p2025_p5, %p2024_p4 }
  0x1c   : > { %p2027_p8 = pnand %p2026_p7, %p2022_p3 }
  0x1e   : > { %2030 = shalt.err (!%p2027_p8)
}
  0x1f   : > { %s2031_s22 = scalar_lea.vmem %s2210_s6, 2048  ;;  %s2112_s26 = smov [#allocation2]  }
  0x20   : > { %p2032_p10 = scmp.ne.s32.totalorder %s2210_s6, %s2031_s22  ;;  %s2036_s27 = sshll.u32 %s2112_s26, 4  ;;  %s2037_s27 = int_to_ptr.vmem [resolvable:$false] %s2036_s27 }
  0x21   : > { %s2038_s28 = scalar_lea.vmem %s2037_s27, 4096  ;;  %p2039_p2 = scmp.lt.s32.totalorder %s2210_s6, %s2037_s27 }
  0x22   : > { %p2034_p9 = pnand %p2032_p10, %p2020_p1  ;;  %p2040_p12 = scmp.lt.s32.totalorder %s2038_s28, %s2031_s22 }
  0x24   : > { %p2035_p0 = pneg %p2034_p9  ;;  %p2041_p11 = por %p2040_p12, %p2039_p2 }
  0x26   : > { %p2042_p6 = pnand %p2041_p11, %p2035_p0 }
  0x28   : > { %2045 = shalt.err (!%p2042_p6)
}
  0x29   : > { %s2113_s29 = smov 256   ;;  %s2114_s30 = smov 16  }
  0x2a   : > { %1830 = dma.hbm_to_vmem [thread:$0]  (!%p2206_p13), %s2202_s4, 2048, %s2210_s6, %s2212_s8, %s2113_s29, %s2113_s29, %s2114_s30  }
  0x2b   : > { %p1570_p9 = scmp.ge.s32.totalorder %s2110_s15, 1  ;;  %p159_p1 = scmp.lt.s32.totalorder %s2110_s15, 3 }
  0x2d   : > { %p160_p3 = pnand %p1570_p9, %p159_p1 }
  0x2e   : > { %s2236_s5 = sand.u32 (!%p160_p3), 1, %s2102_s13   ;;  %p2876_p6 = scmp.ne.s32.totalorder (!%p160_p3), %s2872_s23, 0 }
  0x2f   : > { %163 = sbr.rel (%p160_p3) target bundleno = 2689 (0xa81), region = 28  ;;  %s1571_s9 = sshll.u32 (!%p160_p3), %s2236_s5, 7 }
  0x30   : > { %s166_s10 = scalar_lea.sflag (!%p160_p3), [#allocation3], %s2236_s5  ;;  %s2242_s11 = scalar_lea.vmem (!%p160_p3), [#allocation2], %s1571_s9 }
  0x34   : > { %2089 = dma.done.wait (%p2876_p6), %s166_s10, 2048  }
  0x35   : > { %2091 = vsyncadd (%p2876_p6), %s166_s10, 4294965248  ;;  %v215_v0 = vld [vmem:[%s2242_s11 + $0x60] sm:$0xff]  ;;  %v217_v1 = vld [vmem:[%s2242_s11 + $0x70] sm:$0xff]  ;;  %vm231_vm0 = vcmask 523264   ;;  %s2115_s4 = smov 64   ;;  %p197_p11 = scmp.lt.s32.totalorder %s2160_s16, 1 }
  0x36   : > { %v211_v2 = vld [vmem:[%s2242_s11 + $0x40] sm:$0xff]  ;;  %v2251_v3 = vpack.c.bf16 %v217_v1, %v215_v0  ;;  %v213_v4 = vld [vmem:[%s2242_s11 + $0x50] sm:$0xff]  ;;  %v2310_v24 = vld [vmem:[%s2866_s1 + $0x18] sm:$0xff]  ;;  %s2718_s26 = scalar_lea.vmem [#allocation5], %s1571_s9  ;;  %s1614_s9 = sshll.u32 %s2160_s16, 11 }
  0x37   : > { %v2254_v5 = vpack.c.bf16 %v213_v4, %v211_v2  ;;  %v203_v6 = vld [vmem:[%s2242_s11] sm:$0xff]  ;;  %v205_v7 = vld [vmem:[%s2242_s11 + $0x10] sm:$0xff]  ;;  %v2317_v29 = vld [vmem:[%s2866_s1 + $0x8] sm:$0xff]  ;;  %s198_s8 = scalar_select %p197_p11, %s2160_s16, 1 }
  0x38   : > { %1807 = vmatprep.subr.msk.bf16.mxu0 %vm231_vm0, %v2251_v3  ;;  %v242_v8 = vsel %vm231_vm0, %v2251_v3, 0  ;;  %v2262_v9 = vpack.c.bf16 %v205_v7, %v203_v6  ;;  %1695 = vmatprep.subr.bf16.mxu1 %v2251_v3  ;;  %v207_v10 = vld [vmem:[%s2242_s11 + $0x20] sm:$0xff]  ;;  %v209_v11 = vld [vmem:[%s2242_s11 + $0x30] sm:$0xff]  ;;  %v2339_v47 = vld [vmem:[%s2866_s1 + $0x28] sm:$0xff]  ;;  %s2813_s28 = scalar_lea.hbm %s2867_s2, %s1614_s9  ;;  %s1445_s16 = scalar_lea.sflag [#allocation4], %s2236_s5 }
  0x39   : > { %1680 = vmatpush3.bf16.xpose.msra.mxu0 %v242_v8  ;;  %1696 = vmatpush3.bf16.msra.mxu1 %v2251_v3  ;;  %v2273_v12 = vpack.c.bf16 %v209_v11, %v207_v10  ;;  %v239_v13 = vsel %vm231_vm0, %v2254_v5, 0  ;;  %v2299_v17 = vld [vmem:[%s2866_s1 + $0x10] sm:$0xff]  ;;  %v2304_v20 = vld [vmem:[%s2866_s1] sm:$0xff]  ;;  %v2344_v48 = vld [vmem:[%s2866_s1 + $0x38] sm:$0xff]  ;;  %s1613_s17 = sshll.u32 %s198_s8, 7  ;;  %p2877_p13 = scmp.ne.s32.totalorder %s2873_s24, 0 }
  0x3a   : > { %1808 = vmatprep.subr.msk.bf16.mxu0 %vm231_vm0, %v2254_v5  ;;  %1687 = vmatprep.mubr.msk.bf16.mxu0 %vm231_vm0, %v2262_v9  ;;  %v233_v15 = vsel %vm231_vm0, %v2262_v9, 0  ;;  %v2326_v38 = vld [vmem:[%s2866_s1 + $0x20] sm:$0xff]  ;;  %v2331_v39 = vld [vmem:[%s2866_s1 + $0x30] sm:$0xff]  ;;  %s2712_s22 = scalar_lea.vmem %s2868_s3, %s1613_s17  ;;  %s2116_s30 = smov [#allocation5]  }
  0x3b   : > { %1697 = vmatprep.subr.bf16.mxu1 %v2254_v5  ;;  %v236_v14 = vsel %vm231_vm0, %v2273_v12, 0  ;;  %s2050_s10 = sshll.u32 %s2116_s30, 4  ;;  %s2051_s10 = int_to_ptr.vmem [resolvable:$false] %s2050_s10 }
  0x3c   : > { %s2052_s23 = scalar_lea.vmem %s2051_s10, 4096 }
  0x3d   : > { %1698 = vmatpush3.bf16.msra.mxu1 %v2254_v5 }
  0x3e   : > { %1699 = vmatprep.subr.bf16.mxu1 %v2273_v12 }
  0x41   : > { %1682 = vmatpush3.bf16.xpose.msra.mxu0 %v239_v13  ;;  %1700 = vmatpush3.bf16.msra.mxu1 %v2273_v12 }
  0x42   : > { %1809 = vmatprep.subr.msk.bf16.mxu0 %vm231_vm0, %v2273_v12  ;;  %1701 = vmatprep.subr.bf16.mxu1 %v2262_v9 }
  0x45   : > { %1702 = vmatpush3.bf16.msra.mxu1 %v2262_v9 }
  0x49   : > { %1684 = vmatpush3.bf16.xpose.msra.mxu0 %v236_v14 }
  0x4a   : > { %1810 = vmatprep.subr.msk.bf16.mxu0 %vm231_vm0, %v2262_v9 }
  0x51   : > { %1686 = vmatpush3.bf16.xpose.msra.mxu0 %v233_v15 }
  0x58   : > { %1688 = vmatmul.mubr.msk.bf16.vlgmr.msra.gmra.mxu0 %vm231_vm0, %v2273_v12 }
  0x59   : > { %1691 = vmatprep.mubr.msk.bf16.mxu0 %vm231_vm0, %v2254_v5 }
  0x60   : > { %1692 = vmatmul.mubr.msk.bf16.gmra.mxu0 %vm231_vm0, %v2251_v3 }
 0x118   : > { %v1689_v16 = vpop.f32.mrf.mxu0 }
 0x119   : > { %v311_v18 = vmul.f32 0.125, %v1689_v16 }
 0x11a   : > { %v278_v19 = vpop.f32.mrf.mxu0 }
 0x11b   : > { %v309_v21 = vmul.f32 0.125, %v278_v19  ;;  %v319_v22 = vadd.f32 %v311_v18, %v2299_v17 }
 0x11c   : > { %v1690_v23 = vpop.f32.mrf.mxu0 }
 0x11d   : > { %v312_v25 = vmul.f32 0.125, %v1690_v23  ;;  %v331_v26 = vsel %vm231_vm0, %v319_v22, -inf  ;;  %v317_v27 = vadd.f32 %v309_v21, %v2304_v20 }
 0x11e   : > { %332 = vmax.xlane.f32.xlu1 %v331_v26  ;;  %v281_v28 = vpop.f32.mrf.mxu0 }
 0x11f   : > { %v310_v30 = vmul.f32 0.125, %v281_v28  ;;  %v325_v31 = vsel %vm231_vm0, %v317_v27, -inf  ;;  %v320_v32 = vadd.f32 %v312_v25, %v2310_v24 }
 0x120   : > { %326 = vmax.xlane.f32.xlu0 %v325_v31  ;;  %v1693_v33 = vpop.f32.mrf.mxu0 }
 0x121   : > { %v315_v34 = vmul.f32 0.125, %v1693_v33  ;;  %v334_v35 = vsel %vm231_vm0, %v320_v32, -inf  ;;  %v318_v36 = vadd.f32 %v310_v30, %v2317_v29 }
 0x122   : > { %335 = vmax.xlane.f32.xlu1 %v334_v35  ;;  %v294_v37 = vpop.f32.mrf.mxu0 }
 0x123   : > { %v313_v40 = vmul.f32 0.125, %v294_v37  ;;  %v328_v41 = vsel %vm231_vm0, %v318_v36, -inf  ;;  %v323_v45 = vadd.f32 %v315_v34, %v2331_v39 }
 0x124   : > { %329 = vmax.xlane.f32.xlu0 %v328_v41  ;;  %v1694_v42 = vpop.f32.mrf.mxu0 }
 0x125   : > { %v316_v43 = vmul.f32 0.125, %v1694_v42  ;;  %v321_v44 = vadd.f32 %v313_v40, %v2326_v38  ;;  %v343_v51 = vsel %vm231_vm0, %v323_v45, -inf }
 0x126   : > { %v297_v46 = vpop.f32.mrf.mxu0 }
 0x127   : > { %v314_v49 = vmul.f32 0.125, %v297_v46  ;;  %v337_v50 = vsel %vm231_vm0, %v321_v44, -inf  ;;  %v324_v53 = vadd.f32 %v316_v43, %v2344_v48 }
 0x128   : > { %338 = vmax.xlane.f32.xlu0 %v337_v50 }
 0x129   : > { %v322_v52 = vadd.f32 %v314_v49, %v2339_v47  ;;  %v346_v55 = vsel %vm231_vm0, %v324_v53, -inf }
 0x12b   : > { %v340_v54 = vsel %vm231_vm0, %v322_v52, -inf }
 0x12c   : > { %344 = vmax.xlane.f32.xlu0 %v343_v51  ;;  %341 = vmax.xlane.f32.xlu1 %v340_v54 }
 0x130   : > { %347 = vmax.xlane.f32.xlu1 %v346_v55 }
 0x1a7   : > { %v333_v56 = vpop.xlane.xlu1 %332 }
 0x1a8   : > { %v351_v57 = vsub.f32 %v319_v22, %v333_v56 }
 0x1a9   : > { %v327_v58 = vpop.xlane.xlu0 %326 }
 0x1aa   : > { %v361_v59 = vmul.f32 1.442695, %v351_v57  ;;  %v349_v60 = vsub.f32 %v317_v27, %v327_v58 }
 0x1ab   : > { %v336_v61 = vpop.xlane.xlu1 %335 }
 0x1ac   : > { %1874 = vpow2.f32 %v361_v59  ;;  %v357_v62 = vmul.f32 1.442695, %v349_v60  ;;  %v352_v63 = vsub.f32 %v320_v32, %v336_v61 }
 0x1ad   : > { %v330_v0 = vpop.xlane.xlu0 %329 }
 0x1ae   : > { %1876 = vpow2.f32 %v357_v62  ;;  %v363_v1 = vmul.f32 1.442695, %v352_v63  ;;  %v350_v2 = vsub.f32 %v318_v36, %v330_v0 }
 0x1b0   : > { %1878 = vpow2.f32 %v363_v1  ;;  %v359_v4 = vmul.f32 1.442695, %v350_v2 }
 0x1b1   : > { %v339_v6 = vpop.xlane.xlu0 %338 }
 0x1b2   : > { %1880 = vpow2.f32 %v359_v4  ;;  %v353_v7 = vsub.f32 %v321_v44, %v339_v6 }
 0x1b4   : > { %v365_v11 = vmul.f32 1.442695, %v353_v7 }
 0x1b5   : > { %v345_v8 = vpop.xlane.xlu0 %344  ;;  %v342_v30 = vpop.xlane.xlu1 %341 }
 0x1b6   : > { %v355_v10 = vsub.f32 %v323_v45, %v345_v8  ;;  %v354_v33 = vsub.f32 %v322_v52, %v342_v30 }
 0x1b8   : > { %v369_v13 = vmul.f32 1.442695, %v355_v10  ;;  %v367_v35 = vmul.f32 1.442695, %v354_v33 }
 0x1b9   : > { %v1875_v14 = vpop.eup %1874  ;;  %v348_v31 = vpop.xlane.xlu1 %347 }
 0x1ba   : > { %1882 = vpow2.f32 %v369_v13  ;;  %v379_v15 = vsel %vm231_vm0, %v1875_v14, 0.0  ;;  %v356_v32 = vsub.f32 %v324_v53, %v348_v31 }
 0x1bb   : > { %v1877_v16 = vpop.eup %1876  ;;  %380 = vadd.xlane.f32.xlu0 %v379_v15  ;;  %1884 = vpow2.f32 %v365_v11 }
 0x1bc   : > { %v373_v19 = vsel %vm231_vm0, %v1877_v16, 0.0  ;;  %v371_v34 = vmul.f32 1.442695, %v356_v32 }
 0x1bd   : > { %v1879_v18 = vpop.eup %1878 }
 0x1be   : > { %v382_v21 = vsel %vm231_vm0, %v1879_v18, 0.0  ;;  %1886 = vpow2.f32 %v371_v34 }
 0x1bf   : > { %v1881_v22 = vpop.eup %1880  ;;  %374 = vadd.xlane.f32.xlu0 %v373_v19  ;;  %383 = vadd.xlane.f32.xlu1 %v382_v21  ;;  %1888 = vpow2.f32 %v367_v35 }
 0x1c0   : > { %v376_v23 = vsel %vm231_vm0, %v1881_v22, 0.0 }
 0x1c3   : > { %377 = vadd.xlane.f32.xlu1 %v376_v23 }
 0x1c7   : > { %v2356_v25 = vpop.eup %1882 }
 0x1c8   : > { %v391_v26 = vsel %vm231_vm0, %v2356_v25, 0.0  ;;  %v2360_v27 = vpop.eup %1884 }
 0x1c9   : > { %392 = vadd.xlane.f32.xlu0 %v391_v26  ;;  %v385_v28 = vsel %vm231_vm0, %v2360_v27, 0.0 }
 0x1cb   : > { %v2370_v36 = vpop.eup %1886 }
 0x1cc   : > { %v394_v37 = vsel %vm231_vm0, %v2370_v36, 0.0 }
 0x1cd   : > { %386 = vadd.xlane.f32.xlu0 %v385_v28 }
 0x1d4   : > { %502 = vrot.lane.b32.xlu1 %v2254_v5, %s2115_s4  ;;  %v2374_v5 = vpop.eup %1888 }
 0x1d8   : > { %500 = vrot.lane.b32.xlu1 %v2273_v12, %s2115_s4  ;;  %v388_v12 = vsel %vm231_vm0, %v2374_v5, 0.0 }
 0x1e3   : > { %504 = vrot.lane.b32.xlu0 %v2251_v3, %s2115_s4 }
 0x1fc   : > { %395 = vadd.xlane.f32.xlu1 %v394_v37 }
 0x200   : > { %389 = vadd.xlane.f32.xlu1 %v388_v12 }
 0x211   : > { %498 = vrot.lane.b32.xlu1 %v2262_v9, %s2115_s4 }
 0x244   : > { %v381_v3 = vpop.xlane.xlu0 %380 }
 0x248   : > { %v375_v40 = vpop.xlane.xlu0 %374  ;;  %v384_v41 = vpop.xlane.xlu1 %383 }
 0x249   : > { %1890 = vrcp.f32 %v384_v41 }
 0x24a   : > { %1892 = vrcp.f32 %v375_v40 }
 0x24b   : > { %1894 = vrcp.f32 %v381_v3 }
 0x24c   : > { %v378_v42 = vpop.xlane.xlu1 %377 }
 0x24d   : > { %1896 = vrcp.f32 %v378_v42 }
 0x250   : > { %v503_v51 = vpop.permute.xlu1 %502 }
 0x251   : > { %v513_v60 = vsel %vm231_vm0, %v503_v51, 0 }
 0x252   : > { %v393_v43 = vpop.xlane.xlu0 %392 }
 0x254   : > { %v501_v59 = vpop.permute.xlu1 %500 }
 0x255   : > { %v510_v61 = vsel %vm231_vm0, %v501_v59, 0 }
 0x256   : > { %v387_v44 = vpop.xlane.xlu0 %386  ;;  %v1891_v45 = vpop.eup %1890 }
 0x257   : > { %v1893_v46 = vpop.eup %1892  ;;  %v408_v53 = vmul.f32 %v1891_v45, %v1879_v18 }
 0x258   : > { %v1895_v49 = vpop.eup %1894  ;;  %v405_v54 = vmul.f32 %v1893_v46, %v1877_v16 }
 0x259   : > { %v407_v55 = vmul.f32 %v1895_v49, %v1875_v14 }
 0x25a   : > { %v1897_v50 = vpop.eup %1896  ;;  %v505_v52 = vpop.permute.xlu0 %504 }
 0x25b   : > { %1727 = vmatprep.subr.bf16.mxu0 %v505_v52  ;;  %v406_v9 = vmul.f32 %v1897_v50, %v1881_v22  ;;  %1811 = vmatprep.subr.msk.bf16.mxu1 %vm231_vm0, %v505_v52  ;;  %v414_v57 = vpack.c.bf16 %v408_v53, %v407_v55  ;;  %v516_v58 = vsel %vm231_vm0, %v505_v52, 0 }
 0x25c   : > { %1728 = vmatpush3.bf16.msra.mxu0 %v505_v52 }
 0x25d   : > { %1729 = vmatprep.subr.bf16.mxu0 %v503_v51  ;;  %v413_v56 = vpack.c.bf16 %v406_v9, %v405_v54 }
 0x25f   : > { %1703 = vmatprep.mubr.msk.bf16.mxu1 %vm231_vm0, %v413_v56 }
 0x260   : > { %1704 = vmatmul.mubr.msk.bf16.vlgmr.msra.gmra.mxu1 %vm231_vm0, %v414_v57  ;;  %1730 = vmatpush3.bf16.msra.mxu0 %v503_v51 }
 0x261   : > { %1712 = vmatpush3.bf16.xpose.msra.mxu1 %v516_v58  ;;  %1731 = vmatprep.subr.bf16.mxu0 %v501_v59 }
 0x262   : > { %1812 = vmatprep.subr.msk.bf16.mxu1 %vm231_vm0, %v503_v51 }
 0x264   : > { %1732 = vmatpush3.bf16.msra.mxu0 %v501_v59 }
 0x269   : > { %1714 = vmatpush3.bf16.xpose.msra.mxu1 %v513_v60 }
 0x26a   : > { %1813 = vmatprep.subr.msk.bf16.mxu1 %vm231_vm0, %v501_v59 }
 0x271   : > { %1716 = vmatpush3.bf16.xpose.msra.mxu1 %v510_v61 }
 0x285   : > { %v396_v62 = vpop.xlane.xlu1 %395 }
 0x286   : > { %1898 = vrcp.f32 %v396_v62 }
 0x287   : > { %1900 = vrcp.f32 %v387_v44 }
 0x288   : > { %1902 = vrcp.f32 %v393_v43 }
 0x289   : > { %v390_v63 = vpop.xlane.xlu1 %389 }
 0x28a   : > { %1904 = vrcp.f32 %v390_v63 }
 0x28d   : > { %v499_v0 = vpop.permute.xlu1 %498 }
 0x28e   : > { %1733 = vmatprep.subr.bf16.mxu0 %v499_v0  ;;  %1814 = vmatprep.subr.msk.bf16.mxu1 %vm231_vm0, %v499_v0  ;;  %v507_v1 = vsel %vm231_vm0, %v499_v0, 0 }
 0x28f   : > { %1734 = vmatpush3.bf16.msra.mxu0 %v499_v0  ;;  %1718 = vmatpush3.bf16.xpose.msra.mxu1 %v507_v1 }
 0x293   : > { %v1899_v2 = vpop.eup %1898 }
 0x294   : > { %v1901_v4 = vpop.eup %1900  ;;  %v412_v8 = vmul.f32 %v1899_v2, %v2370_v36 }
 0x295   : > { %v1903_v6 = vpop.eup %1902  ;;  %v409_v10 = vmul.f32 %v1901_v4, %v2360_v27 }
 0x296   : > { %v411_v13 = vmul.f32 %v1903_v6, %v2356_v25 }
 0x297   : > { %v1905_v7 = vpop.eup %1904 }
 0x298   : > { %v410_v11 = vmul.f32 %v1905_v7, %v2374_v5  ;;  %v416_v15 = vpack.c.bf16 %v412_v8, %v411_v13 }
 0x29a   : > { %v415_v14 = vpack.c.bf16 %v410_v11, %v409_v10 }
 0x29c   : > { %1707 = vmatprep.mubr.msk.bf16.mxu1 %vm231_vm0, %v415_v14 }
 0x29d   : > { %1708 = vmatmul.mubr.msk.bf16.gmra.mxu1 %vm231_vm0, %v416_v15 }
 0x29e   : > { %1719 = vmatprep.mubr.msk.bf16.mxu1 %vm231_vm0, %v499_v0 }
 0x2a5   : > { %1720 = vmatmul.mubr.msk.bf16.vlgmr.msra.gmra.mxu1 %vm231_vm0, %v501_v59 }
 0x2a6   : > { %1723 = vmatprep.mubr.msk.bf16.mxu1 %vm231_vm0, %v503_v51 }
 0x2ad   : > { %1724 = vmatmul.mubr.msk.bf16.gmra.mxu1 %vm231_vm0, %v505_v52 }
 0x320   : > { %v2400_v16 = vpop.f32.mrf.mxu1 }
 0x322   : > { %v2402_v18 = vpop.f32.mrf.mxu1 }
 0x324   : > { %v2404_v19 = vpop.f32.mrf.mxu1 }
 0x326   : > { %v2406_v21 = vpop.f32.mrf.mxu1 }
 0x35d   : > { %v2408_v22 = vpop.f32.mrf.mxu1 }
 0x35f   : > { %v2410_v23 = vpop.f32.mrf.mxu1 }
 0x361   : > { %v2412_v25 = vpop.f32.mrf.mxu1 }
 0x363   : > { %v2414_v26 = vpop.f32.mrf.mxu1 }
 0x365   : > { %v1721_v27 = vpop.f32.mrf.mxu1 }
 0x366   : > { %v585_v30 = vmul.f32 0.125, %v1721_v27 }
 0x367   : > { %v552_v28 = vpop.f32.mrf.mxu1 }
 0x368   : > { %v583_v31 = vmul.f32 0.125, %v552_v28  ;;  %v593_v5 = vadd.f32 %v585_v30, %v2299_v17 }
 0x369   : > { %v1722_v32 = vpop.f32.mrf.mxu1 }
 0x36a   : > { %v591_v33 = vadd.f32 %v583_v31, %v2304_v20  ;;  %v586_v35 = vmul.f32 0.125, %v1722_v32  ;;  %v605_v42 = vsel %vm231_vm0, %v593_v5, -inf }
 0x36b   : > { %v555_v34 = vpop.f32.mrf.mxu1 }
 0x36c   : > { %v584_v36 = vmul.f32 0.125, %v555_v34  ;;  %v599_v37 = vsel %vm231_vm0, %v591_v33, -inf  ;;  %v594_v44 = vadd.f32 %v586_v35, %v2310_v24 }
 0x36d   : > { %600 = vmax.xlane.f32.xlu0 %v599_v37  ;;  %v1725_v12 = vpop.f32.mrf.mxu1 }
 0x36e   : > { %v592_v3 = vadd.f32 %v584_v36, %v2317_v29  ;;  %v589_v46 = vmul.f32 0.125, %v1725_v12  ;;  %v608_v52 = vsel %vm231_vm0, %v594_v44, -inf }
 0x36f   : > { %v568_v40 = vpop.f32.mrf.mxu1 }
 0x370   : > { %v587_v41 = vmul.f32 0.125, %v568_v40  ;;  %v602_v43 = vsel %vm231_vm0, %v592_v3, -inf  ;;  %v597_v56 = vadd.f32 %v589_v46, %v2331_v39 }
 0x371   : > { %606 = vmax.xlane.f32.xlu0 %v605_v42  ;;  %603 = vmax.xlane.f32.xlu1 %v602_v43  ;;  %v1726_v45 = vpop.f32.mrf.mxu1 }
 0x372   : > { %v590_v50 = vmul.f32 0.125, %v1726_v45  ;;  %v595_v53 = vadd.f32 %v587_v41, %v2326_v38  ;;  %v617_v58 = vsel %vm231_vm0, %v597_v56, -inf }
 0x373   : > { %v571_v49 = vpop.f32.mrf.mxu1 }
 0x374   : > { %v588_v51 = vmul.f32 0.125, %v571_v49  ;;  %v611_v9 = vsel %vm231_vm0, %v595_v53, -inf  ;;  %v598_v57 = vadd.f32 %v590_v50, %v2344_v48 }
 0x375   : > { %609 = vmax.xlane.f32.xlu0 %v608_v52 }
 0x376   : > { %v596_v54 = vadd.f32 %v588_v51, %v2339_v47  ;;  %v620_v59 = vsel %vm231_vm0, %v598_v57, -inf }
 0x378   : > { %v614_v55 = vsel %vm231_vm0, %v596_v54, -inf }
 0x379   : > { %612 = vmax.xlane.f32.xlu0 %v611_v9  ;;  %615 = vmax.xlane.f32.xlu1 %v614_v55  ;;  %v2473_v55 = vld [vmem:[%s2242_s11 + $0x48] sm:$0xff] }
 0x37d   : > { %618 = vmax.xlane.f32.xlu0 %v617_v58  ;;  %621 = vmax.xlane.f32.xlu1 %v620_v59  ;;  %v2485_v58 = vld [vmem:[%s2242_s11 + $0x28] sm:$0xff]  ;;  %v2488_v59 = vld [vmem:[%s2242_s11 + $0x38] sm:$0xff] }
 0x3f6   : > { %v601_v60 = vpop.xlane.xlu0 %600 }
 0x3f7   : > { %v623_v61 = vsub.f32 %v591_v33, %v601_v60  ;;  %v2492_v60 = vpack.c.bf16 %v2488_v59, %v2485_v58 }
 0x3f9   : > { %v631_v62 = vmul.f32 1.442695, %v623_v61  ;;  %v2497_v61 = vld [vmem:[%s2242_s11 + $0x8] sm:$0xff] }
 0x3fa   : > { %v607_v63 = vpop.xlane.xlu0 %606  ;;  %v604_v0 = vpop.xlane.xlu1 %603 }
 0x3fb   : > { %1906 = vpow2.f32 %v631_v62  ;;  %v625_v1 = vsub.f32 %v593_v5, %v607_v63  ;;  %v624_v2 = vsub.f32 %v592_v3, %v604_v0  ;;  %v2500_v62 = vld [vmem:[%s2242_s11 + $0x18] sm:$0xff] }
 0x3fc   : > { %v2504_v63 = vpack.c.bf16 %v2500_v62, %v2497_v61 }
 0x3fd   : > { %v635_v4 = vmul.f32 1.442695, %v625_v1  ;;  %v633_v6 = vmul.f32 1.442695, %v624_v2 }
 0x3fe   : > { %v610_v7 = vpop.xlane.xlu0 %609 }
 0x3ff   : > { %1908 = vpow2.f32 %v635_v4  ;;  %v626_v8 = vsub.f32 %v594_v44, %v610_v7 }
 0x400   : > { %1910 = vpow2.f32 %v633_v6 }
 0x401   : > { %v637_v10 = vmul.f32 1.442695, %v626_v8 }
 0x402   : > { %v613_v11 = vpop.xlane.xlu0 %612  ;;  %v616_v13 = vpop.xlane.xlu1 %615 }
 0x403   : > { %1912 = vpow2.f32 %v637_v10  ;;  %v627_v14 = vsub.f32 %v595_v53, %v613_v11  ;;  %v628_v15 = vsub.f32 %v596_v54, %v616_v13  ;;  %v2459_v53 = vld [vmem:[%s2242_s11 + $0x68] sm:$0xff]  ;;  %v2462_v54 = vld [vmem:[%s2242_s11 + $0x78] sm:$0xff] }
 0x404   : > { %v2466_v9 = vpack.c.bf16 %v2462_v54, %v2459_v53 }
 0x405   : > { %v639_v27 = vmul.f32 1.442695, %v627_v14  ;;  %v641_v28 = vmul.f32 1.442695, %v628_v15 }
 0x406   : > { %v619_v30 = vpop.xlane.xlu0 %618  ;;  %v622_v31 = vpop.xlane.xlu1 %621  ;;  %1815 = vmatprep.subr.msk.bf16.mxu0 %vm231_vm0, %v2466_v9  ;;  %1759 = vmatprep.subr.bf16.mxu1 %v2466_v9 }
 0x407   : > { %1914 = vpow2.f32 %v639_v27  ;;  %v629_v32 = vsub.f32 %v597_v56, %v619_v30  ;;  %v630_v33 = vsub.f32 %v598_v57, %v622_v31  ;;  %1760 = vmatpush3.bf16.msra.mxu1 %v2466_v9  ;;  %v2476_v56 = vld [vmem:[%s2242_s11 + $0x58] sm:$0xff] }
 0x408   : > { %v2432_v34 = vpop.eup %1906  ;;  %1916 = vpow2.f32 %v641_v28  ;;  %v2480_v57 = vpack.c.bf16 %v2476_v56, %v2473_v55 }
 0x409   : > { %v643_v35 = vmul.f32 1.442695, %v629_v32  ;;  %v645_v36 = vmul.f32 1.442695, %v630_v33  ;;  %v647_v37 = vsel %vm231_vm0, %v2432_v34, 0.0 }
 0x40a   : > { %648 = vadd.xlane.f32.xlu0 %v647_v37  ;;  %1761 = vmatprep.subr.bf16.mxu1 %v2480_v57 }
 0x40b   : > { %1918 = vpow2.f32 %v643_v35  ;;  %1762 = vmatpush3.bf16.msra.mxu1 %v2480_v57 }
 0x40c   : > { %v2436_v5 = vpop.eup %1908  ;;  %1920 = vpow2.f32 %v645_v36  ;;  %1763 = vmatprep.subr.bf16.mxu1 %v2492_v60  ;;  %v786_v36 = vsel %vm231_vm0, %v2466_v9, 0 }
 0x40d   : > { %v1911_v12 = vpop.eup %1910  ;;  %v653_v3 = vsel %vm231_vm0, %v2436_v5, 0.0 }
 0x40e   : > { %654 = vadd.xlane.f32.xlu0 %v653_v3  ;;  %v650_v40 = vsel %vm231_vm0, %v1911_v12, 0.0 }
 0x40f   : > { %651 = vadd.xlane.f32.xlu1 %v650_v40  ;;  %1764 = vmatpush3.bf16.msra.mxu1 %v2492_v60 }
 0x410   : > { %v1913_v41 = vpop.eup %1912  ;;  %1765 = vmatprep.subr.bf16.mxu1 %v2504_v63 }
 0x411   : > { %v656_v42 = vsel %vm231_vm0, %v1913_v41, 0.0 }
 0x413   : > { %657 = vadd.xlane.f32.xlu1 %v656_v42  ;;  %1766 = vmatpush3.bf16.msra.mxu1 %v2504_v63 }
 0x414   : > { %v2442_v43 = vpop.eup %1914 }
 0x415   : > { %v2444_v44 = vpop.eup %1916  ;;  %v659_v45 = vsel %vm231_vm0, %v2442_v43, 0.0 }
 0x416   : > { %660 = vadd.xlane.f32.xlu0 %v659_v45  ;;  %v662_v46 = vsel %vm231_vm0, %v2444_v44, 0.0 }
 0x417   : > { %663 = vadd.xlane.f32.xlu1 %v662_v46  ;;  %v777_v46 = vsel %vm231_vm0, %v2504_v63, 0 }
 0x418   : > { %v2450_v49 = vpop.eup %1918 }
 0x419   : > { %v2452_v50 = vpop.eup %1920  ;;  %v665_v51 = vsel %vm231_vm0, %v2450_v49, 0.0 }
 0x41a   : > { %666 = vadd.xlane.f32.xlu0 %v665_v51  ;;  %v668_v52 = vsel %vm231_vm0, %v2452_v50, 0.0 }
 0x41b   : > { %669 = vadd.xlane.f32.xlu1 %v668_v52 }
 0x493   : > { %v649_v0 = vpop.xlane.xlu0 %648 }
 0x494   : > { %1922 = vrcp.f32 %v649_v0 }
 0x497   : > { %v655_v1 = vpop.xlane.xlu0 %654 }
 0x498   : > { %v652_v2 = vpop.xlane.xlu1 %651 }
 0x499   : > { %1924 = vrcp.f32 %v652_v2 }
 0x49a   : > { %1926 = vrcp.f32 %v655_v1 }
 0x49c   : > { %v658_v4 = vpop.xlane.xlu1 %657 }
 0x49d   : > { %1928 = vrcp.f32 %v658_v4 }
 0x49f   : > { %v661_v6 = vpop.xlane.xlu0 %660 }
 0x4a0   : > { %1930 = vrcp.f32 %v661_v6  ;;  %v664_v7 = vpop.xlane.xlu1 %663 }
 0x4a1   : > { %1932 = vrcp.f32 %v664_v7  ;;  %v1923_v10 = vpop.eup %1922 }
 0x4a2   : > { %v679_v14 = vmul.f32 %v1923_v10, %v2432_v34 }
 0x4a3   : > { %v667_v8 = vpop.xlane.xlu0 %666 }
 0x4a4   : > { %1934 = vrcp.f32 %v667_v8  ;;  %v670_v11 = vpop.xlane.xlu1 %669 }
 0x4a5   : > { %1936 = vrcp.f32 %v670_v11 }
 0x4a6   : > { %v1925_v13 = vpop.eup %1924 }
 0x4a7   : > { %v680_v15 = vmul.f32 %v1925_v13, %v1911_v12  ;;  %v1927_v27 = vpop.eup %1926 }
 0x4a8   : > { %v681_v31 = vmul.f32 %v1927_v27, %v2436_v5 }
 0x4a9   : > { %v687_v28 = vpack.c.bf16 %v680_v15, %v679_v14 }
 0x4aa   : > { %v1929_v30 = vpop.eup %1928 }
 0x4ab   : > { %v682_v32 = vmul.f32 %v1929_v30, %v1913_v41  ;;  %1735 = vmatprep.mubr.msk.bf16.mxu0 %vm231_vm0, %v687_v28 }
 0x4ad   : > { %v1931_v33 = vpop.eup %1930  ;;  %v688_v35 = vpack.c.bf16 %v682_v32, %v681_v31 }
 0x4ae   : > { %v1933_v37 = vpop.eup %1932  ;;  %v683_v3 = vmul.f32 %v1931_v33, %v2442_v43  ;;  %v783_v43 = vsel %vm231_vm0, %v2480_v57, 0 }
 0x4af   : > { %1736 = vmatmul.mubr.msk.bf16.vlgmr.msra.gmra.mxu0 %vm231_vm0, %v688_v35  ;;  %v684_v34 = vmul.f32 %v1933_v37, %v2444_v44  ;;  %v780_v44 = vsel %vm231_vm0, %v2492_v60, 0 }
 0x4b0   : > { %1744 = vmatpush3.bf16.xpose.msra.mxu0 %v786_v36 }
 0x4b1   : > { %v1935_v12 = vpop.eup %1934  ;;  %v689_v40 = vpack.c.bf16 %v684_v34, %v683_v3  ;;  %1816 = vmatprep.subr.msk.bf16.mxu0 %vm231_vm0, %v2480_v57 }
 0x4b2   : > { %v1937_v5 = vpop.eup %1936  ;;  %v685_v41 = vmul.f32 %v1935_v12, %v2450_v49 }
 0x4b3   : > { %1739 = vmatprep.mubr.msk.bf16.mxu0 %vm231_vm0, %v689_v40  ;;  %v686_v42 = vmul.f32 %v1937_v5, %v2452_v50 }
 0x4b5   : > { %v690_v45 = vpack.c.bf16 %v686_v42, %v685_v41 }
 0x4b7   : > { %1740 = vmatmul.mubr.msk.bf16.gmra.mxu0 %vm231_vm0, %v690_v45 }
 0x4b8   : > { %1746 = vmatpush3.bf16.xpose.msra.mxu0 %v783_v43  ;;  %1751 = vmatprep.mubr.msk.bf16.mxu0 %vm231_vm0, %v2504_v63 }
 0x4b9   : > { %1817 = vmatprep.subr.msk.bf16.mxu0 %vm231_vm0, %v2492_v60 }
 0x4c0   : > { %1748 = vmatpush3.bf16.xpose.msra.mxu0 %v780_v44 }
 0x4c1   : > { %1818 = vmatprep.subr.msk.bf16.mxu0 %vm231_vm0, %v2504_v63 }
 0x4c8   : > { %1750 = vmatpush3.bf16.xpose.msra.mxu0 %v777_v46 }
 0x4cf   : > { %1752 = vmatmul.mubr.msk.bf16.vlgmr.msra.gmra.mxu0 %vm231_vm0, %v2492_v60 }
 0x4d0   : > { %1755 = vmatprep.mubr.msk.bf16.mxu0 %vm231_vm0, %v2480_v57 }
 0x4d7   : > { %1756 = vmatmul.mubr.msk.bf16.gmra.mxu0 %vm231_vm0, %v2466_v9 }
 0x56f   : > { %v2540_v49 = vpop.f32.mrf.mxu0 }
 0x571   : > { %v2542_v50 = vpop.f32.mrf.mxu0 }
 0x573   : > { %v2544_v51 = vpop.f32.mrf.mxu0 }
 0x575   : > { %v2546_v52 = vpop.f32.mrf.mxu0 }
 0x577   : > { %v2548_v0 = vpop.f32.mrf.mxu0 }
 0x579   : > { %v2550_v1 = vpop.f32.mrf.mxu0 }
 0x57b   : > { %v2552_v2 = vpop.f32.mrf.mxu0 }
 0x57d   : > { %v2554_v4 = vpop.f32.mrf.mxu0 }
 0x58f   : > { %v1753_v6 = vpop.f32.mrf.mxu0 }
 0x590   : > { %v855_v8 = vmul.f32 0.125, %v1753_v6 }
 0x591   : > { %v822_v7 = vpop.f32.mrf.mxu0 }
 0x592   : > { %v853_v10 = vmul.f32 0.125, %v822_v7  ;;  %v863_v30 = vadd.f32 %v855_v8, %v2299_v17 }
 0x593   : > { %v1754_v11 = vpop.f32.mrf.mxu0 }
 0x594   : > { %v861_v13 = vadd.f32 %v853_v10, %v2304_v20  ;;  %v856_v15 = vmul.f32 0.125, %v1754_v11  ;;  %v875_v37 = vsel %vm231_vm0, %v863_v30, -inf }
 0x595   : > { %v825_v14 = vpop.f32.mrf.mxu0 }
 0x596   : > { %v854_v27 = vmul.f32 0.125, %v825_v14  ;;  %v869_v28 = vsel %vm231_vm0, %v861_v13, -inf  ;;  %v864_v20 = vadd.f32 %v856_v15, %v2310_v24 }
 0x597   : > { %870 = vmax.xlane.f32.xlu0 %v869_v28  ;;  %v1757_v31 = vpop.f32.mrf.mxu0 }
 0x598   : > { %v859_v32 = vmul.f32 0.125, %v1757_v31  ;;  %v862_v33 = vadd.f32 %v854_v27, %v2317_v29  ;;  %v878_v29 = vsel %vm231_vm0, %v864_v20, -inf }
 0x599   : > { %v838_v35 = vpop.f32.mrf.mxu0 }
 0x59a   : > { %v857_v36 = vmul.f32 0.125, %v838_v35  ;;  %v872_v3 = vsel %vm231_vm0, %v862_v33, -inf  ;;  %v867_v17 = vadd.f32 %v859_v32, %v2331_v39 }
 0x59b   : > { %876 = vmax.xlane.f32.xlu0 %v875_v37  ;;  %873 = vmax.xlane.f32.xlu1 %v872_v3  ;;  %v1758_v34 = vpop.f32.mrf.mxu0 }
 0x59c   : > { %v860_v12 = vmul.f32 0.125, %v1758_v34  ;;  %v865_v40 = vadd.f32 %v857_v36, %v2326_v38  ;;  %v887_v45 = vsel %vm231_vm0, %v867_v17, -inf }
 0x59d   : > { %v841_v5 = vpop.f32.mrf.mxu0 }
 0x59e   : > { %v858_v41 = vmul.f32 0.125, %v841_v5  ;;  %v881_v42 = vsel %vm231_vm0, %v865_v40, -inf  ;;  %v868_v43 = vadd.f32 %v860_v12, %v2344_v48 }
 0x59f   : > { %879 = vmax.xlane.f32.xlu1 %v878_v29  ;;  %882 = vmax.xlane.f32.xlu0 %v881_v42 }
 0x5a0   : > { %v866_v24 = vadd.f32 %v858_v41, %v2339_v47  ;;  %v890_v38 = vsel %vm231_vm0, %v868_v43, -inf }
 0x5a2   : > { %v884_v44 = vsel %vm231_vm0, %v866_v24, -inf }
 0x5a3   : > { %888 = vmax.xlane.f32.xlu0 %v887_v45  ;;  %885 = vmax.xlane.f32.xlu1 %v884_v44 }
 0x5a7   : > { %891 = vmax.xlane.f32.xlu1 %v890_v38 }
 0x620   : > { %v871_v39 = vpop.xlane.xlu0 %870 }
 0x621   : > { %v893_v46 = vsub.f32 %v861_v13, %v871_v39 }
 0x623   : > { %v901_v10 = vmul.f32 1.442695, %v893_v46 }
 0x624   : > { %v877_v6 = vpop.xlane.xlu0 %876  ;;  %v874_v7 = vpop.xlane.xlu1 %873 }
 0x625   : > { %v895_v8 = vsub.f32 %v863_v30, %v877_v6  ;;  %v894_v14 = vsub.f32 %v862_v33, %v874_v7 }
 0x627   : > { %v905_v11 = vmul.f32 1.442695, %v895_v8  ;;  %v903_v48 = vmul.f32 1.442695, %v894_v14 }
 0x628   : > { %v880_v15 = vpop.xlane.xlu1 %879  ;;  %v883_v27 = vpop.xlane.xlu0 %882 }
 0x629   : > { %1938 = vpow2.f32 %v905_v11  ;;  %v896_v47 = vsub.f32 %v864_v20, %v880_v15  ;;  %v897_v31 = vsub.f32 %v865_v40, %v883_v27 }
 0x62a   : > { %1940 = vpow2.f32 %v901_v10 }
 0x62b   : > { %v907_v28 = vmul.f32 1.442695, %v896_v47  ;;  %v909_v36 = vmul.f32 1.442695, %v897_v31 }
 0x62c   : > { %v889_v32 = vpop.xlane.xlu0 %888  ;;  %v886_v42 = vpop.xlane.xlu1 %885 }
 0x62d   : > { %1942 = vpow2.f32 %v907_v28  ;;  %v899_v35 = vsub.f32 %v867_v17, %v889_v32  ;;  %v898_v38 = vsub.f32 %v866_v24, %v886_v42 }
 0x62e   : > { %1944 = vpow2.f32 %v903_v48 }
 0x62f   : > { %v913_v13 = vmul.f32 1.442695, %v899_v35  ;;  %v911_v46 = vmul.f32 1.442695, %v898_v38 }
 0x630   : > { %v892_v45 = vpop.xlane.xlu1 %891 }
 0x631   : > { %1946 = vpow2.f32 %v913_v13  ;;  %v900_v44 = vsub.f32 %v868_v43, %v892_v45 }
 0x632   : > { %1948 = vpow2.f32 %v909_v36 }
 0x633   : > { %v915_v39 = vmul.f32 1.442695, %v900_v44 }
 0x635   : > { %1950 = vpow2.f32 %v915_v39 }
 0x636   : > { %v1939_v30 = vpop.eup %1938  ;;  %1952 = vpow2.f32 %v911_v46 }
 0x637   : > { %v923_v37 = vsel %vm231_vm0, %v1939_v30, 0.0  ;;  %v1941_v33 = vpop.eup %1940 }
 0x638   : > { %924 = vadd.xlane.f32.xlu0 %v923_v37  ;;  %v917_v20 = vsel %vm231_vm0, %v1941_v33, 0.0 }
 0x63a   : > { %v1943_v3 = vpop.eup %1942 }
 0x63b   : > { %v926_v34 = vsel %vm231_vm0, %v1943_v3, 0.0  ;;  %v1945_v12 = vpop.eup %1944 }
 0x63c   : > { %918 = vadd.xlane.f32.xlu0 %v917_v20  ;;  %927 = vadd.xlane.f32.xlu1 %v926_v34  ;;  %v920_v5 = vsel %vm231_vm0, %v1945_v12, 0.0 }
 0x63e   : > { %v2575_v40 = vpop.eup %1946 }
 0x63f   : > { %v935_v17 = vsel %vm231_vm0, %v2575_v40, 0.0  ;;  %v2580_v41 = vpop.eup %1948 }
 0x640   : > { %936 = vadd.xlane.f32.xlu0 %v935_v17  ;;  %921 = vadd.xlane.f32.xlu1 %v920_v5  ;;  %v929_v29 = vsel %vm231_vm0, %v2580_v41, 0.0 }
 0x642   : > { %v2590_v6 = vpop.eup %1950 }
 0x643   : > { %v938_v7 = vsel %vm231_vm0, %v2590_v6, 0.0 }
 0x644   : > { %930 = vadd.xlane.f32.xlu0 %v929_v29 }
 0x651   : > { %1046 = vrot.lane.b32.xlu1 %v2480_v57, %s2115_s4  ;;  %v2594_v57 = vpop.eup %1952 }
 0x655   : > { %1044 = vrot.lane.b32.xlu1 %v2492_v60, %s2115_s4  ;;  %v932_v60 = vsel %vm231_vm0, %v2594_v57, 0.0 }
 0x65a   : > { %1048 = vrot.lane.b32.xlu0 %v2466_v9, %s2115_s4 }
 0x679   : > { %939 = vadd.xlane.f32.xlu1 %v938_v7 }
 0x67d   : > { %933 = vadd.xlane.f32.xlu1 %v932_v60 }
 0x68e   : > { %1042 = vrot.lane.b32.xlu1 %v2504_v63, %s2115_s4 }
 0x6c1   : > { %v925_v9 = vpop.xlane.xlu0 %924 }
 0x6c5   : > { %v919_v24 = vpop.xlane.xlu0 %918  ;;  %v928_v43 = vpop.xlane.xlu1 %927 }
 0x6c6   : > { %1954 = vrcp.f32 %v928_v43 }
 0x6c7   : > { %1956 = vrcp.f32 %v919_v24 }
 0x6c8   : > { %1958 = vrcp.f32 %v925_v9 }
 0x6c9   : > { %v937_v8 = vpop.xlane.xlu0 %936  ;;  %v922_v10 = vpop.xlane.xlu1 %921 }
 0x6ca   : > { %1960 = vrcp.f32 %v922_v10 }
 0x6cd   : > { %v931_v11 = vpop.xlane.xlu0 %930  ;;  %v1047_v14 = vpop.permute.xlu1 %1046 }
 0x6ce   : > { %v1057_v34 = vsel %vm231_vm0, %v1047_v14, 0 }
 0x6d1   : > { %v1049_v15 = vpop.permute.xlu0 %1048  ;;  %v1045_v48 = vpop.permute.xlu1 %1044 }
 0x6d2   : > { %1791 = vmatprep.subr.bf16.mxu0 %v1049_v15  ;;  %1819 = vmatprep.subr.msk.bf16.mxu1 %vm231_vm0, %v1049_v15  ;;  %v1060_v20 = vsel %vm231_vm0, %v1049_v15, 0 }
 0x6d3   : > { %1792 = vmatpush3.bf16.msra.mxu0 %v1049_v15  ;;  %v1955_v27 = vpop.eup %1954 }
 0x6d4   : > { %1793 = vmatprep.subr.bf16.mxu0 %v1047_v14  ;;  %v1957_v47 = vpop.eup %1956  ;;  %v952_v31 = vmul.f32 %v1955_v27, %v1943_v3 }
 0x6d5   : > { %v1959_v63 = vpop.eup %1958  ;;  %v949_v32 = vmul.f32 %v1957_v47, %v1941_v33  ;;  %v1054_v33 = vsel %vm231_vm0, %v1045_v48, 0  ;;  %v2002_v47 = vld [vmem:[%s2866_s1] sm:$0xff] }
 0x6d6   : > { %v951_v36 = vmul.f32 %v1959_v63, %v1939_v30 }
 0x6d7   : > { %1794 = vmatpush3.bf16.msra.mxu0 %v1047_v14  ;;  %v1961_v28 = vpop.eup %1960 }
 0x6d8   : > { %1795 = vmatprep.subr.bf16.mxu0 %v1045_v48  ;;  %v950_v35 = vmul.f32 %v1961_v28, %v1945_v12  ;;  %v958_v37 = vpack.c.bf16 %v952_v31, %v951_v36 }
 0x6da   : > { %v957_v13 = vpack.c.bf16 %v950_v35, %v949_v32  ;;  %v2003_v35 = vld [vmem:[%s2866_s1 + $0x10] sm:$0xff] }
 0x6db   : > { %1796 = vmatpush3.bf16.msra.mxu0 %v1045_v48 }
 0x6dc   : > { %1767 = vmatprep.mubr.msk.bf16.mxu1 %vm231_vm0, %v957_v13 }
 0x6dd   : > { %1768 = vmatmul.mubr.msk.bf16.vlgmr.msra.gmra.mxu1 %vm231_vm0, %v958_v37  ;;  %v2004_v37 = vld [vmem:[%s2866_s1 + $0x8] sm:$0xff] }
 0x6de   : > { %1776 = vmatpush3.bf16.xpose.msra.mxu1 %v1060_v20 }
 0x6df   : > { %1820 = vmatprep.subr.msk.bf16.mxu1 %vm231_vm0, %v1047_v14 }
 0x6e6   : > { %1778 = vmatpush3.bf16.xpose.msra.mxu1 %v1057_v34 }
 0x6e7   : > { %1821 = vmatprep.subr.msk.bf16.mxu1 %vm231_vm0, %v1045_v48 }
 0x6ee   : > { %1780 = vmatpush3.bf16.xpose.msra.mxu1 %v1054_v33 }
 0x702   : > { %v940_v30 = vpop.xlane.xlu1 %939 }
 0x703   : > { %1962 = vrcp.f32 %v940_v30 }
 0x704   : > { %1964 = vrcp.f32 %v931_v11 }
 0x705   : > { %1966 = vrcp.f32 %v937_v8 }
 0x706   : > { %v934_v3 = vpop.xlane.xlu1 %933 }
 0x707   : > { %1968 = vrcp.f32 %v934_v3 }
 0x70a   : > { %v1043_v12 = vpop.permute.xlu1 %1042 }
 0x70b   : > { %1797 = vmatprep.subr.bf16.mxu0 %v1043_v12  ;;  %1822 = vmatprep.subr.msk.bf16.mxu1 %vm231_vm0, %v1043_v12  ;;  %v1051_v17 = vsel %vm231_vm0, %v1043_v12, 0 }
 0x70c   : > { %1798 = vmatpush3.bf16.msra.mxu0 %v1043_v12  ;;  %1782 = vmatpush3.bf16.xpose.msra.mxu1 %v1051_v17 }
 0x710   : > { %v1963_v5 = vpop.eup %1962 }
 0x711   : > { %v1965_v29 = vpop.eup %1964  ;;  %v956_v44 = vmul.f32 %v1963_v5, %v2590_v6 }
 0x712   : > { %v1967_v42 = vpop.eup %1966  ;;  %v953_v38 = vmul.f32 %v1965_v29, %v2580_v41 }
 0x713   : > { %v955_v46 = vmul.f32 %v1967_v42, %v2575_v40 }
 0x714   : > { %v1969_v45 = vpop.eup %1968 }
 0x715   : > { %v954_v39 = vmul.f32 %v1969_v45, %v2594_v57  ;;  %v960_v60 = vpack.c.bf16 %v956_v44, %v955_v46 }
 0x717   : > { %v959_v7 = vpack.c.bf16 %v954_v39, %v953_v38  ;;  %v2006_v39 = vld [vmem:[%s2866_s1 + $0x20] sm:$0xff] }
 0x719   : > { %1771 = vmatprep.mubr.msk.bf16.mxu1 %vm231_vm0, %v959_v7  ;;  %v2007_v7 = vld [vmem:[%s2866_s1 + $0x28] sm:$0xff] }
 0x71a   : > { %1772 = vmatmul.mubr.msk.bf16.gmra.mxu1 %vm231_vm0, %v960_v60 }
 0x71b   : > { %1783 = vmatprep.mubr.msk.bf16.mxu1 %vm231_vm0, %v1043_v12  ;;  %v2005_v12 = vld [vmem:[%s2866_s1 + $0x18] sm:$0xff] }
 0x722   : > { %1784 = vmatmul.mubr.msk.bf16.vlgmr.msra.gmra.mxu1 %vm231_vm0, %v1045_v48 }
 0x723   : > { %1787 = vmatprep.mubr.msk.bf16.mxu1 %vm231_vm0, %v1047_v14 }
 0x72a   : > { %1788 = vmatmul.mubr.msk.bf16.gmra.mxu1 %vm231_vm0, %v1049_v15 }
 0x79d   : > { %v2620_v6 = vpop.f32.mrf.mxu1 }
 0x79f   : > { %v2622_v41 = vpop.f32.mrf.mxu1 }
 0x7a1   : > { %v2624_v57 = vpop.f32.mrf.mxu1 }
 0x7a3   : > { %v2626_v40 = vpop.f32.mrf.mxu1 }
 0x7da   : > { %v2628_v9 = vpop.f32.mrf.mxu1 }
 0x7dc   : > { %v2630_v24 = vpop.f32.mrf.mxu1 }
 0x7de   : > { %v2632_v43 = vpop.f32.mrf.mxu1 }
 0x7e0   : > { %v2634_v8 = vpop.f32.mrf.mxu1 }
 0x7e2   : > { %v1785_v10 = vpop.f32.mrf.mxu1 }
 0x7e3   : > { %v1129_v14 = vmul.f32 0.125, %v1785_v10 }
 0x7e4   : > { %v1096_v11 = vpop.f32.mrf.mxu1 }
 0x7e5   : > { %v1127_v15 = vmul.f32 0.125, %v1096_v11  ;;  %v1137_v36 = vadd.f32 %v2003_v35, %v1129_v14  ;;  %v2008_v14 = vld [vmem:[%s2866_s1 + $0x30] sm:$0xff] }
 0x7e6   : > { %v1786_v27 = vpop.f32.mrf.mxu1 }
 0x7e7   : > { %v1135_v63 = vadd.f32 %v2002_v47, %v1127_v15  ;;  %v1130_v28 = vmul.f32 0.125, %v1786_v27  ;;  %v1149_v30 = vsel %vm231_vm0, %v1137_v36, -inf  ;;  %v2009_v27 = vld [vmem:[%s2866_s1 + $0x38] sm:$0xff] }
 0x7e8   : > { %v1099_v48 = vpop.f32.mrf.mxu1 }
 0x7e9   : > { %v1128_v31 = vmul.f32 0.125, %v1099_v48  ;;  %v1143_v32 = vsel %vm231_vm0, %v1135_v63, -inf  ;;  %v1138_v17 = vadd.f32 %v2005_v12, %v1130_v28 }
 0x7ea   : > { %1144 = vmax.xlane.f32.xlu0 %v1143_v32  ;;  %v1789_v13 = vpop.f32.mrf.mxu1 }
 0x7eb   : > { %v1136_v20 = vadd.f32 %v2004_v37, %v1128_v31  ;;  %v1133_v29 = vmul.f32 0.125, %v1789_v13  ;;  %v1152_v38 = vsel %vm231_vm0, %v1138_v17, -inf }
 0x7ec   : > { %v1112_v34 = vpop.f32.mrf.mxu1 }
 0x7ed   : > { %v1131_v33 = vmul.f32 0.125, %v1112_v34  ;;  %v1146_v3 = vsel %vm231_vm0, %v1136_v20, -inf  ;;  %v1141_v15 = vadd.f32 %v2008_v14, %v1133_v29 }
 0x7ee   : > { %1150 = vmax.xlane.f32.xlu0 %v1149_v30  ;;  %1147 = vmax.xlane.f32.xlu1 %v1146_v3  ;;  %v1790_v5 = vpop.f32.mrf.mxu1 }
 0x7ef   : > { %v1134_v45 = vmul.f32 0.125, %v1790_v5  ;;  %v1139_v46 = vadd.f32 %v2006_v39, %v1131_v33  ;;  %v1161_v48 = vsel %vm231_vm0, %v1141_v15, -inf }
 0x7f0   : > { %v1115_v42 = vpop.f32.mrf.mxu1 }
 0x7f1   : > { %v1132_v44 = vmul.f32 0.125, %v1115_v42  ;;  %v1155_v10 = vsel %vm231_vm0, %v1139_v46, -inf  ;;  %v1142_v47 = vadd.f32 %v2009_v27, %v1134_v45 }
 0x7f2   : > { %1153 = vmax.xlane.f32.xlu0 %v1152_v38 }
 0x7f3   : > { %v1140_v60 = vadd.f32 %v2007_v7, %v1132_v44  ;;  %v1164_v28 = vsel %vm231_vm0, %v1142_v47, -inf }
 0x7f5   : > { %v1158_v11 = vsel %vm231_vm0, %v1140_v60, -inf }
 0x7f6   : > { %1156 = vmax.xlane.f32.xlu0 %v1155_v10  ;;  %1159 = vmax.xlane.f32.xlu1 %v1158_v11 }
 0x7fa   : > { %1162 = vmax.xlane.f32.xlu0 %v1161_v48  ;;  %1165 = vmax.xlane.f32.xlu1 %v1164_v28 }
 0x873   : > { %v1145_v31 = vpop.xlane.xlu0 %1144 }
 0x874   : > { %v1167_v32 = vsub.f32 %v1135_v63, %v1145_v31 }
 0x876   : > { %v1175_v35 = vmul.f32 1.442695, %v1167_v32 }
 0x877   : > { %v1151_v13 = vpop.xlane.xlu0 %1150  ;;  %v1148_v37 = vpop.xlane.xlu1 %1147 }
 0x878   : > { %1970 = vpow2.f32 %v1175_v35  ;;  %v1169_v34 = vsub.f32 %v1137_v36, %v1151_v13  ;;  %v1168_v33 = vsub.f32 %v1136_v20, %v1148_v37 }
 0x87a   : > { %v1179_v30 = vmul.f32 1.442695, %v1169_v34  ;;  %v1177_v3 = vmul.f32 1.442695, %v1168_v33 }
 0x87b   : > { %v1154_v12 = vpop.xlane.xlu0 %1153 }
 0x87c   : > { %1972 = vpow2.f32 %v1179_v30  ;;  %v1170_v5 = vsub.f32 %v1138_v17, %v1154_v12 }
 0x87d   : > { %1974 = vpow2.f32 %v1177_v3 }
 0x87e   : > { %v1181_v29 = vmul.f32 1.442695, %v1170_v5 }
 0x87f   : > { %v1157_v42 = vpop.xlane.xlu0 %1156  ;;  %v1160_v45 = vpop.xlane.xlu1 %1159 }
 0x880   : > { %1976 = vpow2.f32 %v1181_v29  ;;  %v1171_v44 = vsub.f32 %v1139_v46, %v1157_v42  ;;  %v1172_v38 = vsub.f32 %v1140_v60, %v1160_v45 }
 0x882   : > { %v1183_v39 = vmul.f32 1.442695, %v1171_v44  ;;  %v1185_v63 = vmul.f32 1.442695, %v1172_v38 }
 0x883   : > { %v1163_v7 = vpop.xlane.xlu0 %1162  ;;  %v1166_v10 = vpop.xlane.xlu1 %1165 }
 0x884   : > { %1978 = vpow2.f32 %v1183_v39  ;;  %v1173_v11 = vsub.f32 %v1141_v15, %v1163_v7  ;;  %v1174_v36 = vsub.f32 %v1142_v47, %v1166_v10  ;;  %v2010_v39 = vld [vmem:[%s2242_s11] sm:$0xff] }
 0x885   : > { %v1971_v20 = vpop.eup %1970  ;;  %1980 = vpow2.f32 %v1185_v63 }
 0x886   : > { %v1187_v14 = vmul.f32 1.442695, %v1173_v11  ;;  %v1189_v27 = vmul.f32 1.442695, %v1174_v36  ;;  %v1191_v17 = vsel %vm231_vm0, %v1971_v20, 0.0  ;;  %v2011_v36 = vld [vmem:[%s2242_s11 + $0x10] sm:$0xff] }
 0x887   : > { %1192 = vadd.xlane.f32.xlu0 %v1191_v17 }
 0x888   : > { %1982 = vpow2.f32 %v1187_v14 }
 0x889   : > { %v2669_v48 = vpop.eup %1972  ;;  %1984 = vpow2.f32 %v1189_v27 }
 0x88a   : > { %v1975_v46 = vpop.eup %1974  ;;  %v1197_v60 = vsel %vm231_vm0, %v2669_v48, 0.0 }
 0x88b   : > { %1198 = vadd.xlane.f32.xlu0 %v1197_v60  ;;  %v1194_v28 = vsel %vm231_vm0, %v1975_v46, 0.0 }
 0x88c   : > { %1195 = vadd.xlane.f32.xlu1 %v1194_v28  ;;  %v2012_v28 = vld [vmem:[%s2242_s11 + $0x40] sm:$0xff] }
 0x88d   : > { %v1977_v15 = vpop.eup %1976 }
 0x88e   : > { %v1200_v47 = vsel %vm231_vm0, %v1977_v15, 0.0 }
 0x890   : > { %1201 = vadd.xlane.f32.xlu1 %v1200_v47 }
 0x891   : > { %v2675_v31 = vpop.eup %1978 }
 0x892   : > { %v2677_v32 = vpop.eup %1980  ;;  %v1203_v35 = vsel %vm231_vm0, %v2675_v31, 0.0 }
 0x893   : > { %1204 = vadd.xlane.f32.xlu0 %v1203_v35  ;;  %v1206_v13 = vsel %vm231_vm0, %v2677_v32, 0.0  ;;  %v2013_v35 = vld [vmem:[%s2242_s11 + $0x20] sm:$0xff] }
 0x894   : > { %1207 = vadd.xlane.f32.xlu1 %v1206_v13 }
 0x895   : > { %v2683_v37 = vpop.eup %1982 }
 0x896   : > { %v2685_v34 = vpop.eup %1984  ;;  %v1209_v33 = vsel %vm231_vm0, %v2683_v37, 0.0 }
 0x897   : > { %1210 = vadd.xlane.f32.xlu0 %v1209_v33  ;;  %v1212_v30 = vsel %vm231_vm0, %v2685_v34, 0.0 }
 0x898   : > { %1213 = vadd.xlane.f32.xlu1 %v1212_v30 }
 0x8a9   : > { %1326 = vrot.lane.b32.xlu1 %v2546_v52, %s2115_s4 }
 0x8ad   : > { %1328 = vrot.lane.b32.xlu1 %v2540_v49, %s2115_s4  ;;  %1324 = vrot.lane.b32.xlu0 %v2542_v50, %s2115_s4 }
 0x8b1   : > { %1330 = vrot.lane.b32.xlu1 %v2544_v51, %s2115_s4  ;;  %1332 = vrot.lane.b32.xlu0 %v2550_v1, %s2115_s4 }
 0x8b5   : > { %1334 = vrot.lane.b32.xlu1 %v2554_v4, %s2115_s4  ;;  %1336 = vrot.lane.b32.xlu0 %v2548_v0, %s2115_s4 }
 0x8b9   : > { %1338 = vrot.lane.b32.xlu1 %v2552_v2, %s2115_s4 }
 0x910   : > { %v1193_v49 = vpop.xlane.xlu0 %1192 }
 0x911   : > { %1986 = vrcp.f32 %v1193_v49 }
 0x914   : > { %v1199_v52 = vpop.xlane.xlu0 %1198 }
 0x915   : > { %v1196_v50 = vpop.xlane.xlu1 %1195 }
 0x916   : > { %1988 = vrcp.f32 %v1196_v50  ;;  %v2014_v50 = vld [vmem:[%s2242_s11 + $0x60] sm:$0xff] }
 0x917   : > { %1990 = vrcp.f32 %v1199_v52 }
 0x919   : > { %v1202_v51 = vpop.xlane.xlu1 %1201 }
 0x91a   : > { %1992 = vrcp.f32 %v1202_v51 }
 0x91c   : > { %v1205_v1 = vpop.xlane.xlu0 %1204 }
 0x91d   : > { %1994 = vrcp.f32 %v1205_v1  ;;  %v1208_v3 = vpop.xlane.xlu1 %1207 }
 0x91e   : > { %1996 = vrcp.f32 %v1208_v3  ;;  %v1987_v0 = vpop.eup %1986 }
 0x91f   : > { %v1223_v29 = vmul.f32 %v1987_v0, %v1971_v20 }
 0x920   : > { %v1211_v4 = vpop.xlane.xlu0 %1210 }
 0x921   : > { %1998 = vrcp.f32 %v1211_v4  ;;  %v1214_v2 = vpop.xlane.xlu1 %1213 }
 0x922   : > { %2000 = vrcp.f32 %v1214_v2 }
 0x923   : > { %v1989_v12 = vpop.eup %1988 }
 0x924   : > { %v1325_v5 = vpop.permute.xlu0 %1324  ;;  %v1224_v42 = vmul.f32 %v1989_v12, %v1975_v46  ;;  %v1991_v45 = vpop.eup %1990 }
 0x925   : > { %v1380_v44 = vsel %vm231_vm0, %v2402_v18, %v1325_v5  ;;  %v1327_v38 = vpop.permute.xlu1 %1326  ;;  %v1225_v20 = vmul.f32 %v1991_v45, %v2669_v48  ;;  %v2016_v5 = vld [vmem:[%s2242_s11 + $0x50] sm:$0xff] }
 0x926   : > { %1396 = vst [vmem:[%s2718_s26] sm:$0xff] %v1380_v44  ;;  %v1412_v63 = vadd.f32 %v2010_v39, %v1380_v44  ;;  %v1381_v7 = vsel %vm231_vm0, %v2406_v21, %v1327_v38  ;;  %v1231_v10 = vpack.c.bf16 %v1224_v42, %v1223_v29  ;;  %v2017_v45 = vld [vmem:[%s2242_s11 + $0x70] sm:$0xff] }
 0x927   : > { %v1993_v11 = vpop.eup %1992  ;;  %1398 = vst [vmem:[%s2718_s26 + $0x10] sm:$0xff] %v1381_v7  ;;  %v1414_v18 = vadd.f32 %v2011_v36, %v1381_v7 }
 0x928   : > { %v1226_v14 = vmul.f32 %v1993_v11, %v1977_v15  ;;  %1428 = vst [vmem:[%s2712_s22] sm:$0xff] %v1412_v63  ;;  %1799 = vmatprep.mubr.msk.bf16.mxu0 %vm231_vm0, %v1231_v10  ;;  %v1333_v27 = vpop.permute.xlu0 %1332 }
 0x929   : > { %1430 = vst [vmem:[%s2712_s22 + $0x10] sm:$0xff] %v1414_v18  ;;  %v1384_v21 = vsel %vm231_vm0, %v2410_v23, %v1333_v27  ;;  %v1329_v17 = vpop.permute.xlu1 %1328 }
 0x92a   : > { %v1995_v46 = vpop.eup %1994  ;;  %v1232_v60 = vpack.c.bf16 %v1226_v14, %v1225_v20  ;;  %1404 = vst [vmem:[%s2718_s26 + $0x40] sm:$0xff] %v1384_v21  ;;  %v1420_v47 = vadd.f32 %v2012_v28, %v1384_v21  ;;  %v1382_v48 = vsel %vm231_vm0, %v2400_v16, %v1329_v17 }
 0x92b   : > { %v1997_v15 = vpop.eup %1996  ;;  %1400 = vst [vmem:[%s2718_s26 + $0x20] sm:$0xff] %v1382_v48  ;;  %v1416_v13 = vadd.f32 %v2013_v35, %v1382_v48  ;;  %v1227_v33 = vmul.f32 %v1995_v46, %v2675_v31 }
 0x92c   : > { %1436 = vst [vmem:[%s2712_s22 + $0x40] sm:$0xff] %v1420_v47  ;;  %1800 = vmatmul.mubr.msk.bf16.vlgmr.msra.gmra.mxu0 %vm231_vm0, %v1232_v60  ;;  %v1337_v23 = vpop.permute.xlu0 %1336  ;;  %v1228_v30 = vmul.f32 %v1997_v15, %v2677_v32  ;;  %v2015_v32 = vld [vmem:[%s2242_s11 + $0x30] sm:$0xff]  ;;  %s1463_s11 = sshll.u32 %s2718_s26, 4  ;;  %s2815_s11 = int_to_ptr.vmem [resolvable:$true] %s1463_s11 }
 0x92d   : > { %1432 = vst [vmem:[%s2712_s22 + $0x20] sm:$0xff] %v1416_v13  ;;  %v1386_v49 = vsel %vm231_vm0, %v2408_v22, %v1337_v23  ;;  %v1331_v16 = vpop.permute.xlu1 %1330  ;;  %s2046_s29 = scalar_lea.vmem %s2815_s11, 2048  ;;  %p2053_p7 = scmp.lt.s32.totalorder %s2815_s11, %s2051_s10 }
 0x92e   : > { %v1999_v52 = vpop.eup %1998  ;;  %1408 = vst [vmem:[%s2718_s26 + $0x60] sm:$0xff] %v1386_v49  ;;  %v1424_v51 = vadd.f32 %v2014_v50, %v1386_v49  ;;  %v1383_v31 = vsel %vm231_vm0, %v2404_v19, %v1331_v16  ;;  %v1233_v1 = vpack.c.bf16 %v1228_v30, %v1227_v33  ;;  %p2047_p12 = scmp.ne.s32.totalorder %s2815_s11, %s2046_s29  ;;  %p2054_p8 = scmp.lt.s32.totalorder %s2052_s23, %s2046_s29 }
 0x92f   : > { %v2001_v3 = vpop.eup %2000  ;;  %1402 = vst [vmem:[%s2718_s26 + $0x30] sm:$0xff] %v1383_v31  ;;  %v1418_v4 = vadd.f32 %v2015_v32, %v1383_v31  ;;  %v1229_v22 = vmul.f32 %v1999_v52, %v2683_v37 }
 0x930   : > { %1440 = vst [vmem:[%s2712_s22 + $0x60] sm:$0xff] %v1424_v51  ;;  %1803 = vmatprep.mubr.msk.bf16.mxu0 %vm231_vm0, %v1233_v1  ;;  %v1230_v0 = vmul.f32 %v2001_v3, %v2685_v34  ;;  %p2048_p4 = pnand %p2047_p12, %p2877_p13  ;;  %p2055_p10 = por %p2054_p8, %p2053_p7 }
 0x931   : > { %1434 = vst [vmem:[%s2712_s22 + $0x30] sm:$0xff] %v1418_v4  ;;  %v1335_v2 = vpop.permute.xlu1 %1334 }
 0x932   : > { %v1385_v19 = vsel %vm231_vm0, %v2414_v26, %v1335_v2  ;;  %v1234_v12 = vpack.c.bf16 %v1230_v0, %v1229_v22  ;;  %p2049_p5 = pneg %p2048_p4 }
 0x933   : > { %1406 = vst [vmem:[%s2718_s26 + $0x50] sm:$0xff] %v1385_v19  ;;  %v1422_v29 = vadd.f32 %v2016_v5, %v1385_v19 }
 0x934   : > { %1804 = vmatmul.mubr.msk.bf16.gmra.mxu0 %vm231_vm0, %v1234_v12  ;;  %p2056_p0 = pnand %p2055_p10, %p2049_p5 }
 0x935   : > { %1438 = vst [vmem:[%s2712_s22 + $0x50] sm:$0xff] %v1422_v29  ;;  %v1339_v37 = vpop.permute.xlu1 %1338 }
 0x936   : > { %v1387_v42 = vsel %vm231_vm0, %v2412_v25, %v1339_v37 }
 0x937   : > { %1410 = vst [vmem:[%s2718_s26 + $0x70] sm:$0xff] %v1387_v42  ;;  %v1426_v44 = vadd.f32 %v2017_v45, %v1387_v42 }
 0x939   : > { %1442 = vst [vmem:[%s2712_s22 + $0x70] sm:$0xff] %v1426_v44 }
 0x9ec   : > { %v1801_v34 = vpop.f32.mrf.mxu0 }
 0x9ed   : > { %1360 = vrot.lane.b32.xlu0 %v1801_v34, %s2115_s4 }
 0x9ee   : > { %v1285_v38 = vpop.f32.mrf.mxu0 }
 0x9f0   : > { %v1802_v26 = vpop.f32.mrf.mxu0 }
 0x9f1   : > { %1356 = vrot.lane.b32.xlu0 %v1285_v38, %s2115_s4  ;;  %1362 = vrot.lane.b32.xlu1 %v1802_v26, %s2115_s4 }
 0x9f2   : > { %v1288_v39 = vpop.f32.mrf.mxu0 }
 0x9f4   : > { %v1805_v63 = vpop.f32.mrf.mxu0 }
 0x9f5   : > { %1358 = vrot.lane.b32.xlu1 %v1288_v39, %s2115_s4 }
 0x9f6   : > { %v1301_v25 = vpop.f32.mrf.mxu0 }
 0x9f7   : > { %1364 = vrot.lane.b32.xlu0 %v1301_v25, %s2115_s4 }
 0x9f8   : > { %v1806_v7 = vpop.f32.mrf.mxu0 }
 0x9fa   : > { %v1304_v10 = vpop.f32.mrf.mxu0 }
 0x9fb   : > { %1368 = vrot.lane.b32.xlu0 %v1805_v63, %s2115_s4  ;;  %1366 = vrot.lane.b32.xlu1 %v1304_v10, %s2115_s4 }
 0x9ff   : > { %1370 = vrot.lane.b32.xlu1 %v1806_v7, %s2115_s4 }
 0xa5f   : > { %v1361_v11 = vpop.permute.xlu0 %1360 }
 0xa60   : > { %v1390_v36 = vsel %vm231_vm0, %v2620_v6, %v1361_v11 }
 0xa61   : > { %1401 = vst [vmem:[%s2718_s26 + $0x28] sm:$0xff] %v1390_v36  ;;  %v1417_v18 = vadd.f32 %v1390_v36, %v2485_v58 }
 0xa63   : > { %1433 = vst [vmem:[%s2712_s22 + $0x28] sm:$0xff] %v1417_v18  ;;  %v1357_v20 = vpop.permute.xlu0 %1356  ;;  %v1363_v14 = vpop.permute.xlu1 %1362 }
 0xa64   : > { %v1388_v27 = vsel %vm231_vm0, %v2622_v41, %v1357_v20  ;;  %v1391_v21 = vsel %vm231_vm0, %v2624_v57, %v1363_v14 }
 0xa65   : > { %1397 = vst [vmem:[%s2718_s26 + $0x8] sm:$0xff] %v1388_v27  ;;  %v1413_v17 = vadd.f32 %v1388_v27, %v2497_v61  ;;  %1403 = vst [vmem:[%s2718_s26 + $0x38] sm:$0xff] %v1391_v21  ;;  %v1419_v6 = vadd.f32 %v1391_v21, %v2488_v59 }
 0xa67   : > { %1429 = vst [vmem:[%s2712_s22 + $0x8] sm:$0xff] %v1413_v17  ;;  %1435 = vst [vmem:[%s2712_s22 + $0x38] sm:$0xff] %v1419_v6  ;;  %v1359_v58 = vpop.permute.xlu1 %1358 }
 0xa68   : > { %v1389_v46 = vsel %vm231_vm0, %v2626_v40, %v1359_v58 }
 0xa69   : > { %1399 = vst [vmem:[%s2718_s26 + $0x18] sm:$0xff] %v1389_v46  ;;  %v1415_v41 = vadd.f32 %v1389_v46, %v2500_v62  ;;  %v1365_v57 = vpop.permute.xlu0 %1364 }
 0xa6a   : > { %v1392_v61 = vsel %vm231_vm0, %v2630_v24, %v1365_v57 }
 0xa6b   : > { %1431 = vst [vmem:[%s2712_s22 + $0x18] sm:$0xff] %v1415_v41  ;;  %1405 = vst [vmem:[%s2718_s26 + $0x48] sm:$0xff] %v1392_v61  ;;  %v1421_v59 = vadd.f32 %v1392_v61, %v2473_v55 }
 0xa6d   : > { %1437 = vst [vmem:[%s2712_s22 + $0x48] sm:$0xff] %v1421_v59  ;;  %v1369_v60 = vpop.permute.xlu0 %1368  ;;  %v1367_v28 = vpop.permute.xlu1 %1366 }
 0xa6e   : > { %v1394_v62 = vsel %vm231_vm0, %v2628_v9, %v1369_v60  ;;  %v1393_v40 = vsel %vm231_vm0, %v2634_v8, %v1367_v28 }
 0xa6f   : > { %1409 = vst [vmem:[%s2718_s26 + $0x68] sm:$0xff] %v1394_v62  ;;  %v1425_v24 = vadd.f32 %v1394_v62, %v2459_v53  ;;  %1407 = vst [vmem:[%s2718_s26 + $0x58] sm:$0xff] %v1393_v40  ;;  %v1423_v55 = vadd.f32 %v1393_v40, %v2476_v56 }
 0xa71   : > { %1441 = vst [vmem:[%s2712_s22 + $0x68] sm:$0xff] %v1425_v24  ;;  %1439 = vst [vmem:[%s2712_s22 + $0x58] sm:$0xff] %v1423_v55  ;;  %v1371_v9 = vpop.permute.xlu1 %1370 }
 0xa72   : > { %v1395_v8 = vsel %vm231_vm0, %v2632_v43, %v1371_v9 }
 0xa73   : > { %1411 = vst [vmem:[%s2718_s26 + $0x78] sm:$0xff] %v1395_v8  ;;  %v1427_v53 = vadd.f32 %v1395_v8, %v2462_v54 }
 0xa74   : > { %2059 = shalt.err (!%p2056_p0)
}
 0xa75   : > { %s2060_s6 = scalar_lea.hbm %s2813_s28, 2048  ;;  %s2064_s17 = scalar_lea.hbm %s2867_s2, 4096 }
 0xa76   : > { %p2061_p2 = scmp.ne.s32.totalorder %s2813_s28, %s2060_s6  ;;  %p2065_p3 = scmp.lt.s32.totalorder %s2813_s28, %s2867_s2 }
 0xa77   : > { %p2066_p6 = scmp.lt.s32.totalorder %s2064_s17, %s2060_s6 }
 0xa78   : > { %p2062_p9 = pnand %p2061_p2, %p2877_p13 }
 0xa79   : > { %p2067_p11 = por %p2066_p6, %p2065_p3 }
 0xa7a   : > { %p2063_p1 = pneg %p2062_p9 }
 0xa7c   : > { %p2068_p12 = pnand %p2067_p11, %p2063_p1 }
 0xa7e   : > { %2071 = shalt.err (!%p2068_p12)
}
 0xa7f   : > { %s2117_s26 = smov 256   ;;  %s2118_s9 = smov 16   ;;  %1443 = vst [vmem:[%s2712_s22 + $0x78] sm:$0xff] %v1427_v53 }
 0xa80   : > { %1825 = dma.vmem_to_hbm [thread:$0]  (%p2877_p13), %s2815_s11, 2048, %s2813_s28, %s1445_s16, %s2117_s26, %s2117_s26, %s2118_s9  }
 0xa81 PF: > { %s1481_s4 = sand.u32 1, %s2098_s12   ;;  %p2878_p4 = scmp.ne.s32.totalorder %s2874_s25, 0 }
 0xa82   : > { %p2879_p5 = scmp.ge.s32.totalorder %s2110_s15, 2  ;;  %s1482_s27 = scalar_lea.sflag [#allocation4], %s1481_s4 }
 0xa84   : > { %p1832_p7 = pnand %p2879_p5, %p2878_p4 }
 0xa86   : > { %p1833_p8 = pneg %p1832_p7 }
 0xa88   : > { %2093 = dma.done.wait (%p1833_p8), %s1482_s27, 2048  }
 0xa89   : > { %2095 = vsyncadd (%p1833_p8), %s1482_s27, 4294965248  ;;  %p17_p10 = scmp.ge.s32.totalorder %s2164_s18, 4   ;;  %s2880_s12 = smov %s2102_s13 }
 0xa8a   : > { %s2881_s13 = smov %s2106_s14  ;;  %s2882_s14 = smov %s2176_s21 }
 0xa8b   : > { %s2883_s15 = smov %s2164_s18  ;;  %19 = sbr.rel (!%p17_p10) target bundleno = 5 (0x5), region = 85 }
 0xa90   :  { %1495 = vsyncpa [#allocation3], 1 }
 0xa91   :  { %1497 = vsyncpa [#allocation3 + $0x1], 1 }
 0xa92   :  { %1498 = vsyncpa [#allocation4], 1 }
 0xa93   :  { %1500 = vsyncpa [#allocation4 + $0x1], 1 }

// kernel: encoder_forward.3
= control target key start
LH: loop header
LB: loop body
LE: loop exit
PB: predicated region body
PF: predicated region fallthrough
CT: control target
= control target key end

     0   :  { %s9151_s0 = inlined_call_operand.vmem [shape: f32[2,16384], index: 0, kind: input, shape index: {}]   ;;  %s9152_s1 = inlined_call_operand.hbm [shape: bf16[2,16384,128], index: 1, kind: input, shape index: {}]   ;;  %s9153_s2 = inlined_call_operand.hbm [shape: f32[1,256], index: 2, kind: input, shape index: {}]   ;;  %s9154_s3 = inlined_call_operand.hbm [shape: f32[2,256], index: 3, kind: output, shape index: {}]  }
   0x1   :  { %9159 = sst [smem:[#allocation14_spill]] %s9152_s1 }
   0x2   :  { %8 = vsyncpa [#allocation3], 0 }
   0x3   :  { %10 = vsyncpa [#allocation3 + $0x1], 0 }
   0x4   :  { %11 = vsyncpa [#allocation6], 0 }
   0x5   :  { %13 = vsyncpa [#allocation6 + $0x1], 0 }
   0x6   :  { %14 = vsyncpa [#allocation4], 0 }
   0x7   :  { %16 = vsyncpa [#allocation4 + $0x1], 0  ;;  %s8309_s12 = smov 0   ;;  %s8311_s13 = smov 0  }
   0x8   :  { %s8313_s14 = smov 0   ;;  %s8315_s15 = smov 0  }
   0x9   :  { %s8317_s16 = smov 0   ;;  %s8319_s17 = smov 0  }
   0xa   :  { %s8321_s18 = smov 0   ;;  %s8323_s19 = smov 0  }
   0xb   :  { %s8325_s20 = smov 0   ;;  %s8327_s21 = smov 0  }
   0xc   :  { %s8329_s22 = smov 0  }
   0xd LB: > { %9160 = sst [smem:[#allocation11_spill]] %s8272_s20  ;;  %s31_s23 = sadd.s32 1, %s8272_s20  ;;  %s8280_s22 = sphi %s8329_s22, %s22_s22   ;;  %s8276_s21 = sphi %s8327_s21, %s9185_s21   ;;  %s8272_s20 = sphi %s8325_s20, %s9176_s20   ;;  %s8268_s19 = sphi %s8323_s19, %s9184_s19   ;;  %s8264_s18 = sphi %s8321_s18, %s9175_s18   ;;  %s8260_s17 = sphi %s8319_s17, %s9183_s17   ;;  %s8256_s16 = sphi %s8317_s16, %s9182_s16   ;;  %s8252_s15 = sphi %s8315_s15, %s9181_s15   ;;  %s8248_s14 = sphi %s8313_s14, %s9180_s14   ;;  %s8244_s13 = sphi %s8311_s13, %s9179_s13   ;;  %s8240_s12 = sphi %s8309_s12, %s9178_s12  }
   0xe   : > { %s34_s24 = sadd.s32 1, %s8276_s21  ;;  %p32_p0 = scmp.ge.s32.totalorder %s31_s23, 2 }
   0xf   : > { %s69_s25 = sadd.s32 1, %s8260_s17  ;;  %p76_p1 = scmp.ne.s32.totalorder %s8260_s17, %s8256_s16 }
  0x10   : > { %p77_p2 = scmp.eq.s32.totalorder %s8280_s22, 0  ;;  %s9187_s23 = smov (%p32_p0, %s31_s23), 0 }
  0x11   : > { %9161 = sst [smem:[#allocation12_spill]] %s9187_s23  ;;  %s9189_s24 = smov (!%p32_p0, %s34_s24), %s8276_s21 }
  0x12   : > { %s65_s26 = ssub.s32 %s8272_s20, %s9187_s23  ;;  %p8377_p3 = por %p77_p2, %p76_p1 }
  0x13   : > { %p36_p4 = scmp.ge.s32.totalorder %s9189_s24, 2  ;;  %p82_p5 = scmp.ne.s32.totalorder %s8256_s16, %s8252_s15 }
  0x14   : > { %p7478_p6 = scmp.lt.s32.totalorder %s8280_s22, 4  ;;  %s167_s28 = sand.u32 1, %s8260_s17  }
  0x15   : > { %s9191_s24 = smov (%p36_p4, %s9189_s24), 0  ;;  %s6229_s29 = sshll.u32 %s8272_s20, 10 }
  0x16   : > { %9163 = sst [smem:[#allocation13_spill]] %s9191_s24  ;;  %s8390_s30 = ssub.s32 %s8276_s21, %s9191_s24 }
  0x17   : > { %s66_s4 = sor.u32 %s65_s26, %s8390_s30  ;;  %s6228_s5 = sshll.u32 %s167_s28, 12 }
  0x18   : > { %p67_p7 = scmp.eq.s32.totalorder %s66_s4, 0  ;;  %s6230_s6 = sshll.u32 %s8276_s21, 11 }
  0x19   : > { %s171_s7 = scalar_lea.vmem [#allocation2], %s6228_s5  ;;  %s177_s10 = sadd.s32 %s6230_s6, %s6229_s29 }
  0x1a   : > { %s180_s8 = sshll.u32 %s171_s7, 4  ;;  %s6231_s11 = sshll.u32 %s177_s10, 6  ;;  %s181_s8 = int_to_ptr.vmem [resolvable:$true] %s180_s8 }
  0x1b   : > { %s8395_s9 = scalar_select %p67_p7, %s8260_s17, %s69_s25  }
  0x1c   : > { %p8401_p8 = pnand %p7478_p6, %p8377_p3  ;;  %s9165_s1 = sld [smem:[#allocation14_spill]] }
  0x1d   : > { %s168_s4 = scalar_lea.sflag [#allocation3], %s167_s28  ;;  %s8113_s5 = scalar_lea.vmem %s181_s8, 65536 }
  0x1e   : > { %p8102_p9 = pneg %p8401_p8  ;;  %p8114_p10 = scmp.ne.s32.totalorder %s181_s8, %s8113_s5 }
  0x1f   : > { %s8282_s25 = smov [#allocation2]  }
  0x20   : > { %p8116_p11 = pnand %p8114_p10, %p8102_p9  ;;  %s8118_s29 = sshll.u32 %s8282_s25, 4  ;;  %s8119_s29 = int_to_ptr.vmem [resolvable:$false] %s8118_s29 }
  0x21   : > { %s8120_s27 = scalar_lea.vmem %s8119_s29, 131072  ;;  %p8121_p13 = scmp.lt.s32.totalorder %s181_s8, %s8119_s29 }
  0x22   : > { %s179_s26 = scalar_lea.hbm %s9165_s1, %s6231_s11  ;;  %p8117_p12 = pneg %p8116_p11 }
  0x23   : > { %p8122_p0 = scmp.lt.s32.totalorder %s8120_s27, %s8113_s5 }
  0x25   : > { %p8123_p1 = por %p8122_p0, %p8121_p13 }
  0x27   : > { %p8124_p3 = pnand %p8123_p1, %p8117_p12 }
  0x29   : > { %8127 = shalt.err (!%p8124_p3)
}
  0x2a   : > { %s8283_s6 = smov 64   ;;  %s8284_s20 = smov 4  }
  0x2b   : > { %7470 = dma.hbm_to_vmem [thread:$0]  (!%p8401_p8), %s179_s26, 65536, %s181_s8, %s168_s4, %s8283_s6, %s8283_s6, %s8284_s20  }
  0x2c   : > { %p6233_p4 = scmp.ge.s32.totalorder %s8280_s22, 1  ;;  %p205_p7 = scmp.lt.s32.totalorder %s8280_s22, 5 }
  0x2d   : > { %s6224_s28 = sadd.s32 4294967295, %s8280_s22   ;;  %s6225_s7 = sadd.s32 4294967294, %s8280_s22  }
  0x2e   : > { %p8414_p9 = pnand %p6233_p4, %p205_p7  ;;  %p83_p10 = scmp.eq.s32.totalorder %s6224_s28, 0 }
  0x2f   : > { %p93_p11 = scmp.eq.s32.totalorder %s8390_s30, 0  ;;  %s95_s10 = sadd.s32 1, %s8248_s14 }
  0x30   : > { %p8425_p12 = por %p83_p10, %p82_p5  ;;  %p102_p8 = scmp.ne.s32.totalorder %s8248_s14, %s8244_s13 }
  0x31   : > { %s8432_s23 = scalar_select %p93_p11, %s8248_s14, %s95_s10  }
  0x32   : > { %p8436_p13 = por %p102_p8, %p77_p2  ;;  %p108_p0 = scmp.ne.s32.totalorder %s8244_s13, %s8240_s12 }
  0x33   : > { %p132_p1 = scmp.eq.s32.totalorder %s6224_s28, 3  ;;  %p138_p3 = scmp.eq.s32.totalorder %s6225_s7, 3 }
  0x34   : > { %p8442_p4 = por %p108_p0, %p83_p10  ;;  %s190_s15 = sand.u32 1, %s8248_s14  }
  0x35   : > { %p8447_p5 = por %p132_p1, %p102_p8  ;;  %p8451_p7 = por %p138_p3, %p108_p0 }
  0x36   : > { %s6232_s5 = sshll.u32 %s8276_s21, 4  ;;  %s193_s25 = scalar_lea.vmem [#allocation5], %s190_s15 }
  0x37   : > { %s9170_s26 = scalar_select %p8447_p5, 1, 0 }
  0x38   : > { %s9171_s4 = scalar_select %p8451_p7, 1, 0 }
  0x39   : > { %s200_s29 = sshll.u32 %s193_s25, 4  ;;  %s198_s20 = scalar_lea.hbm %s9153_s2, %s6232_s5  ;;  %s201_s29 = int_to_ptr.vmem [resolvable:$true] %s200_s29 }
  0x3a   : > { %p8463_p2 = pnand %p7478_p6, %p8436_p13  ;;  %s191_s7 = scalar_lea.sflag [#allocation6], %s190_s15 }
  0x3b   : > { %s8141_s10 = scalar_lea.vmem %s201_s29, 16  ;;  %s8285_s25 = smov [#allocation5]  }
  0x3c   : > { %p8130_p10 = pneg %p8463_p2  ;;  %p8142_p11 = scmp.ne.s32.totalorder %s201_s29, %s8141_s10 }
  0x3d   : > { %s8146_s1 = sshll.u32 %s8285_s25, 4  ;;  %s8147_s1 = int_to_ptr.vmem [resolvable:$false] %s8146_s1 }
  0x3e   : > { %p8144_p8 = pnand %p8142_p11, %p8130_p10  ;;  %s8148_s27 = scalar_lea.vmem %s8147_s1, 32 }
  0x3f   : > { %p8149_p1 = scmp.lt.s32.totalorder %s201_s29, %s8147_s1  ;;  %p8150_p3 = scmp.lt.s32.totalorder %s8148_s27, %s8141_s10 }
  0x40   : > { %p8145_p0 = pneg %p8144_p8 }
  0x41   : > { %p8151_p7 = por %p8150_p3, %p8149_p1 }
  0x43   : > { %p8152_p5 = pnand %p8151_p7, %p8145_p0 }
  0x45   : > { %8155 = shalt.err (!%p8152_p5)
}
  0x46   : > { %7473 = dma.hbm_to_vmem [thread:$0]  (!%p8463_p2), %s198_s20, 16, %s201_s29, %s191_s7  }
  0x47   : > { %209 = sbr.rel (%p8414_p9) target bundleno = 845 (0x34d), region = 32  ;;  %s211_s8 = sand.u32 (!%p8414_p9), 1, %s8256_s16  }
  0x48   : > { %s6234_s15 = sshll.u32 (!%p8414_p9), %s211_s8, 12  ;;  %s212_s5 = scalar_lea.sflag (!%p8414_p9), [#allocation3], %s211_s8 }
  0x49   : > { %s8474_s6 = scalar_lea.vmem (!%p8414_p9), [#allocation2], %s6234_s15 }
  0x4c   : > { %8227 = dma.done.wait (%p8425_p12), %s212_s5, 65536  }
  0x4d   : > { %8229 = vsyncadd (%p8425_p12), %s212_s5, 4294901760  ;;  %s8481_s1 = sand.u32 1, %s8244_s13  }
  0x4e   : > { %s221_s24 = scalar_lea.sflag [#allocation6], %s8481_s1  ;;  %s223_s29 = scalar_lea.vmem [#allocation5], %s8481_s1 }
  0x4f   : > { %8231 = dma.done.wait (%p8442_p4), %s221_s24, 16  }
  0x50   : > { %8233 = vsyncadd (%p8442_p4), %s221_s24, 4294967280  ;;  %s6235_s20 = sshll.u32 %s8481_s1, 1  ;;  %s6236_s28 = sshll.u32 %s8264_s18, 6 }
  0x51   : > { %p256_p6 = scmp.lt.s32.totalorder %s6236_s28, 127  ;;  %s8496_s27 = scalar_lea.vmem [#allocation7], %s6235_s20 }
  0x52   : > { %p6238_p9 = scmp.ne.s32.totalorder %s8264_s18, 0 }
  0x53   : > { %s9193_s28 = smov (!%p256_p6, %s6236_s28), 127 }
  0x54   : > { %s6237_s11 = sshll.u32 %s9193_s28, 1  ;;  %266 = sbr.rel (%p6238_p9) target bundleno = 91 (0x5b), region = 44 }
  0x55   : > { %s8494_s25 = scalar_lea.vmem %s9151_s0, %s6237_s11 }
  0x59   : > { %v8286_v0 = vmov 0.0  }
  0x5a   : > { %267 = vst [vmem:[%s8496_s27] sm:$0x3] %v8286_v0 }
  0x5b PF: > { %v7572_v1 = vld [vmem:[%s8474_s6 + $0x78] sm:$0xff]   ;;  %v7576_v5 = vld [vmem:[%s8474_s6 + $0x70] sm:$0xff]   ;;  %v7580_v9 = vld [vmem:[%s8474_s6 + $0x68] sm:$0xff]   ;;  %v305_v29 = vlaneseq  ;;  %v8287_v37 = vmov 1983009808   ;;  %p6751_p12 = scmp.ne.s32.totalorder %s8264_s18, 1 }
  0x5c   : > { %v7573_v2 = vld [vmem:[%s8474_s6 + $0xf8] sm:$0xff]   ;;  %6757 = vmatprep.subr.bf16.mxu0 %v7572_v1  ;;  %v7577_v6 = vld [vmem:[%s8474_s6 + $0xf0] sm:$0xff]   ;;  %v7581_v10 = vld [vmem:[%s8474_s6 + $0xe8] sm:$0xff]   ;;  %v303_v38 = vunpack.c.l.s4 %v8287_v37 }
  0x5d   : > { %v7574_v3 = vld [vmem:[%s8474_s6 + $0x38] sm:$0xff]   ;;  %6779 = vmatprep.subr.bf16.mxu1 %v7573_v2  ;;  %v7578_v7 = vld [vmem:[%s8474_s6 + $0x30] sm:$0xff]   ;;  %v7582_v11 = vld [vmem:[%s8474_s6 + $0x28] sm:$0xff]   ;;  %v306_v34 = vshrl.u32 %v305_v29, 7 }
  0x5e   : > { %v7575_v4 = vld [vmem:[%s8474_s6 + $0xb8] sm:$0xff]   ;;  %6758 = vmatpush3.bf16.msra.mxu0 %v7574_v3  ;;  %v7579_v8 = vld [vmem:[%s8474_s6 + $0xb0] sm:$0xff]   ;;  %v7583_v12 = vld [vmem:[%s8474_s6 + $0xa8] sm:$0xff]   ;;  %v304_v40 = vunpack.c.0.s8 %v303_v38 }
  0x5f   : > { %6780 = vmatpush3.bf16.msra.mxu1 %v7575_v4  ;;  %6759 = vmatprep.subr.bf16.mxu0 %v7576_v5  ;;  %v7584_v13 = vld [vmem:[%s8474_s6 + $0x60] sm:$0xff]   ;;  %v7588_v17 = vld [vmem:[%s8474_s6 + $0x58] sm:$0xff]   ;;  %v7592_v21 = vld [vmem:[%s8474_s6 + $0x50] sm:$0xff]  }
  0x60   : > { %6781 = vmatprep.subr.bf16.mxu1 %v7577_v6  ;;  %v7585_v14 = vld [vmem:[%s8474_s6 + $0xe0] sm:$0xff]   ;;  %v7589_v18 = vld [vmem:[%s8474_s6 + $0xd8] sm:$0xff]   ;;  %v7593_v22 = vld [vmem:[%s8474_s6 + $0xd0] sm:$0xff]   ;;  %v8535_v42 = vsub.s32 %v304_v40, %v306_v34 }
  0x61   : > { %v7586_v15 = vld [vmem:[%s8474_s6 + $0x20] sm:$0xff]   ;;  %v7590_v19 = vld [vmem:[%s8474_s6 + $0x18] sm:$0xff]   ;;  %v7594_v23 = vld [vmem:[%s8474_s6 + $0x10] sm:$0xff]  }
  0x62   : > { %6760 = vmatpush3.bf16.msra.mxu0 %v7578_v7  ;;  %v7587_v16 = vld [vmem:[%s8474_s6 + $0xa0] sm:$0xff]   ;;  %v7591_v20 = vld [vmem:[%s8474_s6 + $0x98] sm:$0xff]   ;;  %v7595_v24 = vld [vmem:[%s8474_s6 + $0x90] sm:$0xff]  }
  0x63   : > { %6782 = vmatpush3.bf16.msra.mxu1 %v7579_v8  ;;  %6761 = vmatprep.subr.bf16.mxu0 %v7580_v9  ;;  %v7596_v25 = vld [vmem:[%s8474_s6 + $0x48] sm:$0xff]   ;;  %v7600_v30 = vld [vmem:[%s8474_s6 + $0x40] sm:$0xff]   ;;  %v7605_v36 = vld [vmem:[%s8474_s6 + $0x178] sm:$0xff]  }
  0x64   : > { %6783 = vmatprep.subr.bf16.mxu1 %v7581_v10  ;;  %v7597_v26 = vld [vmem:[%s8474_s6 + $0xc8] sm:$0xff]   ;;  %v7601_v31 = vld [vmem:[%s8474_s6 + $0xc0] sm:$0xff]   ;;  %v7606_v39 = vld [vmem:[%s8474_s6 + $0x1f8] sm:$0xff]  }
  0x65   : > { %v7598_v27 = vld [vmem:[%s8474_s6 + $0x8] sm:$0xff]   ;;  %v7602_v32 = vld [vmem:[%s8474_s6] sm:$0xff]   ;;  %v7607_v47 = vld [vmem:[%s8474_s6 + $0x138] sm:$0xff]  }
  0x66   : > { %6762 = vmatpush3.bf16.msra.mxu0 %v7582_v11  ;;  %v7599_v28 = vld [vmem:[%s8474_s6 + $0x88] sm:$0xff]   ;;  %v7603_v33 = vld [vmem:[%s8474_s6 + $0x80] sm:$0xff]   ;;  %v7608_v50 = vld [vmem:[%s8474_s6 + $0x1b8] sm:$0xff]  }
  0x67   : > { %6784 = vmatpush3.bf16.msra.mxu1 %v7583_v12  ;;  %6763 = vmatprep.subr.bf16.mxu0 %v7584_v13  ;;  %v269_v35 = vld [vmem:[%s8494_s25] sm:$0xff]  ;;  %v7609_v53 = vld [vmem:[%s8474_s6 + $0x170] sm:$0xff]   ;;  %v7613_v57 = vld [vmem:[%s8474_s6 + $0x168] sm:$0xff]  }
  0x68   : > { %6785 = vmatprep.subr.bf16.mxu1 %v7585_v14  ;;  %v301_v41 = vcombine.high %v269_v35, %v269_v35  ;;  %v308_v43 = vrot.slane %v269_v35, %v8535_v42  ;;  %v7610_v54 = vld [vmem:[%s8474_s6 + $0x1f0] sm:$0xff]   ;;  %v7614_v58 = vld [vmem:[%s8474_s6 + $0x1e8] sm:$0xff]   ;;  %v7617_v61 = vld [vmem:[%s8474_s6 + $0x160] sm:$0xff]  }
  0x69   : > { %v7611_v55 = vld [vmem:[%s8474_s6 + $0x130] sm:$0xff]   ;;  %v7615_v59 = vld [vmem:[%s8474_s6 + $0x128] sm:$0xff]   ;;  %v7618_v62 = vld [vmem:[%s8474_s6 + $0x1e0] sm:$0xff]  }
  0x6a   : > { %6764 = vmatpush3.bf16.msra.mxu0 %v7586_v15  ;;  %v315_v44 = vrot.slane %v301_v41, %v8535_v42  ;;  %v316_v45 = vcombine.high %v308_v43, %v308_v43  ;;  %v637_v48 = vpack.c.bf16 %v308_v43, %v308_v43  ;;  %v7612_v56 = vld [vmem:[%s8474_s6 + $0x1b0] sm:$0xff]   ;;  %v7616_v60 = vld [vmem:[%s8474_s6 + $0x1a8] sm:$0xff]   ;;  %v7619_v63 = vld [vmem:[%s8474_s6 + $0x120] sm:$0xff]  }
  0x6b   : > { %6786 = vmatpush3.bf16.msra.mxu1 %v7587_v16  ;;  %6765 = vmatprep.subr.bf16.mxu0 %v7588_v17  ;;  %v7620_v0 = vld [vmem:[%s8474_s6 + $0x1a0] sm:$0xff]   ;;  %v7621_v1 = vld [vmem:[%s8474_s6 + $0x158] sm:$0xff]   ;;  %v7625_v5 = vld [vmem:[%s8474_s6 + $0x150] sm:$0xff]  }
  0x6c   : > { %6787 = vmatprep.subr.bf16.mxu1 %v7589_v18  ;;  %v317_v46 = vcombine.high %v315_v44, %v315_v44  ;;  %v639_v49 = vpack.c.bf16 %v315_v44, %v315_v44  ;;  %v638_v51 = vpack.c.bf16 %v316_v45, %v316_v45  ;;  %v7622_v2 = vld [vmem:[%s8474_s6 + $0x1d8] sm:$0xff]   ;;  %v7626_v6 = vld [vmem:[%s8474_s6 + $0x1d0] sm:$0xff]   ;;  %v7629_v9 = vld [vmem:[%s8474_s6 + $0x148] sm:$0xff]  }
  0x6d   : > { %v7623_v3 = vld [vmem:[%s8474_s6 + $0x118] sm:$0xff]   ;;  %v7627_v7 = vld [vmem:[%s8474_s6 + $0x110] sm:$0xff]   ;;  %v7630_v10 = vld [vmem:[%s8474_s6 + $0x1c8] sm:$0xff]  }
  0x6e   : > { %6766 = vmatpush3.bf16.msra.mxu0 %v7590_v19  ;;  %v640_v52 = vpack.c.bf16 %v317_v46, %v317_v46  ;;  %4829 = vmatprep.mubr.bf16.mxu0 %v638_v51  ;;  %v7624_v4 = vld [vmem:[%s8474_s6 + $0x198] sm:$0xff]   ;;  %v7628_v8 = vld [vmem:[%s8474_s6 + $0x190] sm:$0xff]   ;;  %v270_v11 = vld [vmem:[%s8494_s25 + $0x8] sm:$0xff] }
  0x6f   : > { %6788 = vmatpush3.bf16.msra.mxu1 %v7591_v20  ;;  %6767 = vmatprep.subr.bf16.mxu0 %v7592_v21  ;;  %v7631_v12 = vld [vmem:[%s8474_s6 + $0x108] sm:$0xff]   ;;  %v325_v13 = vrot.slane %v270_v11, %v8535_v42  ;;  %v318_v14 = vcombine.high %v270_v11, %v270_v11  ;;  %v7633_v16 = vld [vmem:[%s8474_s6 + $0x140] sm:$0xff]   ;;  %v7645_v34 = vld [vmem:[%s8474_s6 + $0x2b0] sm:$0xff]  }
  0x70   : > { %6789 = vmatprep.subr.bf16.mxu1 %v7593_v22  ;;  %4869 = vmatprep.mubr.bf16.mxu1 %v640_v52  ;;  %v7632_v15 = vld [vmem:[%s8474_s6 + $0x188] sm:$0xff]   ;;  %v7634_v19 = vld [vmem:[%s8474_s6 + $0x1c0] sm:$0xff]   ;;  %v7654_v44 = vld [vmem:[%s8474_s6 + $0x258] sm:$0xff]  }
  0x71   : > { %v333_v17 = vcombine.high %v325_v13, %v325_v13  ;;  %v332_v18 = vrot.slane %v318_v14, %v8535_v42  ;;  %v7635_v20 = vld [vmem:[%s8474_s6 + $0x100] sm:$0xff]   ;;  %v7646_v35 = vld [vmem:[%s8474_s6 + $0x268] sm:$0xff]   ;;  %v7655_v45 = vld [vmem:[%s8474_s6 + $0x2d8] sm:$0xff]  }
  0x72   : > { %6768 = vmatpush3.bf16.msra.mxu0 %v7594_v23  ;;  %v7636_v23 = vld [vmem:[%s8474_s6 + $0x180] sm:$0xff]   ;;  %v7648_v37 = vld [vmem:[%s8474_s6 + $0x228] sm:$0xff]   ;;  %v7656_v46 = vld [vmem:[%s8474_s6 + $0x218] sm:$0xff]  }
  0x73   : > { %6790 = vmatpush3.bf16.msra.mxu1 %v7595_v24  ;;  %6769 = vmatprep.subr.bf16.mxu0 %v7596_v25  ;;  %v642_v21 = vpack.c.bf16 %v333_v17, %v333_v17  ;;  %v334_v22 = vcombine.high %v332_v18, %v332_v18  ;;  %v7638_v25 = vld [vmem:[%s8474_s6 + $0x278] sm:$0xff]   ;;  %v643_v29 = vpack.c.bf16 %v332_v18, %v332_v18  ;;  %v7649_v38 = vld [vmem:[%s8474_s6 + $0x2a8] sm:$0xff]   ;;  %v7651_v40 = vld [vmem:[%s8474_s6 + $0x2e0] sm:$0xff]  }
  0x74   : > { %6791 = vmatprep.subr.bf16.mxu1 %v7597_v26  ;;  %v7639_v26 = vld [vmem:[%s8474_s6 + $0x2f8] sm:$0xff]   ;;  %v7652_v41 = vld [vmem:[%s8474_s6 + $0x220] sm:$0xff]   ;;  %v7661_v51 = vld [vmem:[%s8474_s6 + $0x290] sm:$0xff]  }
  0x75   : > { %v644_v24 = vpack.c.bf16 %v334_v22, %v334_v22  ;;  %v7653_v43 = vld [vmem:[%s8474_s6 + $0x2a0] sm:$0xff]   ;;  %v7662_v52 = vld [vmem:[%s8474_s6 + $0x248] sm:$0xff]   ;;  %v7676_v11 = vld [vmem:[%s8474_s6 + $0x3f0] sm:$0xff]  }
  0x76   : > { %6770 = vmatpush3.bf16.msra.mxu0 %v7598_v27  ;;  %v7640_v27 = vld [vmem:[%s8474_s6 + $0x238] sm:$0xff]   ;;  %v7679_v14 = vld [vmem:[%s8474_s6 + $0x368] sm:$0xff]   ;;  %v7683_v18 = vld [vmem:[%s8474_s6 + $0x360] sm:$0xff]  }
  0x77   : > { %6792 = vmatpush3.bf16.msra.mxu1 %v7599_v28  ;;  %6771 = vmatprep.subr.bf16.mxu0 %v7600_v30  ;;  %v641_v28 = vpack.c.bf16 %v325_v13, %v325_v13  ;;  %v7641_v30 = vld [vmem:[%s8474_s6 + $0x2b8] sm:$0xff]   ;;  %v7678_v13 = vld [vmem:[%s8474_s6 + $0x3b0] sm:$0xff]   ;;  %v7682_v17 = vld [vmem:[%s8474_s6 + $0x3a8] sm:$0xff]  }
  0x78   : > { %6793 = vmatprep.subr.bf16.mxu1 %v7601_v31  ;;  %v7642_v31 = vld [vmem:[%s8474_s6 + $0x270] sm:$0xff]   ;;  %v7687_v22 = vld [vmem:[%s8474_s6 + $0x358] sm:$0xff]  }
  0x7a   : > { %6772 = vmatpush3.bf16.msra.mxu0 %v7602_v32  ;;  %v7643_v32 = vld [vmem:[%s8474_s6 + $0x2f0] sm:$0xff]  }
  0x7b   : > { %6794 = vmatpush3.bf16.msra.mxu1 %v7603_v33  ;;  %6801 = vmatprep.subr.bf16.mxu0 %v7605_v36  ;;  %v7644_v33 = vld [vmem:[%s8474_s6 + $0x230] sm:$0xff]   ;;  %v7647_v36 = vld [vmem:[%s8474_s6 + $0x2e8] sm:$0xff]  }
  0x7c   : > { %6823 = vmatprep.subr.bf16.mxu1 %v7606_v39  ;;  %v7650_v39 = vld [vmem:[%s8474_s6 + $0x260] sm:$0xff]  }
  0x7d   : > { %4830 = vmatmul.mubr.bf16.vlgmr.msra.gmra.mxu0 %v637_v48  ;;  %v7658_v48 = vld [vmem:[%s8474_s6 + $0x250] sm:$0xff]  }
  0x7e   : > { %4870 = vmatmul.mubr.bf16.vlgmr.msra.gmra.mxu1 %v639_v49  ;;  %6802 = vmatpush3.bf16.msra.mxu0 %v7607_v47  ;;  %v7657_v47 = vld [vmem:[%s8474_s6 + $0x298] sm:$0xff]   ;;  %v7659_v49 = vld [vmem:[%s8474_s6 + $0x2d0] sm:$0xff]  }
  0x7f   : > { %6824 = vmatpush3.bf16.msra.mxu1 %v7608_v50  ;;  %6803 = vmatprep.subr.bf16.mxu0 %v7609_v53  ;;  %v7660_v50 = vld [vmem:[%s8474_s6 + $0x210] sm:$0xff]   ;;  %v7663_v53 = vld [vmem:[%s8474_s6 + $0x2c8] sm:$0xff]  }
  0x80   : > { %6825 = vmatprep.subr.bf16.mxu1 %v7610_v54  ;;  %4909 = vmatprep.mubr.bf16.mxu0 %v642_v21  ;;  %v271_v54 = vld [vmem:[%s8494_s25 + $0x10] sm:$0xff]  ;;  %v7686_v21 = vld [vmem:[%s8474_s6 + $0x3a0] sm:$0xff]  }
  0x81   : > { %4949 = vmatprep.mubr.bf16.mxu1 %v644_v24  ;;  %v7689_v24 = vld [vmem:[%s8474_s6 + $0x318] sm:$0xff]  }
  0x82   : > { %6804 = vmatpush3.bf16.msra.mxu0 %v7611_v55  ;;  %v7664_v55 = vld [vmem:[%s8474_s6 + $0x208] sm:$0xff]  }
  0x83   : > { %6826 = vmatpush3.bf16.msra.mxu1 %v7612_v56  ;;  %6805 = vmatprep.subr.bf16.mxu0 %v7613_v57  ;;  %v342_v56 = vrot.slane %v271_v54, %v8535_v42  ;;  %v335_v57 = vcombine.high %v271_v54, %v271_v54  ;;  %v7709_v54 = vld [vmem:[%s8474_s6 + $0x4f0] sm:$0xff]  }
  0x84   : > { %6827 = vmatprep.subr.bf16.mxu1 %v7614_v58  ;;  %v7665_v58 = vld [vmem:[%s8474_s6 + $0x288] sm:$0xff]  }
  0x86   : > { %6806 = vmatpush3.bf16.msra.mxu0 %v7615_v59  ;;  %v7666_v59 = vld [vmem:[%s8474_s6 + $0x240] sm:$0xff]  }
  0x87   : > { %6828 = vmatpush3.bf16.msra.mxu1 %v7616_v60  ;;  %6807 = vmatprep.subr.bf16.mxu0 %v7617_v61  ;;  %v350_v60 = vcombine.high %v342_v56, %v342_v56  ;;  %v349_v61 = vrot.slane %v335_v57, %v8535_v42  ;;  %v7712_v57 = vld [vmem:[%s8474_s6 + $0x468] sm:$0xff]  }
  0x88   : > { %6829 = vmatprep.subr.bf16.mxu1 %v7618_v62  ;;  %v7667_v62 = vld [vmem:[%s8474_s6 + $0x2c0] sm:$0xff]  }
  0x8a   : > { %6808 = vmatpush3.bf16.msra.mxu0 %v7619_v63  ;;  %v7668_v63 = vld [vmem:[%s8474_s6 + $0x200] sm:$0xff]  }
  0x8b   : > { %6830 = vmatpush3.bf16.msra.mxu1 %v7620_v0  ;;  %6809 = vmatprep.subr.bf16.mxu0 %v7621_v1  ;;  %v646_v0 = vpack.c.bf16 %v350_v60, %v350_v60  ;;  %v351_v1 = vcombine.high %v349_v61, %v349_v61  ;;  %v7715_v60 = vld [vmem:[%s8474_s6 + $0x4a8] sm:$0xff]  }
  0x8c   : > { %6831 = vmatprep.subr.bf16.mxu1 %v7622_v2  ;;  %v7669_v2 = vld [vmem:[%s8474_s6 + $0x280] sm:$0xff]  }
  0x8e   : > { %6810 = vmatpush3.bf16.msra.mxu0 %v7623_v3  ;;  %v648_v3 = vpack.c.bf16 %v351_v1, %v351_v1  ;;  %v7720_v1 = vld [vmem:[%s8474_s6 + $0x458] sm:$0xff]  }
  0x8f   : > { %6832 = vmatpush3.bf16.msra.mxu1 %v7624_v4  ;;  %6811 = vmatprep.subr.bf16.mxu0 %v7625_v5  ;;  %v7671_v4 = vld [vmem:[%s8474_s6 + $0x378] sm:$0xff]  }
  0x90   : > { %6833 = vmatprep.subr.bf16.mxu1 %v7626_v6  ;;  %v7672_v5 = vld [vmem:[%s8474_s6 + $0x3f8] sm:$0xff]  }
  0x91   : > { %v7673_v6 = vld [vmem:[%s8474_s6 + $0x338] sm:$0xff]  }
  0x92   : > { %6812 = vmatpush3.bf16.msra.mxu0 %v7627_v7  ;;  %v645_v7 = vpack.c.bf16 %v342_v56, %v342_v56  ;;  %v7711_v56 = vld [vmem:[%s8474_s6 + $0x4b0] sm:$0xff]  }
  0x93   : > { %6834 = vmatpush3.bf16.msra.mxu1 %v7628_v8  ;;  %6813 = vmatprep.subr.bf16.mxu0 %v7629_v9  ;;  %v647_v8 = vpack.c.bf16 %v349_v61, %v349_v61  ;;  %v7674_v9 = vld [vmem:[%s8474_s6 + $0x3b8] sm:$0xff]   ;;  %v7716_v61 = vld [vmem:[%s8474_s6 + $0x460] sm:$0xff]  }
  0x94   : > { %6835 = vmatprep.subr.bf16.mxu1 %v7630_v10  ;;  %v7675_v10 = vld [vmem:[%s8474_s6 + $0x370] sm:$0xff]  }
  0x96   : > { %6814 = vmatpush3.bf16.msra.mxu0 %v7631_v12  ;;  %v7677_v12 = vld [vmem:[%s8474_s6 + $0x330] sm:$0xff]  }
  0x97   : > { %6836 = vmatpush3.bf16.msra.mxu1 %v7632_v15  ;;  %6815 = vmatprep.subr.bf16.mxu0 %v7633_v16  ;;  %v7680_v15 = vld [vmem:[%s8474_s6 + $0x3e8] sm:$0xff]  }
  0x98   : > { %6837 = vmatprep.subr.bf16.mxu1 %v7634_v19  ;;  %v7681_v16 = vld [vmem:[%s8474_s6 + $0x328] sm:$0xff]   ;;  %v7684_v19 = vld [vmem:[%s8474_s6 + $0x3e0] sm:$0xff]  }
  0x9a   : > { %6816 = vmatpush3.bf16.msra.mxu0 %v7635_v20  ;;  %v7685_v20 = vld [vmem:[%s8474_s6 + $0x320] sm:$0xff]  }
  0x9b   : > { %6838 = vmatpush3.bf16.msra.mxu1 %v7636_v23  ;;  %6845 = vmatprep.subr.bf16.mxu0 %v7638_v25  ;;  %v7688_v23 = vld [vmem:[%s8474_s6 + $0x3d8] sm:$0xff]  }
  0x9c   : > { %6867 = vmatprep.subr.bf16.mxu1 %v7639_v26  ;;  %v7690_v25 = vld [vmem:[%s8474_s6 + $0x398] sm:$0xff]   ;;  %v7691_v26 = vld [vmem:[%s8474_s6 + $0x350] sm:$0xff]  }
  0x9d   : > { %4910 = vmatmul.mubr.bf16.vlgmr.msra.gmra.mxu0 %v641_v28  ;;  %v7693_v28 = vld [vmem:[%s8474_s6 + $0x310] sm:$0xff]  }
  0x9e   : > { %4950 = vmatmul.mubr.bf16.vlgmr.msra.gmra.mxu1 %v643_v29  ;;  %6846 = vmatpush3.bf16.msra.mxu0 %v7640_v27  ;;  %v7692_v27 = vld [vmem:[%s8474_s6 + $0x3d0] sm:$0xff]  }
  0x9f   : > { %6868 = vmatpush3.bf16.msra.mxu1 %v7641_v30  ;;  %6847 = vmatprep.subr.bf16.mxu0 %v7642_v31  ;;  %v7694_v29 = vld [vmem:[%s8474_s6 + $0x390] sm:$0xff]   ;;  %v7695_v30 = vld [vmem:[%s8474_s6 + $0x348] sm:$0xff]  }
  0xa0   : > { %6869 = vmatprep.subr.bf16.mxu1 %v7643_v32  ;;  %4989 = vmatprep.mubr.bf16.mxu0 %v646_v0  ;;  %v7696_v31 = vld [vmem:[%s8474_s6 + $0x3c8] sm:$0xff]   ;;  %v7719_v0 = vld [vmem:[%s8474_s6 + $0x4a0] sm:$0xff]  }
  0xa1   : > { %5029 = vmatprep.mubr.bf16.mxu1 %v648_v3  ;;  %v7697_v32 = vld [vmem:[%s8474_s6 + $0x308] sm:$0xff]   ;;  %v7722_v3 = vld [vmem:[%s8474_s6 + $0x418] sm:$0xff]  }
  0xa2   : > { %6848 = vmatpush3.bf16.msra.mxu0 %v7644_v33  ;;  %v272_v33 = vld [vmem:[%s8494_s25 + $0x18] sm:$0xff] }
  0xa3   : > { %6870 = vmatpush3.bf16.msra.mxu1 %v7645_v34  ;;  %6849 = vmatprep.subr.bf16.mxu0 %v7646_v35  ;;  %v7698_v34 = vld [vmem:[%s8474_s6 + $0x388] sm:$0xff]   ;;  %v359_v35 = vrot.slane %v272_v33, %v8535_v42 }
  0xa4   : > { %6871 = vmatprep.subr.bf16.mxu1 %v7647_v36  ;;  %v352_v36 = vcombine.high %v272_v33, %v272_v33  ;;  %v7743_v33 = vld [vmem:[%s8474_s6 + $0x530] sm:$0xff]  }
  0xa6   : > { %6850 = vmatpush3.bf16.msra.mxu0 %v7648_v37  ;;  %v7699_v37 = vld [vmem:[%s8474_s6 + $0x340] sm:$0xff]  }
  0xa7   : > { %6872 = vmatpush3.bf16.msra.mxu1 %v7649_v38  ;;  %6851 = vmatprep.subr.bf16.mxu0 %v7650_v39  ;;  %v7700_v38 = vld [vmem:[%s8474_s6 + $0x3c0] sm:$0xff]   ;;  %v367_v39 = vcombine.high %v359_v35, %v359_v35 }
  0xa8   : > { %6873 = vmatprep.subr.bf16.mxu1 %v7651_v40  ;;  %v366_v40 = vrot.slane %v352_v36, %v8535_v42  ;;  %v7746_v36 = vld [vmem:[%s8474_s6 + $0x5e8] sm:$0xff]  }
  0xaa   : > { %6852 = vmatpush3.bf16.msra.mxu0 %v7652_v41  ;;  %v7701_v41 = vld [vmem:[%s8474_s6 + $0x300] sm:$0xff]  }
  0xab   : > { %6874 = vmatpush3.bf16.msra.mxu1 %v7653_v43  ;;  %6853 = vmatprep.subr.bf16.mxu0 %v7654_v44  ;;  %v7702_v43 = vld [vmem:[%s8474_s6 + $0x380] sm:$0xff]   ;;  %v650_v44 = vpack.c.bf16 %v367_v39, %v367_v39 }
  0xac   : > { %6875 = vmatprep.subr.bf16.mxu1 %v7655_v45  ;;  %v368_v45 = vcombine.high %v366_v40, %v366_v40  ;;  %v7749_v39 = vld [vmem:[%s8474_s6 + $0x560] sm:$0xff]  }
  0xae   : > { %6854 = vmatpush3.bf16.msra.mxu0 %v7656_v46  ;;  %v7704_v46 = vld [vmem:[%s8474_s6 + $0x478] sm:$0xff]  }
  0xaf   : > { %6876 = vmatpush3.bf16.msra.mxu1 %v7657_v47  ;;  %6855 = vmatprep.subr.bf16.mxu0 %v7658_v48  ;;  %v652_v47 = vpack.c.bf16 %v368_v45, %v368_v45  ;;  %v7705_v48 = vld [vmem:[%s8474_s6 + $0x4f8] sm:$0xff]  }
  0xb0   : > { %6877 = vmatprep.subr.bf16.mxu1 %v7659_v49  ;;  %v7706_v49 = vld [vmem:[%s8474_s6 + $0x438] sm:$0xff]  }
  0xb1   : > { %v7754_v45 = vld [vmem:[%s8474_s6 + $0x5d8] sm:$0xff]  }
  0xb2   : > { %6856 = vmatpush3.bf16.msra.mxu0 %v7660_v50  ;;  %v649_v50 = vpack.c.bf16 %v359_v35, %v359_v35  ;;  %v7745_v35 = vld [vmem:[%s8474_s6 + $0x568] sm:$0xff]  }
  0xb3   : > { %6878 = vmatpush3.bf16.msra.mxu1 %v7661_v51  ;;  %6857 = vmatprep.subr.bf16.mxu0 %v7662_v52  ;;  %v651_v51 = vpack.c.bf16 %v366_v40, %v366_v40  ;;  %v7707_v52 = vld [vmem:[%s8474_s6 + $0x4b8] sm:$0xff]   ;;  %v7750_v40 = vld [vmem:[%s8474_s6 + $0x5e0] sm:$0xff]  }
  0xb4   : > { %6879 = vmatprep.subr.bf16.mxu1 %v7663_v53  ;;  %v7708_v53 = vld [vmem:[%s8474_s6 + $0x470] sm:$0xff]  }
  0xb6   : > { %6858 = vmatpush3.bf16.msra.mxu0 %v7664_v55  ;;  %v7710_v55 = vld [vmem:[%s8474_s6 + $0x430] sm:$0xff]  }
  0xb7   : > { %6880 = vmatpush3.bf16.msra.mxu1 %v7665_v58  ;;  %6859 = vmatprep.subr.bf16.mxu0 %v7666_v59  ;;  %v7713_v58 = vld [vmem:[%s8474_s6 + $0x4e8] sm:$0xff]  }
  0xb8   : > { %6881 = vmatprep.subr.bf16.mxu1 %v7667_v62  ;;  %v7714_v59 = vld [vmem:[%s8474_s6 + $0x428] sm:$0xff]   ;;  %v7717_v62 = vld [vmem:[%s8474_s6 + $0x4e0] sm:$0xff]  }
  0xba   : > { %6860 = vmatpush3.bf16.msra.mxu0 %v7668_v63  ;;  %v7718_v63 = vld [vmem:[%s8474_s6 + $0x420] sm:$0xff]  }
  0xbb   : > { %6882 = vmatpush3.bf16.msra.mxu1 %v7669_v2  ;;  %6889 = vmatprep.subr.bf16.mxu0 %v7671_v4  ;;  %v7721_v2 = vld [vmem:[%s8474_s6 + $0x4d8] sm:$0xff]  }
  0xbc   : > { %6911 = vmatprep.subr.bf16.mxu1 %v7672_v5  ;;  %v7723_v4 = vld [vmem:[%s8474_s6 + $0x498] sm:$0xff]   ;;  %v7724_v5 = vld [vmem:[%s8474_s6 + $0x450] sm:$0xff]  }
  0xbd   : > { %4990 = vmatmul.mubr.bf16.vlgmr.msra.gmra.mxu0 %v645_v7  ;;  %v7726_v7 = vld [vmem:[%s8474_s6 + $0x410] sm:$0xff]  }
  0xbe   : > { %5030 = vmatmul.mubr.bf16.vlgmr.msra.gmra.mxu1 %v647_v8  ;;  %6890 = vmatpush3.bf16.msra.mxu0 %v7673_v6  ;;  %v7725_v6 = vld [vmem:[%s8474_s6 + $0x4d0] sm:$0xff]  }
  0xbf   : > { %6912 = vmatpush3.bf16.msra.mxu1 %v7674_v9  ;;  %6891 = vmatprep.subr.bf16.mxu0 %v7675_v10  ;;  %v7727_v8 = vld [vmem:[%s8474_s6 + $0x490] sm:$0xff]   ;;  %v7728_v9 = vld [vmem:[%s8474_s6 + $0x448] sm:$0xff]  }
  0xc0   : > { %6913 = vmatprep.subr.bf16.mxu1 %v7676_v11  ;;  %5069 = vmatprep.mubr.bf16.mxu0 %v650_v44  ;;  %v7729_v10 = vld [vmem:[%s8474_s6 + $0x4c8] sm:$0xff]   ;;  %v7753_v44 = vld [vmem:[%s8474_s6 + $0x558] sm:$0xff]  }
  0xc1   : > { %5109 = vmatprep.mubr.bf16.mxu1 %v652_v47  ;;  %v7730_v11 = vld [vmem:[%s8474_s6 + $0x408] sm:$0xff]   ;;  %v7756_v47 = vld [vmem:[%s8474_s6 + $0x598] sm:$0xff]  }
  0xc2   : > { %6892 = vmatpush3.bf16.msra.mxu0 %v7677_v12  ;;  %v273_v12 = vld [vmem:[%s8494_s25 + $0x20] sm:$0xff] }
  0xc3   : > { %6914 = vmatpush3.bf16.msra.mxu1 %v7678_v13  ;;  %6893 = vmatprep.subr.bf16.mxu0 %v7679_v14  ;;  %v7731_v13 = vld [vmem:[%s8474_s6 + $0x488] sm:$0xff]   ;;  %v376_v14 = vrot.slane %v273_v12, %v8535_v42 }
  0xc4   : > { %6915 = vmatprep.subr.bf16.mxu1 %v7680_v15  ;;  %v369_v15 = vcombine.high %v273_v12, %v273_v12  ;;  %v7776_v12 = vld [vmem:[%s8474_s6 + $0x630] sm:$0xff]  }
  0xc6   : > { %6894 = vmatpush3.bf16.msra.mxu0 %v7681_v16  ;;  %v7732_v16 = vld [vmem:[%s8474_s6 + $0x440] sm:$0xff]  }
  0xc7   : > { %6916 = vmatpush3.bf16.msra.mxu1 %v7682_v17  ;;  %6895 = vmatprep.subr.bf16.mxu0 %v7683_v18  ;;  %v7733_v17 = vld [vmem:[%s8474_s6 + $0x4c0] sm:$0xff]   ;;  %v384_v18 = vcombine.high %v376_v14, %v376_v14 }
  0xc8   : > { %6917 = vmatprep.subr.bf16.mxu1 %v7684_v19  ;;  %v383_v19 = vrot.slane %v369_v15, %v8535_v42  ;;  %v7779_v15 = vld [vmem:[%s8474_s6 + $0x6e8] sm:$0xff]  }
  0xca   : > { %6896 = vmatpush3.bf16.msra.mxu0 %v7685_v20  ;;  %v7734_v20 = vld [vmem:[%s8474_s6 + $0x400] sm:$0xff]  }
  0xcb   : > { %6918 = vmatpush3.bf16.msra.mxu1 %v7686_v21  ;;  %6897 = vmatprep.subr.bf16.mxu0 %v7687_v22  ;;  %v7735_v21 = vld [vmem:[%s8474_s6 + $0x480] sm:$0xff]   ;;  %v654_v22 = vpack.c.bf16 %v384_v18, %v384_v18 }
  0xcc   : > { %6919 = vmatprep.subr.bf16.mxu1 %v7688_v23  ;;  %v385_v23 = vcombine.high %v383_v19, %v383_v19  ;;  %v7782_v18 = vld [vmem:[%s8474_s6 + $0x660] sm:$0xff]  }
  0xce   : > { %6898 = vmatpush3.bf16.msra.mxu0 %v7689_v24  ;;  %v7737_v24 = vld [vmem:[%s8474_s6 + $0x578] sm:$0xff]  }
  0xcf   : > { %6920 = vmatpush3.bf16.msra.mxu1 %v7690_v25  ;;  %6899 = vmatprep.subr.bf16.mxu0 %v7691_v26  ;;  %v656_v25 = vpack.c.bf16 %v385_v23, %v385_v23  ;;  %v7738_v26 = vld [vmem:[%s8474_s6 + $0x5f8] sm:$0xff]  }
  0xd0   : > { %6921 = vmatprep.subr.bf16.mxu1 %v7692_v27  ;;  %v7739_v27 = vld [vmem:[%s8474_s6 + $0x538] sm:$0xff]  }
  0xd1   : > { %v7787_v23 = vld [vmem:[%s8474_s6 + $0x6d8] sm:$0xff]  }
  0xd2   : > { %6900 = vmatpush3.bf16.msra.mxu0 %v7693_v28  ;;  %v653_v28 = vpack.c.bf16 %v376_v14, %v376_v14  ;;  %v7778_v14 = vld [vmem:[%s8474_s6 + $0x668] sm:$0xff]  }
  0xd3   : > { %6922 = vmatpush3.bf16.msra.mxu1 %v7694_v29  ;;  %6901 = vmatprep.subr.bf16.mxu0 %v7695_v30  ;;  %v655_v29 = vpack.c.bf16 %v383_v19, %v383_v19  ;;  %v7740_v30 = vld [vmem:[%s8474_s6 + $0x5b8] sm:$0xff]   ;;  %v7783_v19 = vld [vmem:[%s8474_s6 + $0x6e0] sm:$0xff]  }
  0xd4   : > { %6923 = vmatprep.subr.bf16.mxu1 %v7696_v31  ;;  %v7741_v31 = vld [vmem:[%s8474_s6 + $0x570] sm:$0xff]  }
  0xd6   : > { %6902 = vmatpush3.bf16.msra.mxu0 %v7697_v32  ;;  %v7742_v32 = vld [vmem:[%s8474_s6 + $0x5f0] sm:$0xff]  }
  0xd7   : > { %6924 = vmatpush3.bf16.msra.mxu1 %v7698_v34  ;;  %6903 = vmatprep.subr.bf16.mxu0 %v7699_v37  ;;  %v7744_v34 = vld [vmem:[%s8474_s6 + $0x5b0] sm:$0xff]   ;;  %v7747_v37 = vld [vmem:[%s8474_s6 + $0x528] sm:$0xff]  }
  0xd8   : > { %6925 = vmatprep.subr.bf16.mxu1 %v7700_v38  ;;  %v7748_v38 = vld [vmem:[%s8474_s6 + $0x5a8] sm:$0xff]  }
  0xda   : > { %6904 = vmatpush3.bf16.msra.mxu0 %v7701_v41  ;;  %v7751_v41 = vld [vmem:[%s8474_s6 + $0x520] sm:$0xff]  }
  0xdb   : > { %6926 = vmatpush3.bf16.msra.mxu1 %v7702_v43  ;;  %6933 = vmatprep.subr.bf16.mxu0 %v7704_v46  ;;  %v7752_v43 = vld [vmem:[%s8474_s6 + $0x5a0] sm:$0xff]   ;;  %v7755_v46 = vld [vmem:[%s8474_s6 + $0x518] sm:$0xff]  }
  0xdc   : > { %6955 = vmatprep.subr.bf16.mxu1 %v7705_v48  ;;  %v7757_v48 = vld [vmem:[%s8474_s6 + $0x550] sm:$0xff]  }
  0xdd   : > { %5070 = vmatmul.mubr.bf16.vlgmr.msra.gmra.mxu0 %v649_v50  ;;  %v7759_v50 = vld [vmem:[%s8474_s6 + $0x510] sm:$0xff]  }
  0xde   : > { %5110 = vmatmul.mubr.bf16.vlgmr.msra.gmra.mxu1 %v651_v51  ;;  %6934 = vmatpush3.bf16.msra.mxu0 %v7706_v49  ;;  %v7758_v49 = vld [vmem:[%s8474_s6 + $0x5d0] sm:$0xff]  }
  0xdf   : > { %6956 = vmatpush3.bf16.msra.mxu1 %v7707_v52  ;;  %6935 = vmatprep.subr.bf16.mxu0 %v7708_v53  ;;  %v7760_v51 = vld [vmem:[%s8474_s6 + $0x590] sm:$0xff]   ;;  %v7761_v52 = vld [vmem:[%s8474_s6 + $0x548] sm:$0xff]  }
  0xe0   : > { %6957 = vmatprep.subr.bf16.mxu1 %v7709_v54  ;;  %5149 = vmatprep.mubr.bf16.mxu0 %v654_v22  ;;  %v7762_v53 = vld [vmem:[%s8474_s6 + $0x5c8] sm:$0xff]   ;;  %v7786_v22 = vld [vmem:[%s8474_s6 + $0x658] sm:$0xff]  }
  0xe1   : > { %5189 = vmatprep.mubr.bf16.mxu1 %v656_v25  ;;  %v7763_v54 = vld [vmem:[%s8474_s6 + $0x508] sm:$0xff]   ;;  %v7789_v25 = vld [vmem:[%s8474_s6 + $0x698] sm:$0xff]  }
  0xe2   : > { %6936 = vmatpush3.bf16.msra.mxu0 %v7710_v55  ;;  %v274_v55 = vld [vmem:[%s8494_s25 + $0x28] sm:$0xff] }
  0xe3   : > { %6958 = vmatpush3.bf16.msra.mxu1 %v7711_v56  ;;  %6937 = vmatprep.subr.bf16.mxu0 %v7712_v57  ;;  %v7764_v56 = vld [vmem:[%s8474_s6 + $0x588] sm:$0xff]   ;;  %v393_v57 = vrot.slane %v274_v55, %v8535_v42 }
  0xe4   : > { %6959 = vmatprep.subr.bf16.mxu1 %v7713_v58  ;;  %v386_v58 = vcombine.high %v274_v55, %v274_v55  ;;  %v7809_v55 = vld [vmem:[%s8474_s6 + $0x730] sm:$0xff]  }
  0xe6   : > { %6938 = vmatpush3.bf16.msra.mxu0 %v7714_v59  ;;  %v7765_v59 = vld [vmem:[%s8474_s6 + $0x540] sm:$0xff]  }
  0xe7   : > { %6960 = vmatpush3.bf16.msra.mxu1 %v7715_v60  ;;  %6939 = vmatprep.subr.bf16.mxu0 %v7716_v61  ;;  %v7766_v60 = vld [vmem:[%s8474_s6 + $0x5c0] sm:$0xff]   ;;  %v401_v61 = vcombine.high %v393_v57, %v393_v57 }
  0xe8   : > { %6961 = vmatprep.subr.bf16.mxu1 %v7717_v62  ;;  %v400_v62 = vrot.slane %v386_v58, %v8535_v42  ;;  %v7810_v58 = vld [vmem:[%s8474_s6 + $0x7b0] sm:$0xff]  }
  0xea   : > { %6940 = vmatpush3.bf16.msra.mxu0 %v7718_v63  ;;  %v7767_v63 = vld [vmem:[%s8474_s6 + $0x500] sm:$0xff]  }
  0xeb   : > { %6962 = vmatpush3.bf16.msra.mxu1 %v7719_v0  ;;  %6941 = vmatprep.subr.bf16.mxu0 %v7720_v1  ;;  %v7768_v0 = vld [vmem:[%s8474_s6 + $0x580] sm:$0xff]   ;;  %v658_v1 = vpack.c.bf16 %v401_v61, %v401_v61 }
  0xec   : > { %6963 = vmatprep.subr.bf16.mxu1 %v7721_v2  ;;  %v402_v2 = vcombine.high %v400_v62, %v400_v62 }
  0xee   : > { %6942 = vmatpush3.bf16.msra.mxu0 %v7722_v3  ;;  %v7770_v3 = vld [vmem:[%s8474_s6 + $0x678] sm:$0xff]  }
  0xef   : > { %6964 = vmatpush3.bf16.msra.mxu1 %v7723_v4  ;;  %6943 = vmatprep.subr.bf16.mxu0 %v7724_v5  ;;  %v660_v4 = vpack.c.bf16 %v402_v2, %v402_v2  ;;  %v7771_v5 = vld [vmem:[%s8474_s6 + $0x6f8] sm:$0xff]  }
  0xf0   : > { %6965 = vmatprep.subr.bf16.mxu1 %v7725_v6  ;;  %v7772_v6 = vld [vmem:[%s8474_s6 + $0x638] sm:$0xff]  }
  0xf2   : > { %6944 = vmatpush3.bf16.msra.mxu0 %v7726_v7  ;;  %v657_v7 = vpack.c.bf16 %v393_v57, %v393_v57 }
  0xf3   : > { %6966 = vmatpush3.bf16.msra.mxu1 %v7727_v8  ;;  %6945 = vmatprep.subr.bf16.mxu0 %v7728_v9  ;;  %v659_v8 = vpack.c.bf16 %v400_v62, %v400_v62  ;;  %v7773_v9 = vld [vmem:[%s8474_s6 + $0x6b8] sm:$0xff]   ;;  %v7812_v62 = vld [vmem:[%s8474_s6 + $0x7e8] sm:$0xff]  }
  0xf4   : > { %6967 = vmatprep.subr.bf16.mxu1 %v7729_v10  ;;  %v7774_v10 = vld [vmem:[%s8474_s6 + $0x670] sm:$0xff]  }
  0xf6   : > { %6946 = vmatpush3.bf16.msra.mxu0 %v7730_v11  ;;  %v7775_v11 = vld [vmem:[%s8474_s6 + $0x6f0] sm:$0xff]  }
  0xf7   : > { %6968 = vmatpush3.bf16.msra.mxu1 %v7731_v13  ;;  %6947 = vmatprep.subr.bf16.mxu0 %v7732_v16  ;;  %v7777_v13 = vld [vmem:[%s8474_s6 + $0x6b0] sm:$0xff]   ;;  %v7780_v16 = vld [vmem:[%s8474_s6 + $0x628] sm:$0xff]  }
  0xf8   : > { %6969 = vmatprep.subr.bf16.mxu1 %v7733_v17  ;;  %v7781_v17 = vld [vmem:[%s8474_s6 + $0x6a8] sm:$0xff]  }
  0xfa   : > { %6948 = vmatpush3.bf16.msra.mxu0 %v7734_v20  ;;  %v7784_v20 = vld [vmem:[%s8474_s6 + $0x620] sm:$0xff]  }
  0xfb   : > { %6970 = vmatpush3.bf16.msra.mxu1 %v7735_v21  ;;  %6977 = vmatprep.subr.bf16.mxu0 %v7737_v24  ;;  %v7785_v21 = vld [vmem:[%s8474_s6 + $0x6a0] sm:$0xff]   ;;  %v7788_v24 = vld [vmem:[%s8474_s6 + $0x618] sm:$0xff]  }
  0xfc   : > { %6999 = vmatprep.subr.bf16.mxu1 %v7738_v26  ;;  %v7790_v26 = vld [vmem:[%s8474_s6 + $0x650] sm:$0xff]  }
  0xfd   : > { %5150 = vmatmul.mubr.bf16.vlgmr.msra.gmra.mxu0 %v653_v28  ;;  %v7792_v28 = vld [vmem:[%s8474_s6 + $0x610] sm:$0xff]  }
  0xfe   : > { %5190 = vmatmul.mubr.bf16.vlgmr.msra.gmra.mxu1 %v655_v29  ;;  %6978 = vmatpush3.bf16.msra.mxu0 %v7739_v27  ;;  %v7791_v27 = vld [vmem:[%s8474_s6 + $0x6d0] sm:$0xff]  }
  0xff   : > { %7000 = vmatpush3.bf16.msra.mxu1 %v7740_v30  ;;  %6979 = vmatprep.subr.bf16.mxu0 %v7741_v31  ;;  %v7793_v29 = vld [vmem:[%s8474_s6 + $0x690] sm:$0xff]   ;;  %v7794_v30 = vld [vmem:[%s8474_s6 + $0x648] sm:$0xff]  }
 0x100   : > { %7001 = vmatprep.subr.bf16.mxu1 %v7742_v32  ;;  %5229 = vmatprep.mubr.bf16.mxu0 %v658_v1  ;;  %v7795_v31 = vld [vmem:[%s8474_s6 + $0x6c8] sm:$0xff]  }
 0x101   : > { %5269 = vmatprep.mubr.bf16.mxu1 %v660_v4  ;;  %v7796_v32 = vld [vmem:[%s8474_s6 + $0x608] sm:$0xff]  }
 0x102   : > { %6980 = vmatpush3.bf16.msra.mxu0 %v7743_v33  ;;  %v7797_v33 = vld [vmem:[%s8474_s6 + $0x688] sm:$0xff]  }
 0x103   : > { %7002 = vmatpush3.bf16.msra.mxu1 %v7744_v34  ;;  %6981 = vmatprep.subr.bf16.mxu0 %v7745_v35  ;;  %v275_v34 = vld [vmem:[%s8494_s25 + $0x30] sm:$0xff]  ;;  %v7798_v35 = vld [vmem:[%s8474_s6 + $0x640] sm:$0xff]   ;;  %v7813_v1 = vld [vmem:[%s8474_s6 + $0x728] sm:$0xff]  }
 0x104   : > { %7003 = vmatprep.subr.bf16.mxu1 %v7746_v36  ;;  %v410_v36 = vrot.slane %v275_v34, %v8535_v42  ;;  %v7814_v4 = vld [vmem:[%s8474_s6 + $0x7a8] sm:$0xff]  }
 0x106   : > { %6982 = vmatpush3.bf16.msra.mxu0 %v7747_v37  ;;  %v403_v37 = vcombine.high %v275_v34, %v275_v34 }
 0x107   : > { %7004 = vmatpush3.bf16.msra.mxu1 %v7748_v38  ;;  %6983 = vmatprep.subr.bf16.mxu0 %v7749_v39  ;;  %v7799_v38 = vld [vmem:[%s8474_s6 + $0x6c0] sm:$0xff]  }
 0x108   : > { %7005 = vmatprep.subr.bf16.mxu1 %v7750_v40  ;;  %v7800_v39 = vld [vmem:[%s8474_s6 + $0x600] sm:$0xff]   ;;  %v418_v40 = vcombine.high %v410_v36, %v410_v36 }
 0x10a   : > { %6984 = vmatpush3.bf16.msra.mxu0 %v7751_v41  ;;  %v417_v41 = vrot.slane %v403_v37, %v8535_v42 }
 0x10b   : > { %7006 = vmatpush3.bf16.msra.mxu1 %v7752_v43  ;;  %6985 = vmatprep.subr.bf16.mxu0 %v7753_v44  ;;  %v7801_v43 = vld [vmem:[%s8474_s6 + $0x680] sm:$0xff]   ;;  %v662_v44 = vpack.c.bf16 %v418_v40, %v418_v40 }
 0x10c   : > { %7007 = vmatprep.subr.bf16.mxu1 %v7754_v45  ;;  %v419_v45 = vcombine.high %v417_v41, %v417_v41 }
 0x10e   : > { %6986 = vmatpush3.bf16.msra.mxu0 %v7755_v46  ;;  %v7803_v46 = vld [vmem:[%s8474_s6 + $0x778] sm:$0xff]  }
 0x10f   : > { %7008 = vmatpush3.bf16.msra.mxu1 %v7756_v47  ;;  %6987 = vmatprep.subr.bf16.mxu0 %v7757_v48  ;;  %v7804_v47 = vld [vmem:[%s8474_s6 + $0x7f8] sm:$0xff]   ;;  %v664_v48 = vpack.c.bf16 %v419_v45, %v419_v45  ;;  %v7842_v45 = vld [vmem:[%s8474_s6 + $0x830] sm:$0xff]  }
 0x110   : > { %7009 = vmatprep.subr.bf16.mxu1 %v7758_v49  ;;  %v7805_v49 = vld [vmem:[%s8474_s6 + $0x738] sm:$0xff]  }
 0x112   : > { %6988 = vmatpush3.bf16.msra.mxu0 %v7759_v50  ;;  %v661_v50 = vpack.c.bf16 %v410_v36, %v410_v36  ;;  %v7837_v36 = vld [vmem:[%s8474_s6 + $0x8f8] sm:$0xff]  }
 0x113   : > { %7010 = vmatpush3.bf16.msra.mxu1 %v7760_v51  ;;  %6989 = vmatprep.subr.bf16.mxu0 %v7761_v52  ;;  %v663_v51 = vpack.c.bf16 %v417_v41, %v417_v41  ;;  %v7806_v52 = vld [vmem:[%s8474_s6 + $0x7b8] sm:$0xff]  }
 0x114   : > { %7011 = vmatprep.subr.bf16.mxu1 %v7762_v53  ;;  %v7807_v53 = vld [vmem:[%s8474_s6 + $0x770] sm:$0xff]   ;;  %v7839_v41 = vld [vmem:[%s8474_s6 + $0x8b8] sm:$0xff]  }
 0x116   : > { %6990 = vmatpush3.bf16.msra.mxu0 %v7763_v54  ;;  %v7808_v54 = vld [vmem:[%s8474_s6 + $0x7f0] sm:$0xff]  }
 0x117   : > { %7012 = vmatpush3.bf16.msra.mxu1 %v7764_v56  ;;  %6991 = vmatprep.subr.bf16.mxu0 %v7765_v59  ;;  %v7811_v59 = vld [vmem:[%s8474_s6 + $0x768] sm:$0xff]  }
 0x118   : > { %7013 = vmatprep.subr.bf16.mxu1 %v7766_v60 }
 0x11a   : > { %6992 = vmatpush3.bf16.msra.mxu0 %v7767_v63 }
 0x11b   : > { %7014 = vmatpush3.bf16.msra.mxu1 %v7768_v0  ;;  %7021 = vmatprep.subr.bf16.mxu0 %v7770_v3 }
 0x11c   : > { %7043 = vmatprep.subr.bf16.mxu1 %v7771_v5 }
 0x11d   : > { %5230 = vmatmul.mubr.bf16.vlgmr.msra.gmra.mxu0 %v657_v7 }
 0x11e   : > { %5270 = vmatmul.mubr.bf16.vlgmr.msra.gmra.mxu1 %v659_v8  ;;  %7022 = vmatpush3.bf16.msra.mxu0 %v7772_v6  ;;  %v7815_v6 = vld [vmem:[%s8474_s6 + $0x760] sm:$0xff]  }
 0x11f   : > { %7044 = vmatpush3.bf16.msra.mxu1 %v7773_v9  ;;  %7023 = vmatprep.subr.bf16.mxu0 %v7774_v10  ;;  %v7816_v9 = vld [vmem:[%s8474_s6 + $0x7e0] sm:$0xff]  }
 0x120   : > { %7045 = vmatprep.subr.bf16.mxu1 %v7775_v11  ;;  %5309 = vmatprep.mubr.bf16.mxu0 %v662_v44  ;;  %v7817_v10 = vld [vmem:[%s8474_s6 + $0x720] sm:$0xff]   ;;  %v7841_v44 = vld [vmem:[%s8474_s6 + $0x8f0] sm:$0xff]  }
 0x121   : > { %5349 = vmatprep.mubr.bf16.mxu1 %v664_v48  ;;  %v7818_v11 = vld [vmem:[%s8474_s6 + $0x7a0] sm:$0xff]   ;;  %v7843_v48 = vld [vmem:[%s8474_s6 + $0x8b0] sm:$0xff]  }
 0x122   : > { %7024 = vmatpush3.bf16.msra.mxu0 %v7776_v12  ;;  %v7819_v12 = vld [vmem:[%s8474_s6 + $0x758] sm:$0xff]  }
 0x123   : > { %7046 = vmatpush3.bf16.msra.mxu1 %v7777_v13  ;;  %7025 = vmatprep.subr.bf16.mxu0 %v7778_v14  ;;  %v7820_v13 = vld [vmem:[%s8474_s6 + $0x7d8] sm:$0xff]  }
 0x124   : > { %7047 = vmatprep.subr.bf16.mxu1 %v7779_v15  ;;  %v7821_v14 = vld [vmem:[%s8474_s6 + $0x718] sm:$0xff]  }
 0x125   : > { %v7822_v15 = vld [vmem:[%s8474_s6 + $0x798] sm:$0xff]  }
 0x126   : > { %7026 = vmatpush3.bf16.msra.mxu0 %v7780_v16  ;;  %v7823_v16 = vld [vmem:[%s8474_s6 + $0x750] sm:$0xff]  }
 0x127   : > { %7048 = vmatpush3.bf16.msra.mxu1 %v7781_v17  ;;  %7027 = vmatprep.subr.bf16.mxu0 %v7782_v18  ;;  %v7824_v17 = vld [vmem:[%s8474_s6 + $0x7d0] sm:$0xff]  }
 0x128   : > { %7049 = vmatprep.subr.bf16.mxu1 %v7783_v19  ;;  %v7825_v18 = vld [vmem:[%s8474_s6 + $0x710] sm:$0xff]  }
 0x129   : > { %v7826_v19 = vld [vmem:[%s8474_s6 + $0x790] sm:$0xff]  }
 0x12a   : > { %7028 = vmatpush3.bf16.msra.mxu0 %v7784_v20  ;;  %v7827_v20 = vld [vmem:[%s8474_s6 + $0x748] sm:$0xff]  }
 0x12b   : > { %7050 = vmatpush3.bf16.msra.mxu1 %v7785_v21  ;;  %7029 = vmatprep.subr.bf16.mxu0 %v7786_v22  ;;  %v7828_v21 = vld [vmem:[%s8474_s6 + $0x7c8] sm:$0xff]  }
 0x12c   : > { %7051 = vmatprep.subr.bf16.mxu1 %v7787_v23  ;;  %v7829_v22 = vld [vmem:[%s8474_s6 + $0x708] sm:$0xff]  }
 0x12d   : > { %v7830_v23 = vld [vmem:[%s8474_s6 + $0x788] sm:$0xff]  }
 0x12e   : > { %7030 = vmatpush3.bf16.msra.mxu0 %v7788_v24  ;;  %v276_v24 = vld [vmem:[%s8494_s25 + $0x38] sm:$0xff] }
 0x12f   : > { %7052 = vmatpush3.bf16.msra.mxu1 %v7789_v25  ;;  %7031 = vmatprep.subr.bf16.mxu0 %v7790_v26  ;;  %v7831_v25 = vld [vmem:[%s8474_s6 + $0x740] sm:$0xff]   ;;  %v427_v26 = vrot.slane %v276_v24, %v8535_v42 }
 0x130   : > { %7053 = vmatprep.subr.bf16.mxu1 %v7791_v27  ;;  %v420_v27 = vcombine.high %v276_v24, %v276_v24 }
 0x132   : > { %7032 = vmatpush3.bf16.msra.mxu0 %v7792_v28  ;;  %v7832_v28 = vld [vmem:[%s8474_s6 + $0x7c0] sm:$0xff]  }
 0x133   : > { %7054 = vmatpush3.bf16.msra.mxu1 %v7793_v29  ;;  %7033 = vmatprep.subr.bf16.mxu0 %v7794_v30  ;;  %v7833_v29 = vld [vmem:[%s8474_s6 + $0x700] sm:$0xff]   ;;  %v435_v30 = vcombine.high %v427_v26, %v427_v26 }
 0x134   : > { %7055 = vmatprep.subr.bf16.mxu1 %v7795_v31  ;;  %v434_v31 = vrot.slane %v420_v27, %v8535_v42  ;;  %v7870_v27 = vld [vmem:[%s8474_s6 + $0x9f8] sm:$0xff]  }
 0x136   : > { %7034 = vmatpush3.bf16.msra.mxu0 %v7796_v32  ;;  %v7834_v32 = vld [vmem:[%s8474_s6 + $0x780] sm:$0xff]   ;;  %v436_v34 = vcombine.high %v434_v31, %v434_v31  ;;  %v667_v40 = vpack.c.bf16 %v434_v31, %v434_v31 }
 0x137   : > { %7056 = vmatpush3.bf16.msra.mxu1 %v7797_v33  ;;  %7035 = vmatprep.subr.bf16.mxu0 %v7798_v35  ;;  %v666_v33 = vpack.c.bf16 %v435_v30, %v435_v30  ;;  %v7836_v35 = vld [vmem:[%s8474_s6 + $0x878] sm:$0xff]  }
 0x138   : > { %7057 = vmatprep.subr.bf16.mxu1 %v7799_v38  ;;  %v668_v37 = vpack.c.bf16 %v436_v34, %v436_v34  ;;  %v7838_v38 = vld [vmem:[%s8474_s6 + $0x838] sm:$0xff]   ;;  %v7874_v34 = vld [vmem:[%s8474_s6 + $0x9f0] sm:$0xff]  }
 0x13a   : > { %7036 = vmatpush3.bf16.msra.mxu0 %v7800_v39  ;;  %v665_v39 = vpack.c.bf16 %v427_v26, %v427_v26  ;;  %v7869_v26 = vld [vmem:[%s8474_s6 + $0x978] sm:$0xff]  }
 0x13b   : > { %7058 = vmatpush3.bf16.msra.mxu1 %v7801_v43  ;;  %7065 = vmatprep.subr.bf16.mxu0 %v7803_v46  ;;  %v7840_v43 = vld [vmem:[%s8474_s6 + $0x870] sm:$0xff]  }
 0x13c   : > { %7087 = vmatprep.subr.bf16.mxu1 %v7804_v47 }
 0x13d   : > { %v6773_v56 = vpop.f32.mrf.mxu0  ;;  %5310 = vmatmul.mubr.bf16.vlgmr.msra.gmra.mxu0 %v661_v50 }
 0x13e   : > { %v6795_v57 = vpop.f32.mrf.mxu1  ;;  %5350 = vmatmul.mubr.bf16.vlgmr.msra.gmra.mxu1 %v663_v51  ;;  %7066 = vmatpush3.bf16.msra.mxu0 %v7805_v49  ;;  %v7844_v49 = vld [vmem:[%s8474_s6 + $0x868] sm:$0xff]  }
 0x13f   : > { %7088 = vmatpush3.bf16.msra.mxu1 %v7806_v52  ;;  %v6774_v60 = vpop.f32.mrf.mxu0  ;;  %7067 = vmatprep.subr.bf16.mxu0 %v7807_v53  ;;  %v7845_v52 = vld [vmem:[%s8474_s6 + $0x8e8] sm:$0xff]  }
 0x140   : > { %v6796_v61 = vpop.f32.mrf.mxu1  ;;  %7089 = vmatprep.subr.bf16.mxu1 %v7808_v54  ;;  %v6775_v63 = vadd.f32 %v6774_v60, %v6773_v56  ;;  %5389 = vmatprep.mubr.bf16.mxu0 %v666_v33  ;;  %v7848_v60 = vld [vmem:[%s8474_s6 + $0x860] sm:$0xff]   ;;  %v7873_v33 = vld [vmem:[%s8474_s6 + $0x970] sm:$0xff]  }
 0x141   : > { %v6797_v0 = vadd.f32 %v6796_v61, %v6795_v57  ;;  %v6776_v2 = vpop.f32.mrf.mxu0  ;;  %5429 = vmatprep.mubr.bf16.mxu1 %v668_v37 }
 0x142   : > { %v6798_v3 = vpop.f32.mrf.mxu1  ;;  %7068 = vmatpush3.bf16.msra.mxu0 %v7809_v55  ;;  %v7846_v55 = vld [vmem:[%s8474_s6 + $0x828] sm:$0xff]   ;;  %v7851_v2 = vld [vmem:[%s8474_s6 + $0x8a0] sm:$0xff]  }
 0x143   : > { %v8759_v5 = vadd.f32 %v6797_v0, %v6775_v63  ;;  %7090 = vmatpush3.bf16.msra.mxu1 %v7810_v58  ;;  %v6777_v7 = vpop.f32.mrf.mxu0  ;;  %7069 = vmatprep.subr.bf16.mxu0 %v7811_v59  ;;  %v7847_v58 = vld [vmem:[%s8474_s6 + $0x8a8] sm:$0xff]   ;;  %v7849_v63 = vld [vmem:[%s8474_s6 + $0x8e0] sm:$0xff]   ;;  %v7852_v3 = vld [vmem:[%s8474_s6 + $0x858] sm:$0xff]  }
 0x144   : > { %v6799_v8 = vpop.f32.mrf.mxu1  ;;  %7091 = vmatprep.subr.bf16.mxu1 %v7812_v62  ;;  %v7856_v7 = vld [vmem:[%s8474_s6 + $0x850] sm:$0xff]  }
 0x145   : > { %v7857_v8 = vld [vmem:[%s8474_s6 + $0x8d0] sm:$0xff]  }
 0x146   : > { %7070 = vmatpush3.bf16.msra.mxu0 %v7813_v1  ;;  %v7850_v1 = vld [vmem:[%s8474_s6 + $0x820] sm:$0xff]  }
 0x147   : > { %7092 = vmatpush3.bf16.msra.mxu1 %v7814_v4  ;;  %7071 = vmatprep.subr.bf16.mxu0 %v7815_v6  ;;  %v7853_v4 = vld [vmem:[%s8474_s6 + $0x8d8] sm:$0xff]  }
 0x148   : > { %7093 = vmatprep.subr.bf16.mxu1 %v7816_v9  ;;  %v7855_v6 = vld [vmem:[%s8474_s6 + $0x898] sm:$0xff]   ;;  %v7858_v9 = vld [vmem:[%s8474_s6 + $0x810] sm:$0xff]  }
 0x14a   : > { %7072 = vmatpush3.bf16.msra.mxu0 %v7817_v10  ;;  %v7859_v10 = vld [vmem:[%s8474_s6 + $0x890] sm:$0xff]  }
 0x14b   : > { %7094 = vmatpush3.bf16.msra.mxu1 %v7818_v11  ;;  %7073 = vmatprep.subr.bf16.mxu0 %v7819_v12  ;;  %v7860_v11 = vld [vmem:[%s8474_s6 + $0x848] sm:$0xff]  }
 0x14c   : > { %7095 = vmatprep.subr.bf16.mxu1 %v7820_v13  ;;  %v7861_v12 = vld [vmem:[%s8474_s6 + $0x8c8] sm:$0xff]  }
 0x14d   : > { %v7862_v13 = vld [vmem:[%s8474_s6 + $0x808] sm:$0xff]  }
 0x14e   : > { %7074 = vmatpush3.bf16.msra.mxu0 %v7821_v14  ;;  %v7863_v14 = vld [vmem:[%s8474_s6 + $0x888] sm:$0xff]  }
 0x14f   : > { %7096 = vmatpush3.bf16.msra.mxu1 %v7822_v15  ;;  %7075 = vmatprep.subr.bf16.mxu0 %v7823_v16  ;;  %v277_v15 = vld [vmem:[%s8494_s25 + $0x40] sm:$0xff] }
 0x150   : > { %7097 = vmatprep.subr.bf16.mxu1 %v7824_v17  ;;  %v7864_v16 = vld [vmem:[%s8474_s6 + $0x840] sm:$0xff]   ;;  %v444_v17 = vrot.slane %v277_v15, %v8535_v42 }
 0x152   : > { %7076 = vmatpush3.bf16.msra.mxu0 %v7825_v18  ;;  %v437_v18 = vcombine.high %v277_v15, %v277_v15  ;;  %v669_v30 = vpack.c.bf16 %v444_v17, %v444_v17  ;;  %v7902_v15 = vld [vmem:[%s8474_s6 + $0xa78] sm:$0xff]  }
 0x153   : > { %7098 = vmatpush3.bf16.msra.mxu1 %v7826_v19  ;;  %7077 = vmatprep.subr.bf16.mxu0 %v7827_v20  ;;  %v7865_v19 = vld [vmem:[%s8474_s6 + $0x8c0] sm:$0xff]  }
 0x154   : > { %7099 = vmatprep.subr.bf16.mxu1 %v7828_v21  ;;  %v7866_v20 = vld [vmem:[%s8474_s6 + $0x800] sm:$0xff]   ;;  %v452_v21 = vcombine.high %v444_v17, %v444_v17 }
 0x156   : > { %7078 = vmatpush3.bf16.msra.mxu0 %v7829_v22  ;;  %v451_v22 = vrot.slane %v437_v18, %v8535_v42  ;;  %v670_v24 = vpack.c.bf16 %v452_v21, %v452_v21  ;;  %v7903_v18 = vld [vmem:[%s8474_s6 + $0xaf8] sm:$0xff]  }
 0x157   : > { %7100 = vmatpush3.bf16.msra.mxu1 %v7830_v23  ;;  %7079 = vmatprep.subr.bf16.mxu0 %v7831_v25  ;;  %v7867_v23 = vld [vmem:[%s8474_s6 + $0x880] sm:$0xff]  }
 0x158   : > { %7101 = vmatprep.subr.bf16.mxu1 %v7832_v28  ;;  %v453_v25 = vcombine.high %v451_v22, %v451_v22  ;;  %v671_v31 = vpack.c.bf16 %v451_v22, %v451_v22 }
 0x15a   : > { %7080 = vmatpush3.bf16.msra.mxu0 %v7833_v29  ;;  %v672_v28 = vpack.c.bf16 %v453_v25, %v453_v25  ;;  %v7871_v29 = vld [vmem:[%s8474_s6 + $0x938] sm:$0xff]   ;;  %v7907_v25 = vld [vmem:[%s8474_s6 + $0xaf0] sm:$0xff]  }
 0x15b   : > { %7102 = vmatpush3.bf16.msra.mxu1 %v7834_v32  ;;  %7109 = vmatprep.subr.bf16.mxu0 %v7836_v35  ;;  %v7872_v32 = vld [vmem:[%s8474_s6 + $0x9b8] sm:$0xff]   ;;  %v7875_v35 = vld [vmem:[%s8474_s6 + $0x930] sm:$0xff]  }
 0x15c   : > { %7131 = vmatprep.subr.bf16.mxu1 %v7837_v36 }
 0x15d   : > { %v6817_v46 = vpop.f32.mrf.mxu0  ;;  %5390 = vmatmul.mubr.bf16.vlgmr.msra.gmra.mxu0 %v665_v39  ;;  %v7877_v39 = vld [vmem:[%s8474_s6 + $0x968] sm:$0xff]  }
 0x15e   : > { %v6839_v47 = vpop.f32.mrf.mxu1  ;;  %5430 = vmatmul.mubr.bf16.vlgmr.msra.gmra.mxu1 %v667_v40  ;;  %7110 = vmatpush3.bf16.msra.mxu0 %v7838_v38  ;;  %v7876_v38 = vld [vmem:[%s8474_s6 + $0x9b0] sm:$0xff]  }
 0x15f   : > { %7132 = vmatpush3.bf16.msra.mxu1 %v7839_v41  ;;  %v6818_v50 = vpop.f32.mrf.mxu0  ;;  %7111 = vmatprep.subr.bf16.mxu0 %v7840_v43  ;;  %v7878_v43 = vld [vmem:[%s8474_s6 + $0x9e8] sm:$0xff]  }
 0x160   : > { %v6840_v51 = vpop.f32.mrf.mxu1  ;;  %7133 = vmatprep.subr.bf16.mxu1 %v7841_v44  ;;  %v6819_v53 = vadd.f32 %v6818_v50, %v6817_v46  ;;  %5469 = vmatprep.mubr.bf16.mxu0 %v670_v24  ;;  %v7879_v46 = vld [vmem:[%s8474_s6 + $0x928] sm:$0xff]   ;;  %v7906_v24 = vld [vmem:[%s8474_s6 + $0xa70] sm:$0xff]  }
 0x161   : > { %v6841_v54 = vadd.f32 %v6840_v51, %v6839_v47  ;;  %v6820_v56 = vpop.f32.mrf.mxu0  ;;  %5509 = vmatprep.mubr.bf16.mxu1 %v672_v28  ;;  %v7881_v51 = vld [vmem:[%s8474_s6 + $0x960] sm:$0xff]  }
 0x162   : > { %v6842_v57 = vpop.f32.mrf.mxu1  ;;  %v4912_v59 = vadd.f32 %v6819_v53, %v8759_v5  ;;  %7112 = vmatpush3.bf16.msra.mxu0 %v7842_v45  ;;  %v7854_v5 = vld [vmem:[%s8474_s6 + $0x818] sm:$0xff]   ;;  %v7883_v56 = vld [vmem:[%s8474_s6 + $0x920] sm:$0xff]  }
 0x163   : > { %7134 = vmatpush3.bf16.msra.mxu1 %v7843_v48  ;;  %v6821_v61 = vpop.f32.mrf.mxu0  ;;  %7113 = vmatprep.subr.bf16.mxu0 %v7844_v49  ;;  %v7880_v49 = vld [vmem:[%s8474_s6 + $0x9a8] sm:$0xff]   ;;  %v7884_v57 = vld [vmem:[%s8474_s6 + $0x9a0] sm:$0xff]  }
 0x164   : > { %v6843_v62 = vpop.f32.mrf.mxu1  ;;  %7135 = vmatprep.subr.bf16.mxu1 %v7845_v52  ;;  %v8799_v0 = vadd.f32 %v6841_v54, %v4912_v59  ;;  %v7882_v54 = vld [vmem:[%s8474_s6 + $0x9e0] sm:$0xff]   ;;  %v7886_v59 = vld [vmem:[%s8474_s6 + $0x9d8] sm:$0xff]  }
 0x165   : > { %v7888_v61 = vld [vmem:[%s8474_s6 + $0x998] sm:$0xff]   ;;  %v7889_v62 = vld [vmem:[%s8474_s6 + $0x950] sm:$0xff]  }
 0x166   : > { %7114 = vmatpush3.bf16.msra.mxu0 %v7846_v55 }
 0x167   : > { %7136 = vmatpush3.bf16.msra.mxu1 %v7847_v58  ;;  %7115 = vmatprep.subr.bf16.mxu0 %v7848_v60  ;;  %v7885_v58 = vld [vmem:[%s8474_s6 + $0x958] sm:$0xff]  }
 0x168   : > { %7137 = vmatprep.subr.bf16.mxu1 %v7849_v63  ;;  %v7887_v60 = vld [vmem:[%s8474_s6 + $0x918] sm:$0xff]   ;;  %v7890_v63 = vld [vmem:[%s8474_s6 + $0x9d0] sm:$0xff]  }
 0x16a   : > { %7116 = vmatpush3.bf16.msra.mxu0 %v7850_v1  ;;  %v7892_v1 = vld [vmem:[%s8474_s6 + $0x990] sm:$0xff]  }
 0x16b   : > { %7138 = vmatpush3.bf16.msra.mxu1 %v7851_v2  ;;  %7117 = vmatprep.subr.bf16.mxu0 %v7852_v3  ;;  %v7893_v2 = vld [vmem:[%s8474_s6 + $0x948] sm:$0xff]  }
 0x16c   : > { %7139 = vmatprep.subr.bf16.mxu1 %v7853_v4  ;;  %v7894_v3 = vld [vmem:[%s8474_s6 + $0x9c8] sm:$0xff]  }
 0x16d   : > { %v7895_v4 = vld [vmem:[%s8474_s6 + $0x908] sm:$0xff]  }
 0x16e   : > { %7118 = vmatpush3.bf16.msra.mxu0 %v7854_v5  ;;  %v7896_v5 = vld [vmem:[%s8474_s6 + $0x988] sm:$0xff]  }
 0x16f   : > { %7140 = vmatpush3.bf16.msra.mxu1 %v7855_v6  ;;  %7119 = vmatprep.subr.bf16.mxu0 %v7856_v7  ;;  %v7897_v6 = vld [vmem:[%s8474_s6 + $0x940] sm:$0xff]   ;;  %v278_v7 = vld [vmem:[%s8494_s25 + $0x48] sm:$0xff] }
 0x170   : > { %7141 = vmatprep.subr.bf16.mxu1 %v7857_v8  ;;  %v7898_v8 = vld [vmem:[%s8474_s6 + $0x9c0] sm:$0xff]  }
 0x172   : > { %7120 = vmatpush3.bf16.msra.mxu0 %v7858_v9  ;;  %v461_v9 = vrot.slane %v278_v7, %v8535_v42 }
 0x173   : > { %7142 = vmatpush3.bf16.msra.mxu1 %v7859_v10  ;;  %7121 = vmatprep.subr.bf16.mxu0 %v7860_v11  ;;  %v454_v10 = vcombine.high %v278_v7, %v278_v7  ;;  %v7899_v11 = vld [vmem:[%s8474_s6 + $0x900] sm:$0xff]  }
 0x174   : > { %7143 = vmatprep.subr.bf16.mxu1 %v7861_v12  ;;  %v7900_v12 = vld [vmem:[%s8474_s6 + $0x980] sm:$0xff]   ;;  %v673_v21 = vpack.c.bf16 %v461_v9, %v461_v9 }
 0x176   : > { %7122 = vmatpush3.bf16.msra.mxu0 %v7862_v13  ;;  %v469_v13 = vcombine.high %v461_v9, %v461_v9  ;;  %v7936_v9 = vld [vmem:[%s8474_s6 + $0xbf8] sm:$0xff]  }
 0x177   : > { %7144 = vmatpush3.bf16.msra.mxu1 %v7863_v14  ;;  %7123 = vmatprep.subr.bf16.mxu0 %v7864_v16  ;;  %v468_v14 = vrot.slane %v454_v10, %v8535_v42  ;;  %v7937_v10 = vld [vmem:[%s8474_s6 + $0xb38] sm:$0xff]  }
 0x178   : > { %7145 = vmatprep.subr.bf16.mxu1 %v7865_v19  ;;  %v674_v16 = vpack.c.bf16 %v469_v13, %v469_v13  ;;  %v7904_v19 = vld [vmem:[%s8474_s6 + $0xa38] sm:$0xff]  }
 0x179   : > { %v470_v17 = vcombine.high %v468_v14, %v468_v14  ;;  %v675_v22 = vpack.c.bf16 %v468_v14, %v468_v14  ;;  %v7938_v14 = vld [vmem:[%s8474_s6 + $0xbb8] sm:$0xff]  }
 0x17a   : > { %7124 = vmatpush3.bf16.msra.mxu0 %v7866_v20 }
 0x17b   : > { %7146 = vmatpush3.bf16.msra.mxu1 %v7867_v23  ;;  %7153 = vmatprep.subr.bf16.mxu0 %v7869_v26  ;;  %v676_v20 = vpack.c.bf16 %v470_v17, %v470_v17  ;;  %v7905_v23 = vld [vmem:[%s8474_s6 + $0xab8] sm:$0xff]   ;;  %v7908_v26 = vld [vmem:[%s8474_s6 + $0xa30] sm:$0xff]  }
 0x17c   : > { %7175 = vmatprep.subr.bf16.mxu1 %v7870_v27  ;;  %v7941_v17 = vld [vmem:[%s8474_s6 + $0xb30] sm:$0xff]  }
 0x17d   : > { %v6861_v36 = vpop.f32.mrf.mxu0  ;;  %5470 = vmatmul.mubr.bf16.vlgmr.msra.gmra.mxu0 %v669_v30  ;;  %v7910_v30 = vld [vmem:[%s8474_s6 + $0xa68] sm:$0xff]  }
 0x17e   : > { %v6883_v37 = vpop.f32.mrf.mxu1  ;;  %5510 = vmatmul.mubr.bf16.vlgmr.msra.gmra.mxu1 %v671_v31  ;;  %7154 = vmatpush3.bf16.msra.mxu0 %v7871_v29  ;;  %v7909_v29 = vld [vmem:[%s8474_s6 + $0xab0] sm:$0xff]  }
 0x17f   : > { %7176 = vmatpush3.bf16.msra.mxu1 %v7872_v32  ;;  %v6862_v40 = vpop.f32.mrf.mxu0  ;;  %7155 = vmatprep.subr.bf16.mxu0 %v7873_v33  ;;  %v7911_v33 = vld [vmem:[%s8474_s6 + $0xae8] sm:$0xff]  }
 0x180   : > { %v6884_v41 = vpop.f32.mrf.mxu1  ;;  %7177 = vmatprep.subr.bf16.mxu1 %v7874_v34  ;;  %v6863_v44 = vadd.f32 %v6862_v40, %v6861_v36  ;;  %5549 = vmatprep.mubr.bf16.mxu0 %v674_v16  ;;  %v7912_v36 = vld [vmem:[%s8474_s6 + $0xa28] sm:$0xff]   ;;  %v7940_v16 = vld [vmem:[%s8474_s6 + $0xbf0] sm:$0xff]  }
 0x181   : > { %v6885_v45 = vadd.f32 %v6884_v41, %v6883_v37  ;;  %v6864_v47 = vpop.f32.mrf.mxu0  ;;  %5589 = vmatprep.mubr.bf16.mxu1 %v676_v20  ;;  %v7914_v41 = vld [vmem:[%s8474_s6 + $0xa60] sm:$0xff]   ;;  %v7942_v20 = vld [vmem:[%s8474_s6 + $0xbb0] sm:$0xff]  }
 0x182   : > { %v6886_v48 = vpop.f32.mrf.mxu1  ;;  %v4992_v50 = vadd.f32 %v6863_v44, %v8799_v0  ;;  %7156 = vmatpush3.bf16.msra.mxu0 %v7875_v35  ;;  %v7891_v0 = vld [vmem:[%s8474_s6 + $0x910] sm:$0xff]   ;;  %v7916_v47 = vld [vmem:[%s8474_s6 + $0xa20] sm:$0xff]  }
 0x183   : > { %7178 = vmatpush3.bf16.msra.mxu1 %v7876_v38  ;;  %v6865_v52 = vpop.f32.mrf.mxu0  ;;  %7157 = vmatprep.subr.bf16.mxu0 %v7877_v39  ;;  %v7913_v39 = vld [vmem:[%s8474_s6 + $0xaa8] sm:$0xff]   ;;  %v7917_v48 = vld [vmem:[%s8474_s6 + $0xaa0] sm:$0xff]  }
 0x184   : > { %v6887_v53 = vpop.f32.mrf.mxu1  ;;  %7179 = vmatprep.subr.bf16.mxu1 %v7878_v43  ;;  %v8837_v55 = vadd.f32 %v6885_v45, %v4992_v50  ;;  %v7915_v45 = vld [vmem:[%s8474_s6 + $0xae0] sm:$0xff]   ;;  %v7919_v50 = vld [vmem:[%s8474_s6 + $0xad8] sm:$0xff]  }
 0x185   : > { %v7921_v52 = vld [vmem:[%s8474_s6 + $0xa98] sm:$0xff]   ;;  %v7922_v53 = vld [vmem:[%s8474_s6 + $0xa50] sm:$0xff]  }
 0x186   : > { %7158 = vmatpush3.bf16.msra.mxu0 %v7879_v46 }
 0x187   : > { %7180 = vmatpush3.bf16.msra.mxu1 %v7880_v49  ;;  %7159 = vmatprep.subr.bf16.mxu0 %v7881_v51  ;;  %v7918_v49 = vld [vmem:[%s8474_s6 + $0xa58] sm:$0xff]  }
 0x188   : > { %7181 = vmatprep.subr.bf16.mxu1 %v7882_v54  ;;  %v7920_v51 = vld [vmem:[%s8474_s6 + $0xa18] sm:$0xff]   ;;  %v7923_v54 = vld [vmem:[%s8474_s6 + $0xad0] sm:$0xff]  }
 0x18a   : > { %7160 = vmatpush3.bf16.msra.mxu0 %v7883_v56  ;;  %v7925_v56 = vld [vmem:[%s8474_s6 + $0xa90] sm:$0xff]  }
 0x18b   : > { %7182 = vmatpush3.bf16.msra.mxu1 %v7884_v57  ;;  %7161 = vmatprep.subr.bf16.mxu0 %v7885_v58  ;;  %v7926_v57 = vld [vmem:[%s8474_s6 + $0xa48] sm:$0xff]  }
 0x18c   : > { %7183 = vmatprep.subr.bf16.mxu1 %v7886_v59  ;;  %v7927_v58 = vld [vmem:[%s8474_s6 + $0xac8] sm:$0xff]  }
 0x18d   : > { %v7928_v59 = vld [vmem:[%s8474_s6 + $0xa08] sm:$0xff]  }
 0x18e   : > { %7162 = vmatpush3.bf16.msra.mxu0 %v7887_v60  ;;  %v7929_v60 = vld [vmem:[%s8474_s6 + $0xa88] sm:$0xff]  }
 0x18f   : > { %7184 = vmatpush3.bf16.msra.mxu1 %v7888_v61  ;;  %7163 = vmatprep.subr.bf16.mxu0 %v7889_v62  ;;  %v7930_v61 = vld [vmem:[%s8474_s6 + $0xa40] sm:$0xff]   ;;  %v279_v62 = vld [vmem:[%s8494_s25 + $0x50] sm:$0xff] }
 0x190   : > { %7185 = vmatprep.subr.bf16.mxu1 %v7890_v63  ;;  %v7931_v63 = vld [vmem:[%s8474_s6 + $0xac0] sm:$0xff]  }
 0x192   : > { %7164 = vmatpush3.bf16.msra.mxu0 %v7891_v0  ;;  %v478_v0 = vrot.slane %v279_v62, %v8535_v42 }
 0x193   : > { %7186 = vmatpush3.bf16.msra.mxu1 %v7892_v1  ;;  %7165 = vmatprep.subr.bf16.mxu0 %v7893_v2  ;;  %v471_v1 = vcombine.high %v279_v62, %v279_v62  ;;  %v7932_v2 = vld [vmem:[%s8474_s6 + $0xa00] sm:$0xff]  }
 0x194   : > { %7187 = vmatprep.subr.bf16.mxu1 %v7894_v3  ;;  %v7933_v3 = vld [vmem:[%s8474_s6 + $0xa80] sm:$0xff]  }
 0x196   : > { %7166 = vmatpush3.bf16.msra.mxu0 %v7895_v4  ;;  %v486_v4 = vcombine.high %v478_v0, %v478_v0 }
 0x197   : > { %7188 = vmatpush3.bf16.msra.mxu1 %v7896_v5  ;;  %7167 = vmatprep.subr.bf16.mxu0 %v7897_v6  ;;  %v485_v5 = vrot.slane %v471_v1, %v8535_v42  ;;  %v7935_v6 = vld [vmem:[%s8474_s6 + $0xb78] sm:$0xff]  }
 0x198   : > { %7189 = vmatprep.subr.bf16.mxu1 %v7898_v8  ;;  %v678_v7 = vpack.c.bf16 %v486_v4, %v486_v4  ;;  %v7970_v1 = vld [vmem:[%s8474_s6 + $0xc38] sm:$0xff]  }
 0x199   : > { %v487_v8 = vcombine.high %v485_v5, %v485_v5  ;;  %v679_v13 = vpack.c.bf16 %v485_v5, %v485_v5  ;;  %v7971_v5 = vld [vmem:[%s8474_s6 + $0xcb8] sm:$0xff]  }
 0x19a   : > { %7168 = vmatpush3.bf16.msra.mxu0 %v7899_v11 }
 0x19b   : > { %7190 = vmatpush3.bf16.msra.mxu1 %v7900_v12  ;;  %7197 = vmatprep.subr.bf16.mxu0 %v7902_v15  ;;  %v680_v11 = vpack.c.bf16 %v487_v8, %v487_v8  ;;  %v677_v12 = vpack.c.bf16 %v478_v0, %v478_v0  ;;  %v7939_v15 = vld [vmem:[%s8474_s6 + $0xb70] sm:$0xff]   ;;  %v7969_v0 = vld [vmem:[%s8474_s6 + $0xcf8] sm:$0xff]  }
 0x19c   : > { %7219 = vmatprep.subr.bf16.mxu1 %v7903_v18  ;;  %v7974_v8 = vld [vmem:[%s8474_s6 + $0xc30] sm:$0xff]  }
 0x19d   : > { %v6905_v27 = vpop.f32.mrf.mxu0  ;;  %5550 = vmatmul.mubr.bf16.vlgmr.msra.gmra.mxu0 %v673_v21  ;;  %v7943_v21 = vld [vmem:[%s8474_s6 + $0xb68] sm:$0xff]  }
 0x19e   : > { %v6927_v28 = vpop.f32.mrf.mxu1  ;;  %5590 = vmatmul.mubr.bf16.vlgmr.msra.gmra.mxu1 %v675_v22  ;;  %7198 = vmatpush3.bf16.msra.mxu0 %v7904_v19 }
 0x19f   : > { %7220 = vmatpush3.bf16.msra.mxu1 %v7905_v23  ;;  %v6906_v31 = vpop.f32.mrf.mxu0  ;;  %7199 = vmatprep.subr.bf16.mxu0 %v7906_v24  ;;  %v7944_v24 = vld [vmem:[%s8474_s6 + $0xbe8] sm:$0xff]  }
 0x1a0   : > { %v6928_v32 = vpop.f32.mrf.mxu1  ;;  %7221 = vmatprep.subr.bf16.mxu1 %v7907_v25  ;;  %v6907_v34 = vadd.f32 %v6906_v31, %v6905_v27  ;;  %5629 = vmatprep.mubr.bf16.mxu0 %v678_v7  ;;  %v7945_v27 = vld [vmem:[%s8474_s6 + $0xb28] sm:$0xff]   ;;  %v7973_v7 = vld [vmem:[%s8474_s6 + $0xcf0] sm:$0xff]  }
 0x1a1   : > { %v6929_v35 = vadd.f32 %v6928_v32, %v6927_v28  ;;  %v6908_v37 = vpop.f32.mrf.mxu0  ;;  %5669 = vmatprep.mubr.bf16.mxu1 %v680_v11  ;;  %v7947_v32 = vld [vmem:[%s8474_s6 + $0xb60] sm:$0xff]   ;;  %v7975_v11 = vld [vmem:[%s8474_s6 + $0xcb0] sm:$0xff]  }
 0x1a2   : > { %v6930_v38 = vpop.f32.mrf.mxu1  ;;  %v5072_v40 = vadd.f32 %v6907_v34, %v8837_v55  ;;  %7200 = vmatpush3.bf16.msra.mxu0 %v7908_v26  ;;  %v7924_v55 = vld [vmem:[%s8474_s6 + $0xa10] sm:$0xff]   ;;  %v7949_v37 = vld [vmem:[%s8474_s6 + $0xb20] sm:$0xff]  }
 0x1a3   : > { %7222 = vmatpush3.bf16.msra.mxu1 %v7909_v29  ;;  %v6909_v43 = vpop.f32.mrf.mxu0  ;;  %7201 = vmatprep.subr.bf16.mxu0 %v7910_v30  ;;  %v7946_v30 = vld [vmem:[%s8474_s6 + $0xba8] sm:$0xff]   ;;  %v7950_v38 = vld [vmem:[%s8474_s6 + $0xba0] sm:$0xff]  }
 0x1a4   : > { %v6931_v44 = vpop.f32.mrf.mxu1  ;;  %7223 = vmatprep.subr.bf16.mxu1 %v7911_v33  ;;  %v8875_v46 = vadd.f32 %v6929_v35, %v5072_v40  ;;  %v7948_v35 = vld [vmem:[%s8474_s6 + $0xbe0] sm:$0xff]   ;;  %v7952_v40 = vld [vmem:[%s8474_s6 + $0xbd8] sm:$0xff]  }
 0x1a5   : > { %v7954_v43 = vld [vmem:[%s8474_s6 + $0xb98] sm:$0xff]   ;;  %v7955_v44 = vld [vmem:[%s8474_s6 + $0xb50] sm:$0xff]  }
 0x1a6   : > { %7202 = vmatpush3.bf16.msra.mxu0 %v7912_v36 }
 0x1a7   : > { %7224 = vmatpush3.bf16.msra.mxu1 %v7913_v39  ;;  %7203 = vmatprep.subr.bf16.mxu0 %v7914_v41  ;;  %v7951_v39 = vld [vmem:[%s8474_s6 + $0xb58] sm:$0xff]  }
 0x1a8   : > { %7225 = vmatprep.subr.bf16.mxu1 %v7915_v45  ;;  %v7953_v41 = vld [vmem:[%s8474_s6 + $0xb18] sm:$0xff]   ;;  %v7956_v45 = vld [vmem:[%s8474_s6 + $0xbd0] sm:$0xff]  }
 0x1aa   : > { %7204 = vmatpush3.bf16.msra.mxu0 %v7916_v47  ;;  %v7958_v47 = vld [vmem:[%s8474_s6 + $0xb90] sm:$0xff]  }
 0x1ab   : > { %7226 = vmatpush3.bf16.msra.mxu1 %v7917_v48  ;;  %7205 = vmatprep.subr.bf16.mxu0 %v7918_v49  ;;  %v7959_v48 = vld [vmem:[%s8474_s6 + $0xb48] sm:$0xff]  }
 0x1ac   : > { %7227 = vmatprep.subr.bf16.mxu1 %v7919_v50  ;;  %v7960_v49 = vld [vmem:[%s8474_s6 + $0xbc8] sm:$0xff]  }
 0x1ad   : > { %v7961_v50 = vld [vmem:[%s8474_s6 + $0xb08] sm:$0xff]  }
 0x1ae   : > { %7206 = vmatpush3.bf16.msra.mxu0 %v7920_v51  ;;  %v7962_v51 = vld [vmem:[%s8474_s6 + $0xb88] sm:$0xff]  }
 0x1af   : > { %7228 = vmatpush3.bf16.msra.mxu1 %v7921_v52  ;;  %7207 = vmatprep.subr.bf16.mxu0 %v7922_v53  ;;  %v7963_v52 = vld [vmem:[%s8474_s6 + $0xb40] sm:$0xff]   ;;  %v280_v53 = vld [vmem:[%s8494_s25 + $0x58] sm:$0xff] }
 0x1b0   : > { %7229 = vmatprep.subr.bf16.mxu1 %v7923_v54  ;;  %v7964_v54 = vld [vmem:[%s8474_s6 + $0xbc0] sm:$0xff]  }
 0x1b2   : > { %7208 = vmatpush3.bf16.msra.mxu0 %v7924_v55  ;;  %v495_v55 = vrot.slane %v280_v53, %v8535_v42 }
 0x1b3   : > { %7230 = vmatpush3.bf16.msra.mxu1 %v7925_v56  ;;  %7209 = vmatprep.subr.bf16.mxu0 %v7926_v57  ;;  %v488_v56 = vcombine.high %v280_v53, %v280_v53  ;;  %v7965_v57 = vld [vmem:[%s8474_s6 + $0xb00] sm:$0xff]   ;;  %v8002_v53 = vld [vmem:[%s8474_s6 + $0xdf8] sm:$0xff]  }
 0x1b4   : > { %7231 = vmatprep.subr.bf16.mxu1 %v7927_v58  ;;  %v7966_v58 = vld [vmem:[%s8474_s6 + $0xb80] sm:$0xff]  }
 0x1b6   : > { %7210 = vmatpush3.bf16.msra.mxu0 %v7928_v59  ;;  %v503_v59 = vcombine.high %v495_v55, %v495_v55 }
 0x1b7   : > { %7232 = vmatpush3.bf16.msra.mxu1 %v7929_v60  ;;  %7211 = vmatprep.subr.bf16.mxu0 %v7930_v61  ;;  %v502_v60 = vrot.slane %v488_v56, %v8535_v42  ;;  %v7968_v61 = vld [vmem:[%s8474_s6 + $0xc78] sm:$0xff]  }
 0x1b8   : > { %7233 = vmatprep.subr.bf16.mxu1 %v7931_v63  ;;  %v682_v62 = vpack.c.bf16 %v503_v59, %v503_v59  ;;  %v8003_v56 = vld [vmem:[%s8474_s6 + $0xd38] sm:$0xff]  }
 0x1b9   : > { %v504_v63 = vcombine.high %v502_v60, %v502_v60  ;;  %v683_v4 = vpack.c.bf16 %v502_v60, %v502_v60  ;;  %v8004_v59 = vld [vmem:[%s8474_s6 + $0xdb8] sm:$0xff]  }
 0x1ba   : > { %7212 = vmatpush3.bf16.msra.mxu0 %v7932_v2 }
 0x1bb   : > { %7234 = vmatpush3.bf16.msra.mxu1 %v7933_v3  ;;  %7241 = vmatprep.subr.bf16.mxu0 %v7935_v6  ;;  %v684_v2 = vpack.c.bf16 %v504_v63, %v504_v63  ;;  %v681_v3 = vpack.c.bf16 %v495_v55, %v495_v55  ;;  %v7972_v6 = vld [vmem:[%s8474_s6 + $0xc70] sm:$0xff]  }
 0x1bc   : > { %7263 = vmatprep.subr.bf16.mxu1 %v7936_v9  ;;  %v8007_v63 = vld [vmem:[%s8474_s6 + $0xd30] sm:$0xff]  }
 0x1bd   : > { %v6949_v18 = vpop.f32.mrf.mxu0  ;;  %5630 = vmatmul.mubr.bf16.vlgmr.msra.gmra.mxu0 %v677_v12  ;;  %v7976_v12 = vld [vmem:[%s8474_s6 + $0xc68] sm:$0xff]  }
 0x1be   : > { %v6971_v19 = vpop.f32.mrf.mxu1  ;;  %5670 = vmatmul.mubr.bf16.vlgmr.msra.gmra.mxu1 %v679_v13  ;;  %7242 = vmatpush3.bf16.msra.mxu0 %v7937_v10 }
 0x1bf   : > { %7264 = vmatpush3.bf16.msra.mxu1 %v7938_v14  ;;  %v6950_v22 = vpop.f32.mrf.mxu0  ;;  %7243 = vmatprep.subr.bf16.mxu0 %v7939_v15  ;;  %v7977_v15 = vld [vmem:[%s8474_s6 + $0xce8] sm:$0xff]  }
 0x1c0   : > { %v6972_v23 = vpop.f32.mrf.mxu1  ;;  %7265 = vmatprep.subr.bf16.mxu1 %v7940_v16  ;;  %v6951_v25 = vadd.f32 %v6950_v22, %v6949_v18  ;;  %5709 = vmatprep.mubr.bf16.mxu0 %v682_v62  ;;  %v7978_v18 = vld [vmem:[%s8474_s6 + $0xc28] sm:$0xff]   ;;  %v8006_v62 = vld [vmem:[%s8474_s6 + $0xdf0] sm:$0xff]  }
 0x1c1   : > { %v6973_v26 = vadd.f32 %v6972_v23, %v6971_v19  ;;  %v6952_v28 = vpop.f32.mrf.mxu0  ;;  %5749 = vmatprep.mubr.bf16.mxu1 %v684_v2  ;;  %v7980_v23 = vld [vmem:[%s8474_s6 + $0xc60] sm:$0xff]   ;;  %v8008_v2 = vld [vmem:[%s8474_s6 + $0xdb0] sm:$0xff]  }
 0x1c2   : > { %v6974_v29 = vpop.f32.mrf.mxu1  ;;  %v5152_v31 = vadd.f32 %v6951_v25, %v8875_v46  ;;  %7244 = vmatpush3.bf16.msra.mxu0 %v7941_v17  ;;  %v7957_v46 = vld [vmem:[%s8474_s6 + $0xb10] sm:$0xff]   ;;  %v7982_v28 = vld [vmem:[%s8474_s6 + $0xc20] sm:$0xff]  }
 0x1c3   : > { %7266 = vmatpush3.bf16.msra.mxu1 %v7942_v20  ;;  %v6953_v33 = vpop.f32.mrf.mxu0  ;;  %7245 = vmatprep.subr.bf16.mxu0 %v7943_v21  ;;  %v7979_v21 = vld [vmem:[%s8474_s6 + $0xca8] sm:$0xff]   ;;  %v7983_v29 = vld [vmem:[%s8474_s6 + $0xca0] sm:$0xff]  }
 0x1c4   : > { %v6975_v34 = vpop.f32.mrf.mxu1  ;;  %7267 = vmatprep.subr.bf16.mxu1 %v7944_v24  ;;  %v8913_v36 = vadd.f32 %v6973_v26, %v5152_v31  ;;  %v7981_v26 = vld [vmem:[%s8474_s6 + $0xce0] sm:$0xff]   ;;  %v7985_v31 = vld [vmem:[%s8474_s6 + $0xcd8] sm:$0xff]  }
 0x1c5   : > { %v7987_v33 = vld [vmem:[%s8474_s6 + $0xc98] sm:$0xff]   ;;  %v7988_v34 = vld [vmem:[%s8474_s6 + $0xc50] sm:$0xff]  }
 0x1c6   : > { %7246 = vmatpush3.bf16.msra.mxu0 %v7945_v27 }
 0x1c7   : > { %7268 = vmatpush3.bf16.msra.mxu1 %v7946_v30  ;;  %7247 = vmatprep.subr.bf16.mxu0 %v7947_v32  ;;  %v7984_v30 = vld [vmem:[%s8474_s6 + $0xc58] sm:$0xff]  }
 0x1c8   : > { %7269 = vmatprep.subr.bf16.mxu1 %v7948_v35  ;;  %v7986_v32 = vld [vmem:[%s8474_s6 + $0xc18] sm:$0xff]   ;;  %v7989_v35 = vld [vmem:[%s8474_s6 + $0xcd0] sm:$0xff]  }
 0x1ca   : > { %7248 = vmatpush3.bf16.msra.mxu0 %v7949_v37  ;;  %v7991_v37 = vld [vmem:[%s8474_s6 + $0xc90] sm:$0xff]  }
 0x1cb   : > { %7270 = vmatpush3.bf16.msra.mxu1 %v7950_v38  ;;  %7249 = vmatprep.subr.bf16.mxu0 %v7951_v39  ;;  %v7992_v38 = vld [vmem:[%s8474_s6 + $0xc48] sm:$0xff]  }
 0x1cc   : > { %7271 = vmatprep.subr.bf16.mxu1 %v7952_v40  ;;  %v7993_v39 = vld [vmem:[%s8474_s6 + $0xcc8] sm:$0xff]  }
 0x1cd   : > { %v7994_v40 = vld [vmem:[%s8474_s6 + $0xc08] sm:$0xff]  }
 0x1ce   : > { %7250 = vmatpush3.bf16.msra.mxu0 %v7953_v41  ;;  %v7995_v41 = vld [vmem:[%s8474_s6 + $0xc88] sm:$0xff]  }
 0x1cf   : > { %7272 = vmatpush3.bf16.msra.mxu1 %v7954_v43  ;;  %7251 = vmatprep.subr.bf16.mxu0 %v7955_v44  ;;  %v7996_v43 = vld [vmem:[%s8474_s6 + $0xc40] sm:$0xff]  }
 0x1d0   : > { %7273 = vmatprep.subr.bf16.mxu1 %v7956_v45  ;;  %v7997_v44 = vld [vmem:[%s8474_s6 + $0xcc0] sm:$0xff]  }
 0x1d1   : > { %v281_v45 = vld [vmem:[%s8494_s25 + $0x60] sm:$0xff] }
 0x1d2   : > { %7252 = vmatpush3.bf16.msra.mxu0 %v7957_v46  ;;  %v7998_v46 = vld [vmem:[%s8474_s6 + $0xc00] sm:$0xff]  }
 0x1d3   : > { %7274 = vmatpush3.bf16.msra.mxu1 %v7958_v47  ;;  %7253 = vmatprep.subr.bf16.mxu0 %v7959_v48  ;;  %v512_v47 = vrot.slane %v281_v45, %v8535_v42  ;;  %v505_v48 = vcombine.high %v281_v45, %v281_v45 }
 0x1d4   : > { %7275 = vmatprep.subr.bf16.mxu1 %v7960_v49  ;;  %v7999_v49 = vld [vmem:[%s8474_s6 + $0xc80] sm:$0xff]  }
 0x1d6   : > { %7254 = vmatpush3.bf16.msra.mxu0 %v7961_v50  ;;  %v520_v50 = vcombine.high %v512_v47, %v512_v47 }
 0x1d7   : > { %7276 = vmatpush3.bf16.msra.mxu1 %v7962_v51  ;;  %7255 = vmatprep.subr.bf16.mxu0 %v7963_v52  ;;  %v519_v51 = vrot.slane %v505_v48, %v8535_v42  ;;  %v8001_v52 = vld [vmem:[%s8474_s6 + $0xd78] sm:$0xff]  }
 0x1d8   : > { %7277 = vmatprep.subr.bf16.mxu1 %v7964_v54  ;;  %v686_v54 = vpack.c.bf16 %v520_v50, %v520_v50  ;;  %v8037_v50 = vld [vmem:[%s8474_s6 + $0xeb8] sm:$0xff]  }
 0x1d9   : > { %v521_v55 = vcombine.high %v519_v51, %v519_v51 }
 0x1da   : > { %7256 = vmatpush3.bf16.msra.mxu0 %v7965_v57  ;;  %v685_v57 = vpack.c.bf16 %v512_v47, %v512_v47  ;;  %v8036_v47 = vld [vmem:[%s8474_s6 + $0xe38] sm:$0xff]  }
 0x1db   : > { %7278 = vmatpush3.bf16.msra.mxu1 %v7966_v58  ;;  %7285 = vmatprep.subr.bf16.mxu0 %v7968_v61  ;;  %v687_v58 = vpack.c.bf16 %v519_v51, %v519_v51  ;;  %v688_v60 = vpack.c.bf16 %v521_v55, %v521_v55  ;;  %v8005_v61 = vld [vmem:[%s8474_s6 + $0xd70] sm:$0xff]  }
 0x1dc   : > { %7307 = vmatprep.subr.bf16.mxu1 %v7969_v0 }
 0x1dd   : > { %v6993_v9 = vpop.f32.mrf.mxu0  ;;  %5710 = vmatmul.mubr.bf16.vlgmr.msra.gmra.mxu0 %v681_v3  ;;  %v8009_v3 = vld [vmem:[%s8474_s6 + $0xd68] sm:$0xff]  }
 0x1de   : > { %v7015_v10 = vpop.f32.mrf.mxu1  ;;  %5750 = vmatmul.mubr.bf16.vlgmr.msra.gmra.mxu1 %v683_v4  ;;  %7286 = vmatpush3.bf16.msra.mxu0 %v7970_v1 }
 0x1df   : > { %7308 = vmatpush3.bf16.msra.mxu1 %v7971_v5  ;;  %v6994_v13 = vpop.f32.mrf.mxu0  ;;  %7287 = vmatprep.subr.bf16.mxu0 %v7972_v6  ;;  %v8010_v6 = vld [vmem:[%s8474_s6 + $0xde8] sm:$0xff]  }
 0x1e0   : > { %v7016_v14 = vpop.f32.mrf.mxu1  ;;  %7309 = vmatprep.subr.bf16.mxu1 %v7973_v7  ;;  %v6995_v16 = vadd.f32 %v6994_v13, %v6993_v9  ;;  %5789 = vmatprep.mubr.bf16.mxu0 %v686_v54  ;;  %v8011_v9 = vld [vmem:[%s8474_s6 + $0xd28] sm:$0xff]   ;;  %v8040_v54 = vld [vmem:[%s8474_s6 + $0xe30] sm:$0xff]  }
 0x1e1   : > { %v7017_v17 = vadd.f32 %v7016_v14, %v7015_v10  ;;  %v6996_v19 = vpop.f32.mrf.mxu0  ;;  %5829 = vmatprep.mubr.bf16.mxu1 %v688_v60  ;;  %v8013_v14 = vld [vmem:[%s8474_s6 + $0xd60] sm:$0xff]  }
 0x1e2   : > { %v7018_v20 = vpop.f32.mrf.mxu1  ;;  %v5232_v22 = vadd.f32 %v6995_v16, %v8913_v36  ;;  %7288 = vmatpush3.bf16.msra.mxu0 %v7974_v8  ;;  %v7990_v36 = vld [vmem:[%s8474_s6 + $0xc10] sm:$0xff]   ;;  %v8015_v19 = vld [vmem:[%s8474_s6 + $0xd20] sm:$0xff]  }
 0x1e3   : > { %7310 = vmatpush3.bf16.msra.mxu1 %v7975_v11  ;;  %v6997_v24 = vpop.f32.mrf.mxu0  ;;  %7289 = vmatprep.subr.bf16.mxu0 %v7976_v12  ;;  %v8012_v12 = vld [vmem:[%s8474_s6 + $0xda8] sm:$0xff]   ;;  %v8016_v20 = vld [vmem:[%s8474_s6 + $0xda0] sm:$0xff]  }
 0x1e4   : > { %v7019_v25 = vpop.f32.mrf.mxu1  ;;  %7311 = vmatprep.subr.bf16.mxu1 %v7977_v15  ;;  %v8951_v27 = vadd.f32 %v7017_v17, %v5232_v22  ;;  %v8014_v17 = vld [vmem:[%s8474_s6 + $0xde0] sm:$0xff]   ;;  %v8018_v22 = vld [vmem:[%s8474_s6 + $0xdd8] sm:$0xff]  }
 0x1e5   : > { %v8020_v24 = vld [vmem:[%s8474_s6 + $0xd98] sm:$0xff]   ;;  %v8021_v25 = vld [vmem:[%s8474_s6 + $0xd50] sm:$0xff]  }
 0x1e6   : > { %7290 = vmatpush3.bf16.msra.mxu0 %v7978_v18 }
 0x1e7   : > { %7312 = vmatpush3.bf16.msra.mxu1 %v7979_v21  ;;  %7291 = vmatprep.subr.bf16.mxu0 %v7980_v23  ;;  %v8017_v21 = vld [vmem:[%s8474_s6 + $0xd58] sm:$0xff]  }
 0x1e8   : > { %7313 = vmatprep.subr.bf16.mxu1 %v7981_v26  ;;  %v8019_v23 = vld [vmem:[%s8474_s6 + $0xd18] sm:$0xff]   ;;  %v8022_v26 = vld [vmem:[%s8474_s6 + $0xdd0] sm:$0xff]  }
 0x1ea   : > { %7292 = vmatpush3.bf16.msra.mxu0 %v7982_v28  ;;  %v8024_v28 = vld [vmem:[%s8474_s6 + $0xd90] sm:$0xff]  }
 0x1eb   : > { %7314 = vmatpush3.bf16.msra.mxu1 %v7983_v29  ;;  %7293 = vmatprep.subr.bf16.mxu0 %v7984_v30  ;;  %v8025_v29 = vld [vmem:[%s8474_s6 + $0xd48] sm:$0xff]  }
 0x1ec   : > { %7315 = vmatprep.subr.bf16.mxu1 %v7985_v31  ;;  %v8026_v30 = vld [vmem:[%s8474_s6 + $0xdc8] sm:$0xff]  }
 0x1ed   : > { %v8027_v31 = vld [vmem:[%s8474_s6 + $0xd08] sm:$0xff]  }
 0x1ee   : > { %7294 = vmatpush3.bf16.msra.mxu0 %v7986_v32  ;;  %v8028_v32 = vld [vmem:[%s8474_s6 + $0xd88] sm:$0xff]  }
 0x1ef   : > { %7316 = vmatpush3.bf16.msra.mxu1 %v7987_v33  ;;  %7295 = vmatprep.subr.bf16.mxu0 %v7988_v34  ;;  %v8029_v33 = vld [vmem:[%s8474_s6 + $0xd40] sm:$0xff]  }
 0x1f0   : > { %7317 = vmatprep.subr.bf16.mxu1 %v7989_v35  ;;  %v8030_v34 = vld [vmem:[%s8474_s6 + $0xdc0] sm:$0xff]   ;;  %v282_v35 = vld [vmem:[%s8494_s25 + $0x68] sm:$0xff] }
 0x1f2   : > { %7296 = vmatpush3.bf16.msra.mxu0 %v7990_v36  ;;  %v8031_v36 = vld [vmem:[%s8474_s6 + $0xd00] sm:$0xff]  }
 0x1f3   : > { %7318 = vmatpush3.bf16.msra.mxu1 %v7991_v37  ;;  %7297 = vmatprep.subr.bf16.mxu0 %v7992_v38  ;;  %v529_v37 = vrot.slane %v282_v35, %v8535_v42  ;;  %v522_v38 = vcombine.high %v282_v35, %v282_v35 }
 0x1f4   : > { %7319 = vmatprep.subr.bf16.mxu1 %v7993_v39  ;;  %v8032_v39 = vld [vmem:[%s8474_s6 + $0xd80] sm:$0xff]  }
 0x1f5   : > { %v689_v48 = vpack.c.bf16 %v529_v37, %v529_v37 }
 0x1f6   : > { %7298 = vmatpush3.bf16.msra.mxu0 %v7994_v40  ;;  %v537_v40 = vcombine.high %v529_v37, %v529_v37  ;;  %v8069_v37 = vld [vmem:[%s8474_s6 + $0xf38] sm:$0xff]  }
 0x1f7   : > { %7320 = vmatpush3.bf16.msra.mxu1 %v7995_v41  ;;  %7299 = vmatprep.subr.bf16.mxu0 %v7996_v43  ;;  %v536_v41 = vrot.slane %v522_v38, %v8535_v42  ;;  %v8034_v43 = vld [vmem:[%s8474_s6 + $0xe78] sm:$0xff]  }
 0x1f8   : > { %7321 = vmatprep.subr.bf16.mxu1 %v7997_v44  ;;  %v8035_v44 = vld [vmem:[%s8474_s6 + $0xef8] sm:$0xff]   ;;  %v690_v45 = vpack.c.bf16 %v537_v40, %v537_v40 }
 0x1f9   : > { %v8070_v40 = vld [vmem:[%s8474_s6 + $0xfb8] sm:$0xff]  }
 0x1fa   : > { %7300 = vmatpush3.bf16.msra.mxu0 %v7998_v46  ;;  %v538_v46 = vcombine.high %v536_v41, %v536_v41 }
 0x1fb   : > { %7322 = vmatpush3.bf16.msra.mxu1 %v7999_v49  ;;  %7329 = vmatprep.subr.bf16.mxu0 %v8001_v52  ;;  %v691_v49 = vpack.c.bf16 %v536_v41, %v536_v41  ;;  %v8038_v52 = vld [vmem:[%s8474_s6 + $0xe70] sm:$0xff]  }
 0x1fc   : > { %7351 = vmatprep.subr.bf16.mxu1 %v8002_v53  ;;  %v692_v51 = vpack.c.bf16 %v538_v46, %v538_v46  ;;  %v8039_v53 = vld [vmem:[%s8474_s6 + $0xef0] sm:$0xff]  }
 0x1fd   : > { %v7037_v0 = vpop.f32.mrf.mxu0  ;;  %5790 = vmatmul.mubr.bf16.vlgmr.msra.gmra.mxu0 %v685_v57  ;;  %v8041_v57 = vld [vmem:[%s8474_s6 + $0xeb0] sm:$0xff]  }
 0x1fe   : > { %v7059_v1 = vpop.f32.mrf.mxu1  ;;  %5830 = vmatmul.mubr.bf16.vlgmr.msra.gmra.mxu1 %v687_v58  ;;  %7330 = vmatpush3.bf16.msra.mxu0 %v8003_v56  ;;  %v8042_v58 = vld [vmem:[%s8474_s6 + $0xe68] sm:$0xff]  }
 0x1ff   : > { %7352 = vmatpush3.bf16.msra.mxu1 %v8004_v59  ;;  %v7038_v4 = vpop.f32.mrf.mxu0  ;;  %7331 = vmatprep.subr.bf16.mxu0 %v8005_v61  ;;  %v8043_v61 = vld [vmem:[%s8474_s6 + $0xee8] sm:$0xff]  }
 0x200   : > { %v7060_v5 = vpop.f32.mrf.mxu1  ;;  %7353 = vmatprep.subr.bf16.mxu1 %v8006_v62  ;;  %v7039_v7 = vadd.f32 %v7038_v4, %v7037_v0  ;;  %5869 = vmatprep.mubr.bf16.mxu0 %v690_v45  ;;  %v8044_v0 = vld [vmem:[%s8474_s6 + $0xe28] sm:$0xff]   ;;  %v8073_v45 = vld [vmem:[%s8474_s6 + $0xf30] sm:$0xff]  }
 0x201   : > { %v7061_v8 = vadd.f32 %v7060_v5, %v7059_v1  ;;  %v7040_v10 = vpop.f32.mrf.mxu0  ;;  %5909 = vmatprep.mubr.bf16.mxu1 %v692_v51  ;;  %v8046_v5 = vld [vmem:[%s8474_s6 + $0xe60] sm:$0xff]  }
 0x202   : > { %v7062_v11 = vpop.f32.mrf.mxu1  ;;  %v5312_v13 = vadd.f32 %v7039_v7, %v8951_v27  ;;  %7332 = vmatpush3.bf16.msra.mxu0 %v8007_v63  ;;  %v8023_v27 = vld [vmem:[%s8474_s6 + $0xd10] sm:$0xff]   ;;  %v8048_v10 = vld [vmem:[%s8474_s6 + $0xe20] sm:$0xff]  }
 0x203   : > { %7354 = vmatpush3.bf16.msra.mxu1 %v8008_v2  ;;  %v7041_v15 = vpop.f32.mrf.mxu0  ;;  %7333 = vmatprep.subr.bf16.mxu0 %v8009_v3  ;;  %v8045_v3 = vld [vmem:[%s8474_s6 + $0xea8] sm:$0xff]   ;;  %v8049_v11 = vld [vmem:[%s8474_s6 + $0xea0] sm:$0xff]  }
 0x204   : > { %v7063_v16 = vpop.f32.mrf.mxu1  ;;  %7355 = vmatprep.subr.bf16.mxu1 %v8010_v6  ;;  %v8989_v18 = vadd.f32 %v7061_v8, %v5312_v13  ;;  %v8047_v8 = vld [vmem:[%s8474_s6 + $0xee0] sm:$0xff]   ;;  %v8051_v13 = vld [vmem:[%s8474_s6 + $0xed8] sm:$0xff]  }
 0x205   : > { %v8053_v15 = vld [vmem:[%s8474_s6 + $0xe98] sm:$0xff]   ;;  %v8054_v16 = vld [vmem:[%s8474_s6 + $0xe50] sm:$0xff]  }
 0x206   : > { %7334 = vmatpush3.bf16.msra.mxu0 %v8011_v9 }
 0x207   : > { %7356 = vmatpush3.bf16.msra.mxu1 %v8012_v12  ;;  %7335 = vmatprep.subr.bf16.mxu0 %v8013_v14  ;;  %v8050_v12 = vld [vmem:[%s8474_s6 + $0xe58] sm:$0xff]  }
 0x208   : > { %7357 = vmatprep.subr.bf16.mxu1 %v8014_v17  ;;  %v8052_v14 = vld [vmem:[%s8474_s6 + $0xe18] sm:$0xff]   ;;  %v8055_v17 = vld [vmem:[%s8474_s6 + $0xed0] sm:$0xff]  }
 0x20a   : > { %7336 = vmatpush3.bf16.msra.mxu0 %v8015_v19  ;;  %v8057_v19 = vld [vmem:[%s8474_s6 + $0xe90] sm:$0xff]  }
 0x20b   : > { %7358 = vmatpush3.bf16.msra.mxu1 %v8016_v20  ;;  %7337 = vmatprep.subr.bf16.mxu0 %v8017_v21  ;;  %v8058_v20 = vld [vmem:[%s8474_s6 + $0xe48] sm:$0xff]  }
 0x20c   : > { %7359 = vmatprep.subr.bf16.mxu1 %v8018_v22  ;;  %v8059_v21 = vld [vmem:[%s8474_s6 + $0xec8] sm:$0xff]  }
 0x20d   : > { %v8060_v22 = vld [vmem:[%s8474_s6 + $0xe08] sm:$0xff]  }
 0x20e   : > { %7338 = vmatpush3.bf16.msra.mxu0 %v8019_v23  ;;  %v8061_v23 = vld [vmem:[%s8474_s6 + $0xe88] sm:$0xff]  }
 0x20f   : > { %7360 = vmatpush3.bf16.msra.mxu1 %v8020_v24  ;;  %7339 = vmatprep.subr.bf16.mxu0 %v8021_v25  ;;  %v8062_v24 = vld [vmem:[%s8474_s6 + $0xe40] sm:$0xff]  }
 0x210   : > { %7361 = vmatprep.subr.bf16.mxu1 %v8022_v26  ;;  %v8063_v25 = vld [vmem:[%s8474_s6 + $0xec0] sm:$0xff]   ;;  %v283_v26 = vld [vmem:[%s8494_s25 + $0x70] sm:$0xff] }
 0x212   : > { %7340 = vmatpush3.bf16.msra.mxu0 %v8023_v27  ;;  %v8064_v27 = vld [vmem:[%s8474_s6 + $0xe00] sm:$0xff]  }
 0x213   : > { %7362 = vmatpush3.bf16.msra.mxu1 %v8024_v28  ;;  %7341 = vmatprep.subr.bf16.mxu0 %v8025_v29  ;;  %v546_v28 = vrot.slane %v283_v26, %v8535_v42  ;;  %v539_v29 = vcombine.high %v283_v26, %v283_v26 }
 0x214   : > { %7363 = vmatprep.subr.bf16.mxu1 %v8026_v30  ;;  %v8065_v30 = vld [vmem:[%s8474_s6 + $0xe80] sm:$0xff]  }
 0x215   : > { %v693_v38 = vpack.c.bf16 %v546_v28, %v546_v28 }
 0x216   : > { %7342 = vmatpush3.bf16.msra.mxu0 %v8027_v31  ;;  %v554_v31 = vcombine.high %v546_v28, %v546_v28 }
 0x217   : > { %7364 = vmatpush3.bf16.msra.mxu1 %v8028_v32  ;;  %7343 = vmatprep.subr.bf16.mxu0 %v8029_v33  ;;  %v553_v32 = vrot.slane %v539_v29, %v8535_v42  ;;  %v8067_v33 = vld [vmem:[%s8474_s6 + $0xf78] sm:$0xff]  }
 0x218   : > { %7365 = vmatprep.subr.bf16.mxu1 %v8030_v34  ;;  %v8068_v34 = vld [vmem:[%s8474_s6 + $0xff8] sm:$0xff]   ;;  %v694_v35 = vpack.c.bf16 %v554_v31, %v554_v31 }
 0x21a   : > { %7344 = vmatpush3.bf16.msra.mxu0 %v8031_v36  ;;  %v555_v36 = vcombine.high %v553_v32, %v553_v32 }
 0x21b   : > { %7366 = vmatpush3.bf16.msra.mxu1 %v8032_v39  ;;  %7373 = vmatprep.subr.bf16.mxu0 %v8034_v43  ;;  %v695_v39 = vpack.c.bf16 %v553_v32, %v553_v32  ;;  %v8071_v43 = vld [vmem:[%s8474_s6 + $0xf70] sm:$0xff]  }
 0x21c   : > { %7395 = vmatprep.subr.bf16.mxu1 %v8035_v44  ;;  %v696_v41 = vpack.c.bf16 %v555_v36, %v555_v36  ;;  %v8072_v44 = vld [vmem:[%s8474_s6 + $0xff0] sm:$0xff]  }
 0x21d   : > { %v7081_v55 = vpop.f32.mrf.mxu0  ;;  %5870 = vmatmul.mubr.bf16.vlgmr.msra.gmra.mxu0 %v689_v48  ;;  %v8074_v48 = vld [vmem:[%s8474_s6 + $0xfb0] sm:$0xff]  }
 0x21e   : > { %v7103_v56 = vpop.f32.mrf.mxu1  ;;  %5910 = vmatmul.mubr.bf16.vlgmr.msra.gmra.mxu1 %v691_v49  ;;  %7374 = vmatpush3.bf16.msra.mxu0 %v8036_v47  ;;  %v8075_v49 = vld [vmem:[%s8474_s6 + $0xf68] sm:$0xff]  }
 0x21f   : > { %7396 = vmatpush3.bf16.msra.mxu1 %v8037_v50  ;;  %v7082_v59 = vpop.f32.mrf.mxu0  ;;  %7375 = vmatprep.subr.bf16.mxu0 %v8038_v52  ;;  %v8076_v52 = vld [vmem:[%s8474_s6 + $0xfe8] sm:$0xff]  }
 0x220   : > { %v7104_v60 = vpop.f32.mrf.mxu1  ;;  %7397 = vmatprep.subr.bf16.mxu1 %v8039_v53  ;;  %v7083_v62 = vadd.f32 %v7082_v59, %v7081_v55  ;;  %5949 = vmatprep.mubr.bf16.mxu0 %v694_v35  ;;  %v8077_v55 = vld [vmem:[%s8474_s6 + $0xf28] sm:$0xff]  }
 0x221   : > { %v7105_v63 = vadd.f32 %v7104_v60, %v7103_v56  ;;  %v7084_v1 = vpop.f32.mrf.mxu0  ;;  %5989 = vmatprep.mubr.bf16.mxu1 %v696_v41  ;;  %v8079_v60 = vld [vmem:[%s8474_s6 + $0xf60] sm:$0xff]  }
 0x222   : > { %v7106_v2 = vpop.f32.mrf.mxu1  ;;  %v5392_v4 = vadd.f32 %v7083_v62, %v8989_v18  ;;  %7376 = vmatpush3.bf16.msra.mxu0 %v8040_v54  ;;  %v8056_v18 = vld [vmem:[%s8474_s6 + $0xe10] sm:$0xff]   ;;  %v8081_v1 = vld [vmem:[%s8474_s6 + $0xf20] sm:$0xff]  }
 0x223   : > { %7398 = vmatpush3.bf16.msra.mxu1 %v8041_v57  ;;  %v7085_v6 = vpop.f32.mrf.mxu0  ;;  %7377 = vmatprep.subr.bf16.mxu0 %v8042_v58  ;;  %v8078_v58 = vld [vmem:[%s8474_s6 + $0xfa8] sm:$0xff]   ;;  %v8082_v2 = vld [vmem:[%s8474_s6 + $0xfa0] sm:$0xff]  }
 0x224   : > { %v7107_v7 = vpop.f32.mrf.mxu1  ;;  %7399 = vmatprep.subr.bf16.mxu1 %v8043_v61  ;;  %v9027_v9 = vadd.f32 %v7105_v63, %v5392_v4  ;;  %v8080_v63 = vld [vmem:[%s8474_s6 + $0xfe0] sm:$0xff]   ;;  %v8084_v4 = vld [vmem:[%s8474_s6 + $0xfd8] sm:$0xff]  }
 0x225   : > { %v8086_v6 = vld [vmem:[%s8474_s6 + $0xf98] sm:$0xff]   ;;  %v8087_v7 = vld [vmem:[%s8474_s6 + $0xf50] sm:$0xff]  }
 0x226   : > { %7378 = vmatpush3.bf16.msra.mxu0 %v8044_v0 }
 0x227   : > { %7400 = vmatpush3.bf16.msra.mxu1 %v8045_v3  ;;  %7379 = vmatprep.subr.bf16.mxu0 %v8046_v5  ;;  %v8083_v3 = vld [vmem:[%s8474_s6 + $0xf58] sm:$0xff]  }
 0x228   : > { %7401 = vmatprep.subr.bf16.mxu1 %v8047_v8  ;;  %v8085_v5 = vld [vmem:[%s8474_s6 + $0xf18] sm:$0xff]   ;;  %v8088_v8 = vld [vmem:[%s8474_s6 + $0xfd0] sm:$0xff]  }
 0x22a   : > { %7380 = vmatpush3.bf16.msra.mxu0 %v8048_v10  ;;  %v8090_v10 = vld [vmem:[%s8474_s6 + $0xf90] sm:$0xff]  }
 0x22b   : > { %7402 = vmatpush3.bf16.msra.mxu1 %v8049_v11  ;;  %7381 = vmatprep.subr.bf16.mxu0 %v8050_v12  ;;  %v8091_v11 = vld [vmem:[%s8474_s6 + $0xf48] sm:$0xff]  }
 0x22c   : > { %7403 = vmatprep.subr.bf16.mxu1 %v8051_v13  ;;  %v8092_v12 = vld [vmem:[%s8474_s6 + $0xfc8] sm:$0xff]  }
 0x22d   : > { %v8093_v13 = vld [vmem:[%s8474_s6 + $0xf08] sm:$0xff]  }
 0x22e   : > { %7382 = vmatpush3.bf16.msra.mxu0 %v8052_v14  ;;  %v8094_v14 = vld [vmem:[%s8474_s6 + $0xf88] sm:$0xff]  }
 0x22f   : > { %7404 = vmatpush3.bf16.msra.mxu1 %v8053_v15  ;;  %7383 = vmatprep.subr.bf16.mxu0 %v8054_v16  ;;  %v8095_v15 = vld [vmem:[%s8474_s6 + $0xf40] sm:$0xff]  }
 0x230   : > { %7405 = vmatprep.subr.bf16.mxu1 %v8055_v17  ;;  %v8096_v16 = vld [vmem:[%s8474_s6 + $0xfc0] sm:$0xff]   ;;  %v284_v17 = vld [vmem:[%s8494_s25 + $0x78] sm:$0xff] }
 0x232   : > { %7384 = vmatpush3.bf16.msra.mxu0 %v8056_v18  ;;  %v563_v18 = vrot.slane %v284_v17, %v8535_v42 }
 0x233   : > { %7406 = vmatpush3.bf16.msra.mxu1 %v8057_v19  ;;  %7385 = vmatprep.subr.bf16.mxu0 %v8058_v20  ;;  %v556_v19 = vcombine.high %v284_v17, %v284_v17  ;;  %v8097_v20 = vld [vmem:[%s8474_s6 + $0xf00] sm:$0xff]  }
 0x234   : > { %7407 = vmatprep.subr.bf16.mxu1 %v8059_v21  ;;  %v8098_v21 = vld [vmem:[%s8474_s6 + $0xf80] sm:$0xff]   ;;  %v697_v26 = vpack.c.bf16 %v563_v18, %v563_v18 }
 0x236   : > { %7386 = vmatpush3.bf16.msra.mxu0 %v8060_v22  ;;  %v571_v22 = vcombine.high %v563_v18, %v563_v18 }
 0x237   : > { %7408 = vmatpush3.bf16.msra.mxu1 %v8061_v23  ;;  %7387 = vmatprep.subr.bf16.mxu0 %v8062_v24  ;;  %v570_v23 = vrot.slane %v556_v19, %v8535_v42 }
 0x238   : > { %7409 = vmatprep.subr.bf16.mxu1 %v8063_v25  ;;  %v698_v24 = vpack.c.bf16 %v571_v22, %v571_v22 }
 0x239   : > { %v572_v25 = vcombine.high %v570_v23, %v570_v23 }
 0x23a   : > { %7388 = vmatpush3.bf16.msra.mxu0 %v8064_v27  ;;  %v699_v27 = vpack.c.bf16 %v570_v23, %v570_v23 }
 0x23b   : > { %7410 = vmatpush3.bf16.msra.mxu1 %v8065_v30  ;;  %7417 = vmatprep.subr.bf16.mxu0 %v8067_v33  ;;  %v700_v28 = vpack.c.bf16 %v572_v25, %v572_v25 }
 0x23c   : > { %7439 = vmatprep.subr.bf16.mxu1 %v8068_v34 }
 0x23d   : > { %v7125_v46 = vpop.f32.mrf.mxu0  ;;  %5950 = vmatmul.mubr.bf16.vlgmr.msra.gmra.mxu0 %v693_v38 }
 0x23e   : > { %v7147_v47 = vpop.f32.mrf.mxu1  ;;  %5990 = vmatmul.mubr.bf16.vlgmr.msra.gmra.mxu1 %v695_v39  ;;  %7418 = vmatpush3.bf16.msra.mxu0 %v8069_v37 }
 0x23f   : > { %7440 = vmatpush3.bf16.msra.mxu1 %v8070_v40  ;;  %v7126_v50 = vpop.f32.mrf.mxu0  ;;  %7419 = vmatprep.subr.bf16.mxu0 %v8071_v43 }
 0x240   : > { %v7148_v51 = vpop.f32.mrf.mxu1  ;;  %7441 = vmatprep.subr.bf16.mxu1 %v8072_v44  ;;  %v7127_v53 = vadd.f32 %v7126_v50, %v7125_v46  ;;  %6029 = vmatprep.mubr.bf16.mxu0 %v698_v24 }
 0x241   : > { %v7149_v54 = vadd.f32 %v7148_v51, %v7147_v47  ;;  %v7128_v56 = vpop.f32.mrf.mxu0  ;;  %6069 = vmatprep.mubr.bf16.mxu1 %v700_v28 }
 0x242   : > { %v7150_v57 = vpop.f32.mrf.mxu1  ;;  %v5472_v59 = vadd.f32 %v7127_v53, %v9027_v9  ;;  %7420 = vmatpush3.bf16.msra.mxu0 %v8073_v45  ;;  %v8089_v9 = vld [vmem:[%s8474_s6 + $0xf10] sm:$0xff]  }
 0x243   : > { %7442 = vmatpush3.bf16.msra.mxu1 %v8074_v48  ;;  %v7129_v61 = vpop.f32.mrf.mxu0  ;;  %7421 = vmatprep.subr.bf16.mxu0 %v8075_v49 }
 0x244   : > { %v7151_v62 = vpop.f32.mrf.mxu1  ;;  %7443 = vmatprep.subr.bf16.mxu1 %v8076_v52  ;;  %v9065_v0 = vadd.f32 %v7149_v54, %v5472_v59 }
 0x246   : > { %7422 = vmatpush3.bf16.msra.mxu0 %v8077_v55 }
 0x247   : > { %7444 = vmatpush3.bf16.msra.mxu1 %v8078_v58  ;;  %7423 = vmatprep.subr.bf16.mxu0 %v8079_v60 }
 0x248   : > { %7445 = vmatprep.subr.bf16.mxu1 %v8080_v63 }
 0x24a   : > { %7424 = vmatpush3.bf16.msra.mxu0 %v8081_v1 }
 0x24b   : > { %7446 = vmatpush3.bf16.msra.mxu1 %v8082_v2  ;;  %7425 = vmatprep.subr.bf16.mxu0 %v8083_v3 }
 0x24c   : > { %7447 = vmatprep.subr.bf16.mxu1 %v8084_v4 }
 0x24e   : > { %7426 = vmatpush3.bf16.msra.mxu0 %v8085_v5 }
 0x24f   : > { %7448 = vmatpush3.bf16.msra.mxu1 %v8086_v6  ;;  %7427 = vmatprep.subr.bf16.mxu0 %v8087_v7 }
 0x250   : > { %7449 = vmatprep.subr.bf16.mxu1 %v8088_v8 }
 0x252   : > { %7428 = vmatpush3.bf16.msra.mxu0 %v8089_v9 }
 0x253   : > { %7450 = vmatpush3.bf16.msra.mxu1 %v8090_v10  ;;  %7429 = vmatprep.subr.bf16.mxu0 %v8091_v11 }
 0x254   : > { %7451 = vmatprep.subr.bf16.mxu1 %v8092_v12 }
 0x256   : > { %7430 = vmatpush3.bf16.msra.mxu0 %v8093_v13 }
 0x257   : > { %7452 = vmatpush3.bf16.msra.mxu1 %v8094_v14  ;;  %7431 = vmatprep.subr.bf16.mxu0 %v8095_v15 }
 0x258   : > { %7453 = vmatprep.subr.bf16.mxu1 %v8096_v16 }
 0x25a   : > { %7432 = vmatpush3.bf16.msra.mxu0 %v8097_v20 }
 0x25b   : > { %7454 = vmatpush3.bf16.msra.mxu1 %v8098_v21 }
 0x25d   : > { %v7169_v29 = vpop.f32.mrf.mxu0  ;;  %6030 = vmatmul.mubr.bf16.vlgmr.msra.gmra.mxu0 %v697_v26 }
 0x25e   : > { %v7191_v30 = vpop.f32.mrf.mxu1  ;;  %6070 = vmatmul.mubr.bf16.vlgmr.msra.gmra.mxu1 %v699_v27 }
 0x25f   : > { %v7170_v31 = vpop.f32.mrf.mxu0 }
 0x260   : > { %v7192_v32 = vpop.f32.mrf.mxu1  ;;  %v7171_v33 = vadd.f32 %v7170_v31, %v7169_v29 }
 0x261   : > { %v7193_v34 = vadd.f32 %v7192_v32, %v7191_v30  ;;  %v7172_v35 = vpop.f32.mrf.mxu0 }
 0x262   : > { %v7194_v36 = vpop.f32.mrf.mxu1  ;;  %v5552_v42 = vadd.f32 %v7171_v33, %v9065_v0 }
 0x263   : > { %v7173_v37 = vpop.f32.mrf.mxu0 }
 0x264   : > { %v7195_v38 = vpop.f32.mrf.mxu1  ;;  %v5592_v39 = vadd.f32 %v7193_v34, %v5552_v42 }
 0x27d   : > { %v7213_v40 = vpop.f32.mrf.mxu0 }
 0x27e   : > { %v7235_v41 = vpop.f32.mrf.mxu1 }
 0x27f   : > { %v7214_v43 = vpop.f32.mrf.mxu0 }
 0x280   : > { %v7236_v44 = vpop.f32.mrf.mxu1  ;;  %v7215_v45 = vadd.f32 %v7214_v43, %v7213_v40 }
 0x281   : > { %v7237_v46 = vadd.f32 %v7236_v44, %v7235_v41  ;;  %v7216_v47 = vpop.f32.mrf.mxu0 }
 0x282   : > { %v7238_v48 = vpop.f32.mrf.mxu1  ;;  %v5632_v49 = vadd.f32 %v7215_v45, %v5592_v39 }
 0x283   : > { %v7217_v50 = vpop.f32.mrf.mxu0 }
 0x284   : > { %v7239_v51 = vpop.f32.mrf.mxu1  ;;  %v5672_v52 = vadd.f32 %v7237_v46, %v5632_v49  ;;  %v268_v46 = vld [vmem:[%s8496_s27] sm:$0x3] }
 0x29d   : > { %v7257_v53 = vpop.f32.mrf.mxu0 }
 0x29e   : > { %v7279_v54 = vpop.f32.mrf.mxu1 }
 0x29f   : > { %v7258_v55 = vpop.f32.mrf.mxu0 }
 0x2a0   : > { %v7280_v56 = vpop.f32.mrf.mxu1  ;;  %v7259_v57 = vadd.f32 %v7258_v55, %v7257_v53 }
 0x2a1   : > { %v7281_v58 = vadd.f32 %v7280_v56, %v7279_v54  ;;  %v7260_v59 = vpop.f32.mrf.mxu0 }
 0x2a2   : > { %v7282_v60 = vpop.f32.mrf.mxu1  ;;  %v5712_v61 = vadd.f32 %v7259_v57, %v5672_v52 }
 0x2a3   : > { %v7261_v62 = vpop.f32.mrf.mxu0 }
 0x2a4   : > { %v7283_v63 = vpop.f32.mrf.mxu1  ;;  %v5752_v0 = vadd.f32 %v7281_v58, %v5712_v61 }
 0x2bd   : > { %v7301_v1 = vpop.f32.mrf.mxu0 }
 0x2be   : > { %v7323_v2 = vpop.f32.mrf.mxu1 }
 0x2bf   : > { %v7302_v3 = vpop.f32.mrf.mxu0 }
 0x2c0   : > { %v7324_v4 = vpop.f32.mrf.mxu1  ;;  %v7303_v5 = vadd.f32 %v7302_v3, %v7301_v1 }
 0x2c1   : > { %v7325_v6 = vadd.f32 %v7324_v4, %v7323_v2  ;;  %v7304_v7 = vpop.f32.mrf.mxu0 }
 0x2c2   : > { %v7326_v8 = vpop.f32.mrf.mxu1  ;;  %v5792_v9 = vadd.f32 %v7303_v5, %v5752_v0 }
 0x2c3   : > { %v7305_v10 = vpop.f32.mrf.mxu0 }
 0x2c4   : > { %v7327_v11 = vpop.f32.mrf.mxu1  ;;  %v5832_v12 = vadd.f32 %v7325_v6, %v5792_v9 }
 0x2dd   : > { %v7345_v13 = vpop.f32.mrf.mxu0 }
 0x2de   : > { %v7367_v14 = vpop.f32.mrf.mxu1 }
 0x2df   : > { %v7346_v15 = vpop.f32.mrf.mxu0 }
 0x2e0   : > { %v7368_v16 = vpop.f32.mrf.mxu1  ;;  %v7347_v29 = vadd.f32 %v7346_v15, %v7345_v13 }
 0x2e1   : > { %v7348_v17 = vpop.f32.mrf.mxu0  ;;  %v7369_v31 = vadd.f32 %v7368_v16, %v7367_v14 }
 0x2e2   : > { %v7370_v18 = vpop.f32.mrf.mxu1  ;;  %v5872_v30 = vadd.f32 %v7347_v29, %v5832_v12 }
 0x2e3   : > { %v7349_v19 = vpop.f32.mrf.mxu0 }
 0x2e4   : > { %v7371_v20 = vpop.f32.mrf.mxu1  ;;  %v5912_v33 = vadd.f32 %v7369_v31, %v5872_v30 }
 0x2fd   : > { %v7389_v21 = vpop.f32.mrf.mxu0 }
 0x2fe   : > { %v7411_v22 = vpop.f32.mrf.mxu1 }
 0x2ff   : > { %v7390_v23 = vpop.f32.mrf.mxu0 }
 0x300   : > { %v7412_v24 = vpop.f32.mrf.mxu1  ;;  %v7391_v32 = vadd.f32 %v7390_v23, %v7389_v21 }
 0x301   : > { %v7392_v25 = vpop.f32.mrf.mxu0  ;;  %v7413_v35 = vadd.f32 %v7412_v24, %v7411_v22 }
 0x302   : > { %v7414_v26 = vpop.f32.mrf.mxu1  ;;  %v5952_v34 = vadd.f32 %v7391_v32, %v5912_v33 }
 0x303   : > { %v7393_v27 = vpop.f32.mrf.mxu0 }
 0x304   : > { %v7415_v28 = vpop.f32.mrf.mxu1  ;;  %v5992_v38 = vadd.f32 %v7413_v35, %v5952_v34 }
 0x31d   : > { %v7433_v36 = vpop.f32.mrf.mxu0 }
 0x31e   : > { %v7455_v42 = vpop.f32.mrf.mxu1 }
 0x31f   : > { %v7434_v37 = vpop.f32.mrf.mxu0 }
 0x320   : > { %v7435_v39 = vadd.f32 %v7434_v37, %v7433_v36  ;;  %v7456_v40 = vpop.f32.mrf.mxu1 }
 0x321   : > { %v7436_v41 = vpop.f32.mrf.mxu0  ;;  %v7457_v44 = vadd.f32 %v7456_v40, %v7455_v42 }
 0x322   : > { %v6032_v43 = vadd.f32 %v7435_v39, %v5992_v38  ;;  %v7458_v45 = vpop.f32.mrf.mxu1 }
 0x323   : > { %v7437_v47 = vpop.f32.mrf.mxu0 }
 0x324   : > { %v6072_v48 = vadd.f32 %v7457_v44, %v6032_v43  ;;  %v7459_v49 = vpop.f32.mrf.mxu1  ;;  %6082 = sbr.rel (%p6751_p12) target bundleno = 821 (0x335), region = 48 }
 0x326   : > { %v6077_v50 = vadd.f32 %v6072_v48, %v268_v46 }
 0x328   : > { %6078 = vst [vmem:[%s8496_s27] sm:$0x3] %v6077_v50 }
 0x329   : > { %v6752_v52 = vld [vmem:[%s223_s29] ss:$0 sm:$0xff] }
 0x32f   : > { %v6083_v51 = vld [vmem:[%s8496_s27] sm:$0x3] }
 0x330   : > { %v6091_v53 = vadd.f32 %v6752_v52, %v6083_v51 }
 0x332   : > { %v6092_v54 = vmax.f32 %v6091_v53, 0.0 }
 0x334   : > { %6093 = vst [vmem:[%s8496_s27] sm:$0x3] %v6092_v54 }
 0x335 PF: > { %s6754_s30 = sshll.u32 %s8268_s19, 5  ;;  %s6108_s5 = sshll.u32 %s8496_s27, 4  ;;  %s6109_s5 = int_to_ptr.vmem [resolvable:$true] %s6108_s5 }
 0x336   : > { %s6106_s18 = scalar_lea.hbm %s9154_s3, %s6754_s30  ;;  %s6095_s6 = scalar_lea.sflag [#allocation4], %s8481_s1 }
 0x337   : > { %s8156_s24 = scalar_lea.vmem %s6109_s5, 32  ;;  %p9173_p4 = scmp.ne.s32.totalorder %s9170_s26, 0 }
 0x338   : > { %p8157_p13 = scmp.ne.s32.totalorder %s6109_s5, %s8156_s24  ;;  %s8288_s29 = smov [#allocation7]  }
 0x339   : > { %s8160_s20 = sshll.u32 %s8288_s29, 4  ;;  %s8161_s20 = int_to_ptr.vmem [resolvable:$false] %s8160_s20 }
 0x33a   : > { %p8158_p5 = pnand %p8157_p13, %p9173_p4  ;;  %s8162_s28 = scalar_lea.vmem %s8161_s20, 64 }
 0x33b   : > { %p8163_p2 = scmp.lt.s32.totalorder %s6109_s5, %s8161_s20  ;;  %p8164_p10 = scmp.lt.s32.totalorder %s8162_s28, %s8156_s24 }
 0x33c   : > { %p8159_p7 = pneg %p8158_p5 }
 0x33d   : > { %p8165_p11 = por %p8164_p10, %p8163_p2 }
 0x33f   : > { %p8166_p8 = pnand %p8165_p11, %p8159_p7 }
 0x341   : > { %8169 = shalt.err (!%p8166_p8)
}
 0x342   : > { %s8170_s19 = scalar_lea.hbm %s6106_s18, 32  ;;  %s8174_s7 = scalar_lea.hbm %s9154_s3, 64 }
 0x343   : > { %p8171_p0 = scmp.ne.s32.totalorder %s6106_s18, %s8170_s19  ;;  %p8175_p6 = scmp.lt.s32.totalorder %s6106_s18, %s9154_s3 }
 0x344   : > { %p8176_p9 = scmp.lt.s32.totalorder %s8174_s7, %s8170_s19 }
 0x345   : > { %p8172_p1 = pnand %p8171_p0, %p9173_p4 }
 0x346   : > { %p8177_p12 = por %p8176_p9, %p8175_p6 }
 0x347   : > { %p8173_p3 = pneg %p8172_p1 }
 0x349   : > { %p8178_p13 = pnand %p8177_p12, %p8173_p3 }
 0x34b   : > { %8181 = shalt.err (!%p8178_p13)
}
 0x34c   : > { %7465 = dma.vmem_to_hbm [thread:$0]  (%p9173_p4), %s6109_s5, 32, %s6106_s18, %s6095_s6  }
 0x34d PF: > { %p7479_p5 = scmp.ge.s32.totalorder %s8280_s22, 2  ;;  %s6120_s27 = sand.u32 1, %s8240_s12  }
 0x34e   : > { %p9174_p7 = scmp.ne.s32.totalorder %s9171_s4, 0  ;;  %s6121_s30 = scalar_lea.sflag [#allocation4], %s6120_s27 }
 0x350   : > { %p7475_p2 = pnand %p7479_p5, %p9174_p7 }
 0x352   : > { %p7476_p10 = pneg %p7475_p2 }
 0x354   : > { %8235 = dma.done.wait (%p7476_p10), %s6121_s30, 32  }
 0x355   : > { %8237 = vsyncadd (%p7476_p10), %s6121_s30, 4294967264  ;;  %s22_s22 = sadd.s32 1, %s8280_s22   ;;  %s9175_s18 = sld [smem:[#allocation11_spill]] }
 0x356   : > { %p19_p11 = scmp.ge.s32.totalorder %s22_s22, 6   ;;  %s9176_s20 = sld [smem:[#allocation12_spill]] }
 0x357   : > { %s9177_s26 = sld [smem:[#allocation13_spill]]  ;;  %s9178_s12 = smov %s8244_s13 }
 0x358   : > { %s9179_s13 = smov %s8248_s14  ;;  %s9180_s14 = smov %s8432_s23 }
 0x359   : > { %s9181_s15 = smov %s8256_s16  ;;  %s9182_s16 = smov %s8260_s17 }
 0x35a   : > { %s9183_s17 = smov %s8395_s9  ;;  %s9184_s19 = smov %s8276_s21 }
 0x35b   :  { %21 = sbr.rel (!%p19_p11) target bundleno = 13 (0xd), region = 101 }
 0x35d   : > { %s9185_s21 = smov %s9177_s26 }
 0x360   :  { %6126 = vsyncpa [#allocation3], 1 }
 0x361   :  { %6128 = vsyncpa [#allocation3 + $0x1], 1 }
 0x362   :  { %6129 = vsyncpa [#allocation6], 1 }
 0x363   :  { %6131 = vsyncpa [#allocation6 + $0x1], 1 }
 0x364   :  { %6132 = vsyncpa [#allocation4], 1 }
 0x365   :  { %6134 = vsyncpa [#allocation4 + $0x1], 1 }

</bundles_post_ra>
